<compile_context>
chip_gen: v5e
topology: v5e:2x2
jax: 0.10.0
libtpu: 0.0.40
codegen_flags: <defaults>
</compile_context>

<pallas_src>
import jax
import jax.numpy as jnp
from jax.experimental import pallas as pl
from jax.experimental.pallas import tpu as pltpu

_LANE = 128
_SUBLANE = 8


def _rup(x, m):
    return (x + m - 1) // m * m


# --------------------------------------------------------------------------
# Fused network kernel: TCN (all layers) + bi-LSTM + decoder, per batch tile.
# Layout inside the kernel is time-major [L, TB, C] (channels on the lane
# axis, batch tile on the sublane axis), so conv tap shifts and per-timestep
# indexing only touch the leading (untiled) dimension.
# --------------------------------------------------------------------------
def _make_network_kernel(n_layers, K, pad_l, pad_r):
    def kernel(x_ref, cw_ref, cb_ref,
               wihf_ref, whhf_ref, bf_ref,
               wihb_ref, whhb_ref, bb_ref,
               wtop_ref, wbot_ref, bdec_ref,
               o_ref,
               xpad_ref, gxf_ref, gxb_ref, hf_ref, hb_ref):
        L, TB, Cp = x_ref.shape
        Hp = whhf_ref.shape[0]
        bf16 = jnp.bfloat16
        f32 = jnp.float32
        dn = (((2,), (0,)), ((), ()))   # contract last dim with first dim

        # ---------------- TCN: accumulating-tap conv1d + ReLU ---------------
        # One reused padded-activation scratch; pad rows zeroed once.
        if pad_l:
            xpad_ref[pl.ds(0, pad_l)] = jnp.zeros((pad_l, TB, Cp), bf16)
        if pad_r:
            xpad_ref[pl.ds(pad_l + L, pad_r)] = jnp.zeros((pad_r, TB, Cp), bf16)
        xpad_ref[pl.ds(pad_l, L)] = x_ref[...].astype(bf16)

        def conv_layer(layer, carry):
            # K accumulating MXU dots over time-shifted slices (no window
            # concat / no [L,TB,K*Cp] temporary).  All reads precede the
            # in-place overwrite of the middle region.
            acc = jax.lax.dot_general(
                xpad_ref[pl.ds(0, L)], cw_ref[layer * K],
                dimension_numbers=dn, preferred_element_type=f32)
            for k in range(1, K):
                acc = acc + jax.lax.dot_general(
                    xpad_ref[pl.ds(k, L)], cw_ref[layer * K + k],
                    dimension_numbers=dn, preferred_element_type=f32)
            y = jnp.maximum(acc + cb_ref[layer], 0.0)       # bias + ReLU (f32)
            xpad_ref[pl.ds(pad_l, L)] = y.astype(bf16)
            return carry

        jax.lax.fori_loop(0, n_layers, conv_layer, 0)

        # ------- hoisted LSTM input projections (one matmul per direction) --
        xin = xpad_ref[pl.ds(pad_l, L)]                     # [L, TB, Cp] bf16
        gxf_ref[...] = jax.lax.dot_general(
            xin, wihf_ref[...], dimension_numbers=dn,
            preferred_element_type=f32) + bf_ref[...]
        gxb_ref[...] = jax.lax.dot_general(
            xin, wihb_ref[...], dimension_numbers=dn,
            preferred_element_type=f32) + bb_ref[...]

        whh_f = whhf_ref[...]                               # bf16 [Hp, 4Hp]
        whh_b = whhb_ref[...]

        def cell(gates, c):
            # PyTorch gate order: i, f, g, o — each block is lane-aligned (Hp).
            i = jax.nn.sigmoid(gates[:, 0 * Hp:1 * Hp])
            f = jax.nn.sigmoid(gates[:, 1 * Hp:2 * Hp])
            g = jnp.tanh(gates[:, 2 * Hp:3 * Hp])
            o = jax.nn.sigmoid(gates[:, 3 * Hp:4 * Hp])
            c_new = f * c + i * g
            h_new = o * jnp.tanh(c_new)
            return h_new, c_new

        # --- both directions interleaved: two independent small recurrences
        #     per iteration hide each other's serial MXU latency. ---
        def step(s, carry):
            hf, cf, hb, cbwd = carry
            t_b = L - 1 - s
            gf = gxf_ref[s] + jnp.dot(hf.astype(bf16), whh_f,
                                      preferred_element_type=f32)
            gb = gxb_ref[t_b] + jnp.dot(hb.astype(bf16), whh_b,
                                        preferred_element_type=f32)
            hf_new, cf_new = cell(gf, cf)
            hb_new, cb_new = cell(gb, cbwd)
            hf_ref[s] = hf_new.astype(bf16)
            hb_ref[t_b] = hb_new.astype(bf16)
            return (hf_new, cf_new, hb_new, cb_new)

        z0 = jnp.zeros((TB, Hp), f32)
        jax.lax.fori_loop(0, L, step, (z0, z0, z0, z0))

        # -------- decoder epilogue: split linear + log_softmax --------------
        # bdec pad columns hold -1e30 (baked in the wrapper), so no iota mask.
        logits = (jax.lax.dot_general(
                      hf_ref[...], wtop_ref[...], dimension_numbers=dn,
                      preferred_element_type=f32)
                  + jax.lax.dot_general(
                      hb_ref[...], wbot_ref[...], dimension_numbers=dn,
                      preferred_element_type=f32)
                  + bdec_ref[...])                          # [L, TB, Cdp]
        m = jnp.max(logits, axis=-1, keepdims=True)
        zc = logits - m
        lse = jnp.log(jnp.sum(jnp.exp(zc), axis=-1, keepdims=True))
        o_ref[...] = zc - lse                               # log_softmax

    return kernel


# --------------------------------------------------------------------------
# Wrapper: pads to (8, 128) vreg geometry, builds lane-aligned bf16 weight
# layouts and launches the single fused pallas_call, gridded over batch tiles.
# --------------------------------------------------------------------------
@jax.jit
def network_forward(x_ncl, params):
    """x_ncl: [batch, input_dimensionality, sequence_length] (PyTorch NCL)."""
    B, Cin, L = x_ncl.shape
    n_layers = len(params["tcn"])
    K = params["tcn"][0][0].shape[0]
    C_tcn = params["tcn"][0][0].shape[2]
    H = params["lstm_fwd"][1].shape[0]
    n_classes = params["dec_w"].shape[1]
    f32 = jnp.float32
    bf16 = jnp.bfloat16

    Cp = _rup(max(C_tcn, Cin), _LANE)
    Hp = _rup(H, _LANE)
    Cdp = _rup(n_classes, _LANE)
    # Batch tile: sublane aligned; grow toward 32 when the batch allows it so
    # the serial h@Whh recurrence uses more MXU rows per step.
    TB = min(32, _rup(B, _SUBLANE))
    Bp = _rup(B, TB)

    # ---- input: NCL -> time-major [L, Bp, Cp], zero-padded (f32; cast to
    # bf16 inside the kernel) ----
    x = jnp.transpose(x_ncl, (2, 0, 1)).astype(f32)
    x = jnp.pad(x, ((0, 0), (0, Bp - B), (0, Cp - Cin)))

    # ---- conv weights: per-tap [Cp, Cp] bf16 matrices, flat-stacked ----
    cws, cbs = [], []
    for (w, b) in params["tcn"]:
        _, cin_l, cout_l = w.shape
        wp = jnp.pad(w.astype(f32), ((0, 0), (0, Cp - cin_l), (0, Cp - cout_l)))
        cws.append(wp.astype(bf16))                     # [K, Cp, Cp]
        cbs.append(jnp.pad(b.astype(f32).reshape(1, cout_l),
                           ((0, 0), (0, Cp - cout_l))))
    cw = jnp.stack(cws).reshape(n_layers * K, Cp, Cp)   # bf16
    cb = jnp.stack(cbs)                                 # [n_layers, 1, Cp] f32

    # ---- LSTM weights: gate-aware padding so each gate block is Hp wide ----
    def pad_lstm(wih, whh, bias):
        D = wih.shape[0]
        wih_p = jnp.pad(wih.astype(f32).reshape(D, 4, H),
                        ((0, Cp - D), (0, 0), (0, Hp - H))).reshape(Cp, 4 * Hp)
        whh_p = jnp.pad(whh.astype(f32).reshape(H, 4, H),
                        ((0, Hp - H), (0, 0), (0, Hp - H))).reshape(Hp, 4 * Hp)
        b_p = jnp.pad(bias.astype(f32).reshape(1, 4, H),
                      ((0, 0), (0, 0), (0, Hp - H))).reshape(1, 4 * Hp)
        return wih_p.astype(bf16), whh_p.astype(bf16), b_p

    wihf, whhf, bf = pad_lstm(*params["lstm_fwd"])
    wihb, whhb, bb = pad_lstm(*params["lstm_bwd"])

    # ---- decoder weights: split per direction (fuses out the concat);
    # class mask baked into bias pad columns (-1e30) ----
    dw = params["dec_w"].astype(f32)
    wtop = jnp.pad(dw[:H], ((0, Hp - H), (0, Cdp - n_classes))).astype(bf16)
    wbot = jnp.pad(dw[H:], ((0, Hp - H), (0, Cdp - n_classes))).astype(bf16)
    bdec = jnp.pad(params["dec_b"].astype(f32).reshape(1, n_classes),
                   ((0, 0), (0, Cdp - n_classes)), constant_values=-1e30)

    pad_l = (K - 1) // 2
    pad_r = (K - 1) - pad_l
    kernel = _make_network_kernel(n_layers, K, pad_l, pad_r)

    full2d = lambda shape: pl.BlockSpec(shape, lambda i: (0, 0))
    full3d = lambda shape: pl.BlockSpec(shape, lambda i: (0, 0, 0))

    out = pl.pallas_call(
        kernel,
        out_shape=jax.ShapeDtypeStruct((L, Bp, Cdp), f32),
        grid=(Bp // TB,),
        in_specs=[
            pl.BlockSpec((L, TB, Cp), lambda i: (0, i, 0)),  # activations
            full3d((n_layers * K, Cp, Cp)),                  # conv weights
            full3d((n_layers, 1, Cp)),                       # conv biases
            full2d((Cp, 4 * Hp)), full2d((Hp, 4 * Hp)), full2d((1, 4 * Hp)),
            full2d((Cp, 4 * Hp)), full2d((Hp, 4 * Hp)), full2d((1, 4 * Hp)),
            full2d((Hp, Cdp)), full2d((Hp, Cdp)), full2d((1, Cdp)),
        ],
        out_specs=pl.BlockSpec((L, TB, Cdp), lambda i: (0, i, 0)),
        scratch_shapes=[
            pltpu.VMEM((L + K - 1, TB, Cp), bf16),  # padded activations (reused)
            pltpu.VMEM((L, TB, 4 * Hp), f32),       # gx forward (hoisted X@Wih)
            pltpu.VMEM((L, TB, 4 * Hp), f32),       # gx backward
            pltpu.VMEM((L, TB, Hp), bf16),          # h forward, all timesteps
            pltpu.VMEM((L, TB, Hp), bf16),          # h backward, all timesteps
        ],
        compiler_params=pltpu.CompilerParams(
            dimension_semantics=("parallel",),
            vmem_limit_bytes=48 * 1024 * 1024),     # safe on v7x's 64 MiB too
    )(x, cw, cb, wihf, whhf, bf, wihb, whhb, bb, wtop, wbot, bdec)

    # time-major padded -> [B, L, n_classes]
    return jnp.transpose(out, (1, 0, 2))[:B, :, :n_classes]


# --------------------------------------------------------------------------
# Plain-JAX reference of the same assumed architecture (for correctness).
# --------------------------------------------------------------------------
def _reference_forward(x_ncl, params):
    hi = jax.lax.Precision.HIGHEST
    x = jnp.transpose(x_ncl, (0, 2, 1)).astype(jnp.float32)     # [B, L, Cin]
    B, L, _ = x.shape
    for (w, b) in params["tcn"]:
        K = w.shape[0]
        pl_ = (K - 1) // 2
        xp = jnp.pad(x, ((0, 0), (pl_, K - 1 - pl_), (0, 0)))
        acc = jnp.zeros((B, L, w.shape[2]), jnp.float32) + b
        for k in range(K):
            acc = acc + jnp.einsum("blc,cd->bld", xp[:, k:k + L, :], w[k],
                                   precision=hi)
        x = jnp.maximum(acc, 0.0)

    def run_lstm(x_tbd, wih, whh, bias):
        H = whh.shape[0]

        def step(carry, x_t):
            h, c = carry
            g = (jnp.dot(x_t, wih, precision=hi)
                 + jnp.dot(h, whh, precision=hi) + bias)
            i = jax.nn.sigmoid(g[:, :H]); f = jax.nn.sigmoid(g[:, H:2 * H])
            gg = jnp.tanh(g[:, 2 * H:3 * H]); o = jax.nn.sigmoid(g[:, 3 * H:])
            c = f * c + i * gg
            h = o * jnp.tanh(c)
            return (h, c), h

        h0 = jnp.zeros((x_tbd.shape[1], H), jnp.float32)
        _, hs = jax.lax.scan(step, (h0, h0), x_tbd)
        return hs

    x_tbd = jnp.transpose(x, (1, 0, 2))                         # [L, B, C]
    hf = run_lstm(x_tbd, *params["lstm_fwd"])
    hb = run_lstm(x_tbd[::-1], *params["lstm_bwd"])[::-1]
    h = jnp.concatenate([hf, hb], axis=-1)                      # [L, B, 2H]
    logits = (jnp.einsum("lbh,hc->lbc", h, params["dec_w"], precision=hi)
              + params["dec_b"].reshape(1, 1, -1))
    return jnp.transpose(jax.nn.log_softmax(logits, axis=-1), (1, 0, 2))


# ------------------------------- init & main --------------------------------
def init_params(key, in_channels, tcn_channels, n_tcn_layers, kernel_size,
                hidden, n_classes):
    params = {"tcn": []}
    cin = in_channels
    for _ in range(n_tcn_layers):
        key, k1, k2 = jax.random.split(key, 3)
        w = 0.1 * jax.random.normal(k1, (kernel_size, cin, tcn_channels),
                                    jnp.float32)
        b = 0.1 * jax.random.normal(k2, (1, 1, tcn_channels), jnp.float32)
        params["tcn"].append((w, b))
        cin = tcn_channels

    def lstm_weights(key, d, h):
        k1, k2, k3 = jax.random.split(key, 3)
        wih = 0.1 * jax.random.normal(k1, (d, 4 * h), jnp.float32)
        whh = 0.1 * jax.random.normal(k2, (h, 4 * h), jnp.float32)
        b = 0.1 * jax.random.normal(k3, (1, 4 * h), jnp.float32)
        return (wih, whh, b)

    key, kf, kb, kd1, kd2 = jax.random.split(key, 5)
    params["lstm_fwd"] = lstm_weights(kf, tcn_channels, hidden)
    params["lstm_bwd"] = lstm_weights(kb, tcn_channels, hidden)
    params["dec_w"] = 0.1 * jax.random.normal(kd1, (2 * hidden, n_classes),
                                              jnp.float32)
    params["dec_b"] = 0.1 * jax.random.normal(kd2, (1, 1, n_classes),
                                              jnp.float32)
    return params


if __name__ == "__main__":
    key = jax.random.PRNGKey(0)
    B, Cin, L = 2, 4, 16            # [batch, input_dimensionality, seq_len]
    tcn_channels, kernel_size, n_tcn_layers = 32, 3, 3
    hidden, n_classes = 32, 5

    key, kx, kp = jax.random.split(key, 3)
    x = jax.random.normal(kx, (B, Cin, L), jnp.float32)
    params = init_params(kp, Cin, tcn_channels, n_tcn_layers, kernel_size,
                         hidden, n_classes)

    out = network_forward(x, params)
    out = jax.block_until_ready(out)
    assert out.shape == (B, L, n_classes), out.shape
    assert bool(jnp.all(jnp.isfinite(out)))

    ref = _reference_forward(x, params)
    err = float(jnp.max(jnp.abs(out - ref)))
    assert err < 2e-2, f"max abs err vs reference: {err}"
    print("KERNEL_OK")
</pallas_src>

<mosaic_0001>
module attributes {stable_mosaic.version = 11 : i64} {
  func.func @kernel(%arg0: i32, %arg1: memref<16x8x128xf32, #tpu.memory_space<vmem>>, %arg2: memref<9x128x128xbf16, #tpu.memory_space<vmem>>, %arg3: memref<3x1x128xf32, #tpu.memory_space<vmem>>, %arg4: memref<128x512xbf16, #tpu.memory_space<vmem>>, %arg5: memref<128x512xbf16, #tpu.memory_space<vmem>>, %arg6: memref<1x512xf32, #tpu.memory_space<vmem>>, %arg7: memref<128x512xbf16, #tpu.memory_space<vmem>>, %arg8: memref<128x512xbf16, #tpu.memory_space<vmem>>, %arg9: memref<1x512xf32, #tpu.memory_space<vmem>>, %arg10: memref<128x128xbf16, #tpu.memory_space<vmem>>, %arg11: memref<128x128xbf16, #tpu.memory_space<vmem>>, %arg12: memref<1x128xf32, #tpu.memory_space<vmem>>, %arg13: memref<16x8x128xf32, #tpu.memory_space<vmem>>, %arg14: memref<18x8x128xbf16, #tpu.memory_space<vmem>>, %arg15: memref<16x8x512xf32, #tpu.memory_space<vmem>>, %arg16: memref<16x8x512xf32, #tpu.memory_space<vmem>>, %arg17: memref<16x8x128xbf16, #tpu.memory_space<vmem>>, %arg18: memref<16x8x128xbf16, #tpu.memory_space<vmem>>) attributes {dimension_semantics = [#tpu.dimension_semantics<parallel>], iteration_bounds = array<i64: 1>, scalar_prefetch = 0 : i64, scratch_operands = 5 : i64, tpu.core_type = #tpu.core_type<tc>, window_params = [{transform_indices = @transform_0, window_bounds = array<i64: 16, 8, 128>}, {pipeline_mode = #tpu.pipeline_mode<synchronous>, transform_indices = @transform_1, window_bounds = array<i64: 9, 128, 128>}, {pipeline_mode = #tpu.pipeline_mode<synchronous>, transform_indices = @transform_2, window_bounds = array<i64: 3, 1, 128>}, {pipeline_mode = #tpu.pipeline_mode<synchronous>, transform_indices = @transform_3, window_bounds = array<i64: 128, 512>}, {pipeline_mode = #tpu.pipeline_mode<synchronous>, transform_indices = @transform_4, window_bounds = array<i64: 128, 512>}, {pipeline_mode = #tpu.pipeline_mode<synchronous>, transform_indices = @transform_5, window_bounds = array<i64: 1, 512>}, {pipeline_mode = #tpu.pipeline_mode<synchronous>, transform_indices = @transform_6, window_bounds = array<i64: 128, 512>}, {pipeline_mode = #tpu.pipeline_mode<synchronous>, transform_indices = @transform_7, window_bounds = array<i64: 128, 512>}, {pipeline_mode = #tpu.pipeline_mode<synchronous>, transform_indices = @transform_8, window_bounds = array<i64: 1, 512>}, {pipeline_mode = #tpu.pipeline_mode<synchronous>, transform_indices = @transform_9, window_bounds = array<i64: 128, 128>}, {pipeline_mode = #tpu.pipeline_mode<synchronous>, transform_indices = @transform_10, window_bounds = array<i64: 128, 128>}, {pipeline_mode = #tpu.pipeline_mode<synchronous>, transform_indices = @transform_11, window_bounds = array<i64: 1, 128>}, {transform_indices = @transform_12, window_bounds = array<i64: 16, 8, 128>}]} {
    %cst = arith.constant 0.000000e+00 : bf16
    %0 = vector.broadcast %cst : bf16 to vector<1x8x128xbf16>
    %c0 = arith.constant 0 : index
    %c0_0 = arith.constant 0 : index
    %c0_1 = arith.constant 0 : index
    %1 = vector.load %arg14[%c0, %c0_0, %c0_1] : memref<18x8x128xbf16, #tpu.memory_space<vmem>>, vector<1x8x128xbf16>
    tpu.vector_store %arg14[%c0, %c0_0, %c0_1], %0 {strides = array<i32>} : memref<18x8x128xbf16, #tpu.memory_space<vmem>>, vector<1x8x128xbf16>,
    %cst_2 = arith.constant 0.000000e+00 : bf16
    %2 = vector.broadcast %cst_2 : bf16 to vector<1x8x128xbf16>
    %c17 = arith.constant 17 : index
    %c0_3 = arith.constant 0 : index
    %c0_4 = arith.constant 0 : index
    %3 = vector.load %arg14[%c17, %c0_3, %c0_4] : memref<18x8x128xbf16, #tpu.memory_space<vmem>>, vector<1x8x128xbf16>
    tpu.vector_store %arg14[%c17, %c0_3, %c0_4], %2 {strides = array<i32>} : memref<18x8x128xbf16, #tpu.memory_space<vmem>>, vector<1x8x128xbf16>,
    %c0_5 = arith.constant 0 : index
    %c0_6 = arith.constant 0 : index
    %c0_7 = arith.constant 0 : index
    %4 = vector.load %arg1[%c0_5, %c0_6, %c0_7] : memref<16x8x128xf32, #tpu.memory_space<vmem>>, vector<16x8x128xf32>
    %5 = arith.truncf %4 : vector<16x8x128xf32> to vector<16x8x128xbf16>
    %c1 = arith.constant 1 : index
    %c0_8 = arith.constant 0 : index
    %c0_9 = arith.constant 0 : index
    %6 = vector.load %arg14[%c1, %c0_8, %c0_9] : memref<18x8x128xbf16, #tpu.memory_space<vmem>>, vector<16x8x128xbf16>
    tpu.vector_store %arg14[%c1, %c0_8, %c0_9], %5 {strides = array<i32>} : memref<18x8x128xbf16, #tpu.memory_space<vmem>>, vector<16x8x128xbf16>,
    %c0_i32 = arith.constant 0 : i32
    %c3_i32 = arith.constant 3 : i32
    %7 = arith.addi %c0_i32, %c3_i32 : i32
    %c1_i32 = arith.constant 1 : i32
    scf.for %arg19 = %c0_i32 to %7 step %c1_i32  : i32 {
      %c0_57 = arith.constant 0 : index
      %c0_58 = arith.constant 0 : index
      %c0_59 = arith.constant 0 : index
      %50 = vector.load %arg14[%c0_57, %c0_58, %c0_59] : memref<18x8x128xbf16, #tpu.memory_space<vmem>>, vector<16x8x128xbf16>
      %c3_i32_60 = arith.constant 3 : i32
      %51 = arith.muli %arg19, %c3_i32_60 : i32
      %52 = arith.index_cast %51 : i32 to index
      %c0_61 = arith.constant 0 : index
      %c0_62 = arith.constant 0 : index
      %53 = vector.load %arg2[%52, %c0_61, %c0_62] : memref<9x128x128xbf16, #tpu.memory_space<vmem>>, vector<1x128x128xbf16>
      %54 = vector.shape_cast %53 : vector<1x128x128xbf16> to vector<128x128xbf16>
      %cst_63 = arith.constant dense<0.000000e+00> : vector<16x8x128xf32>
      %55 = tpu.matmul %50, %54, %cst_63 {dimension_numbers = #tpu.dot_dimension_numbers<[2], [0], [0, 1], [1], [0, 0, 0, 1, 1, 1], [], []>} : vector<16x8x128xbf16>, vector<128x128xbf16>, vector<16x8x128xf32> -> vector<16x8x128xf32>
      %c1_64 = arith.constant 1 : index
      %c0_65 = arith.constant 0 : index
      %c0_66 = arith.constant 0 : index
      %56 = vector.load %arg14[%c1_64, %c0_65, %c0_66] : memref<18x8x128xbf16, #tpu.memory_space<vmem>>, vector<16x8x128xbf16>
      %c3_i32_67 = arith.constant 3 : i32
      %57 = arith.muli %arg19, %c3_i32_67 : i32
      %c1_i32_68 = arith.constant 1 : i32
      %58 = arith.addi %57, %c1_i32_68 : i32
      %59 = arith.index_cast %58 : i32 to index
      %c0_69 = arith.constant 0 : index
      %c0_70 = arith.constant 0 : index
      %60 = vector.load %arg2[%59, %c0_69, %c0_70] : memref<9x128x128xbf16, #tpu.memory_space<vmem>>, vector<1x128x128xbf16>
      %61 = vector.shape_cast %60 : vector<1x128x128xbf16> to vector<128x128xbf16>
      %cst_71 = arith.constant dense<0.000000e+00> : vector<16x8x128xf32>
      %62 = tpu.matmul %56, %61, %cst_71 {dimension_numbers = #tpu.dot_dimension_numbers<[2], [0], [0, 1], [1], [0, 0, 0, 1, 1, 1], [], []>} : vector<16x8x128xbf16>, vector<128x128xbf16>, vector<16x8x128xf32> -> vector<16x8x128xf32>
      %63 = arith.addf %55, %62 : vector<16x8x128xf32>
      %c2 = arith.constant 2 : index
      %c0_72 = arith.constant 0 : index
      %c0_73 = arith.constant 0 : index
      %64 = vector.load %arg14[%c2, %c0_72, %c0_73] : memref<18x8x128xbf16, #tpu.memory_space<vmem>>, vector<16x8x128xbf16>
      %c3_i32_74 = arith.constant 3 : i32
      %65 = arith.muli %arg19, %c3_i32_74 : i32
      %c2_i32 = arith.constant 2 : i32
      %66 = arith.addi %65, %c2_i32 : i32
      %67 = arith.index_cast %66 : i32 to index
      %c0_75 = arith.constant 0 : index
      %c0_76 = arith.constant 0 : index
      %68 = vector.load %arg2[%67, %c0_75, %c0_76] : memref<9x128x128xbf16, #tpu.memory_space<vmem>>, vector<1x128x128xbf16>
      %69 = vector.shape_cast %68 : vector<1x128x128xbf16> to vector<128x128xbf16>
      %cst_77 = arith.constant dense<0.000000e+00> : vector<16x8x128xf32>
      %70 = tpu.matmul %64, %69, %cst_77 {dimension_numbers = #tpu.dot_dimension_numbers<[2], [0], [0, 1], [1], [0, 0, 0, 1, 1, 1], [], []>} : vector<16x8x128xbf16>, vector<128x128xbf16>, vector<16x8x128xf32> -> vector<16x8x128xf32>
      %71 = arith.addf %63, %70 : vector<16x8x128xf32>
      %72 = arith.index_cast %arg19 : i32 to index
      %c0_78 = arith.constant 0 : index
      %c0_79 = arith.constant 0 : index
      %73 = vector.load %arg3[%72, %c0_78, %c0_79] : memref<3x1x128xf32, #tpu.memory_space<vmem>>, vector<1x1x128xf32>
      %74 = vector.shape_cast %73 : vector<1x1x128xf32> to vector<1x128xf32>
      %75 = vector.shape_cast %74 : vector<1x128xf32> to vector<1x1x128xf32>
      %76 = vector.broadcast %75 : vector<1x1x128xf32> to vector<16x8x128xf32>
      %77 = arith.addf %71, %76 : vector<16x8x128xf32>
      %cst_80 = arith.constant 0.000000e+00 : f32
      %78 = vector.broadcast %cst_80 : f32 to vector<16x8x128xf32>
      %79 = arith.maximumf %77, %78 : vector<16x8x128xf32>
      %80 = arith.truncf %79 : vector<16x8x128xf32> to vector<16x8x128xbf16>
      %c1_81 = arith.constant 1 : index
      %c0_82 = arith.constant 0 : index
      %c0_83 = arith.constant 0 : index
      %81 = vector.load %arg14[%c1_81, %c0_82, %c0_83] : memref<18x8x128xbf16, #tpu.memory_space<vmem>>, vector<16x8x128xbf16>
      tpu.vector_store %arg14[%c1_81, %c0_82, %c0_83], %80 {strides = array<i32>} : memref<18x8x128xbf16, #tpu.memory_space<vmem>>, vector<16x8x128xbf16>,
    }
    %c3_i32_10 = arith.constant 3 : i32
    %c1_11 = arith.constant 1 : index
    %c0_12 = arith.constant 0 : index
    %c0_13 = arith.constant 0 : index
    %8 = vector.load %arg14[%c1_11, %c0_12, %c0_13] : memref<18x8x128xbf16, #tpu.memory_space<vmem>>, vector<16x8x128xbf16>
    %c0_14 = arith.constant 0 : index
    %c0_15 = arith.constant 0 : index
    %9 = vector.load %arg4[%c0_14, %c0_15] : memref<128x512xbf16, #tpu.memory_space<vmem>>, vector<128x512xbf16>
    %cst_16 = arith.constant dense<0.000000e+00> : vector<16x8x512xf32>
    %10 = tpu.matmul %8, %9, %cst_16 {dimension_numbers = #tpu.dot_dimension_numbers<[2], [0], [0, 1], [1], [0, 0, 0, 1, 1, 1], [], []>} : vector<16x8x128xbf16>, vector<128x512xbf16>, vector<16x8x512xf32> -> vector<16x8x512xf32>
    %c0_17 = arith.constant 0 : index
    %c0_18 = arith.constant 0 : index
    %11 = vector.load %arg6[%c0_17, %c0_18] : memref<1x512xf32, #tpu.memory_space<vmem>>, vector<1x512xf32>
    %12 = vector.shape_cast %11 : vector<1x512xf32> to vector<1x1x512xf32>
    %13 = vector.broadcast %12 : vector<1x1x512xf32> to vector<16x8x512xf32>
    %14 = arith.addf %10, %13 : vector<16x8x512xf32>
    %c0_19 = arith.constant 0 : index
    %c0_20 = arith.constant 0 : index
    %c0_21 = arith.constant 0 : index
    %15 = vector.load %arg15[%c0_19, %c0_20, %c0_21] : memref<16x8x512xf32, #tpu.memory_space<vmem>>, vector<16x8x512xf32>
    tpu.vector_store %arg15[%c0_19, %c0_20, %c0_21], %14 {strides = array<i32>} : memref<16x8x512xf32, #tpu.memory_space<vmem>>, vector<16x8x512xf32>,
    %c0_22 = arith.constant 0 : index
    %c0_23 = arith.constant 0 : index
    %16 = vector.load %arg7[%c0_22, %c0_23] : memref<128x512xbf16, #tpu.memory_space<vmem>>, vector<128x512xbf16>
    %cst_24 = arith.constant dense<0.000000e+00> : vector<16x8x512xf32>
    %17 = tpu.matmul %8, %16, %cst_24 {dimension_numbers = #tpu.dot_dimension_numbers<[2], [0], [0, 1], [1], [0, 0, 0, 1, 1, 1], [], []>} : vector<16x8x128xbf16>, vector<128x512xbf16>, vector<16x8x512xf32> -> vector<16x8x512xf32>
    %c0_25 = arith.constant 0 : index
    %c0_26 = arith.constant 0 : index
    %18 = vector.load %arg9[%c0_25, %c0_26] : memref<1x512xf32, #tpu.memory_space<vmem>>, vector<1x512xf32>
    %19 = vector.shape_cast %18 : vector<1x512xf32> to vector<1x1x512xf32>
    %20 = vector.broadcast %19 : vector<1x1x512xf32> to vector<16x8x512xf32>
    %21 = arith.addf %17, %20 : vector<16x8x512xf32>
    %c0_27 = arith.constant 0 : index
    %c0_28 = arith.constant 0 : index
    %c0_29 = arith.constant 0 : index
    %22 = vector.load %arg16[%c0_27, %c0_28, %c0_29] : memref<16x8x512xf32, #tpu.memory_space<vmem>>, vector<16x8x512xf32>
    tpu.vector_store %arg16[%c0_27, %c0_28, %c0_29], %21 {strides = array<i32>} : memref<16x8x512xf32, #tpu.memory_space<vmem>>, vector<16x8x512xf32>,
    %c0_30 = arith.constant 0 : index
    %c0_31 = arith.constant 0 : index
    %23 = vector.load %arg5[%c0_30, %c0_31] : memref<128x512xbf16, #tpu.memory_space<vmem>>, vector<128x512xbf16>
    %c0_32 = arith.constant 0 : index
    %c0_33 = arith.constant 0 : index
    %24 = vector.load %arg8[%c0_32, %c0_33] : memref<128x512xbf16, #tpu.memory_space<vmem>>, vector<128x512xbf16>
    %cst_34 = arith.constant 0.000000e+00 : f32
    %25 = vector.broadcast %cst_34 : f32 to vector<8x128xf32>
    %c0_i32_35 = arith.constant 0 : i32
    %c16_i32 = arith.constant 16 : i32
    %26 = arith.addi %c0_i32_35, %c16_i32 : i32
    %c1_i32_36 = arith.constant 1 : i32
    %27:4 = scf.for %arg19 = %c0_i32_35 to %26 step %c1_i32_36 iter_args(%arg20 = %25, %arg21 = %25, %arg22 = %25, %arg23 = %25) -> (vector<8x128xf32>, vector<8x128xf32>, vector<8x128xf32>, vector<8x128xf32>)  : i32 {
      %c15_i32 = arith.constant 15 : i32
      %50 = arith.subi %c15_i32, %arg19 : i32
      %51 = arith.index_cast %arg19 : i32 to index
      %c0_57 = arith.constant 0 : index
      %c0_58 = arith.constant 0 : index
      %52 = vector.load %arg15[%51, %c0_57, %c0_58] : memref<16x8x512xf32, #tpu.memory_space<vmem>>, vector<1x8x512xf32>
      %53 = vector.shape_cast %52 : vector<1x8x512xf32> to vector<8x512xf32>
      %54 = arith.truncf %arg20 : vector<8x128xf32> to vector<8x128xbf16>
      %cst_59 = arith.constant dense<0.000000e+00> : vector<8x512xf32>
      %55 = tpu.matmul %54, %23, %cst_59 {dimension_numbers = #tpu.dot_dimension_numbers<[1], [0], [0], [1], [0, 0, 1, 1], [], []>} : vector<8x128xbf16>, vector<128x512xbf16>, vector<8x512xf32> -> vector<8x512xf32>
      %56 = arith.addf %53, %55 : vector<8x512xf32>
      %57 = arith.index_cast %50 : i32 to index
      %c0_60 = arith.constant 0 : index
      %c0_61 = arith.constant 0 : index
      %58 = vector.load %arg16[%57, %c0_60, %c0_61] : memref<16x8x512xf32, #tpu.memory_space<vmem>>, vector<1x8x512xf32>
      %59 = vector.shape_cast %58 : vector<1x8x512xf32> to vector<8x512xf32>
      %60 = arith.truncf %arg22 : vector<8x128xf32> to vector<8x128xbf16>
      %cst_62 = arith.constant dense<0.000000e+00> : vector<8x512xf32>
      %61 = tpu.matmul %60, %24, %cst_62 {dimension_numbers = #tpu.dot_dimension_numbers<[1], [0], [0], [1], [0, 0, 1, 1], [], []>} : vector<8x128xbf16>, vector<128x512xbf16>, vector<8x512xf32> -> vector<8x512xf32>
      %62 = arith.addf %59, %61 : vector<8x512xf32>
      %63 = vector.extract_strided_slice %56 {offsets = [0, 0], sizes = [8, 128], strides = [1, 1]} : vector<8x512xf32> to vector<8x128xf32>
      %64 = arith.negf %63 : vector<8x128xf32>
      %65 = math.exp %64 : vector<8x128xf32>
      %cst_63 = arith.constant 1.000000e+00 : f32
      %66 = vector.broadcast %cst_63 : f32 to vector<8x128xf32>
      %67 = arith.addf %66, %65 : vector<8x128xf32>
      %68 = arith.divf %66, %67 : vector<8x128xf32>
      %69 = vector.extract_strided_slice %56 {offsets = [0, 128], sizes = [8, 128], strides = [1, 1]} : vector<8x512xf32> to vector<8x128xf32>
      %70 = arith.negf %69 : vector<8x128xf32>
      %71 = math.exp %70 : vector<8x128xf32>
      %cst_64 = arith.constant 1.000000e+00 : f32
      %72 = vector.broadcast %cst_64 : f32 to vector<8x128xf32>
      %73 = arith.addf %72, %71 : vector<8x128xf32>
      %74 = arith.divf %72, %73 : vector<8x128xf32>
      %75 = vector.extract_strided_slice %56 {offsets = [0, 256], sizes = [8, 128], strides = [1, 1]} : vector<8x512xf32> to vector<8x128xf32>
      %76 = math.tanh %75 : vector<8x128xf32>
      %77 = vector.extract_strided_slice %56 {offsets = [0, 384], sizes = [8, 128], strides = [1, 1]} : vector<8x512xf32> to vector<8x128xf32>
      %78 = arith.negf %77 : vector<8x128xf32>
      %79 = math.exp %78 : vector<8x128xf32>
      %cst_65 = arith.constant 1.000000e+00 : f32
      %80 = vector.broadcast %cst_65 : f32 to vector<8x128xf32>
      %81 = arith.addf %80, %79 : vector<8x128xf32>
      %82 = arith.divf %80, %81 : vector<8x128xf32>
      %83 = arith.mulf %74, %arg21 : vector<8x128xf32>
      %84 = arith.mulf %68, %76 : vector<8x128xf32>
      %85 = arith.addf %83, %84 : vector<8x128xf32>
      %86 = math.tanh %85 : vector<8x128xf32>
      %87 = arith.mulf %82, %86 : vector<8x128xf32>
      %88 = vector.extract_strided_slice %62 {offsets = [0, 0], sizes = [8, 128], strides = [1, 1]} : vector<8x512xf32> to vector<8x128xf32>
      %89 = arith.negf %88 : vector<8x128xf32>
      %90 = math.exp %89 : vector<8x128xf32>
      %cst_66 = arith.constant 1.000000e+00 : f32
      %91 = vector.broadcast %cst_66 : f32 to vector<8x128xf32>
      %92 = arith.addf %91, %90 : vector<8x128xf32>
      %93 = arith.divf %91, %92 : vector<8x128xf32>
      %94 = vector.extract_strided_slice %62 {offsets = [0, 128], sizes = [8, 128], strides = [1, 1]} : vector<8x512xf32> to vector<8x128xf32>
      %95 = arith.negf %94 : vector<8x128xf32>
      %96 = math.exp %95 : vector<8x128xf32>
      %cst_67 = arith.constant 1.000000e+00 : f32
      %97 = vector.broadcast %cst_67 : f32 to vector<8x128xf32>
      %98 = arith.addf %97, %96 : vector<8x128xf32>
      %99 = arith.divf %97, %98 : vector<8x128xf32>
      %100 = vector.extract_strided_slice %62 {offsets = [0, 256], sizes = [8, 128], strides = [1, 1]} : vector<8x512xf32> to vector<8x128xf32>
      %101 = math.tanh %100 : vector<8x128xf32>
      %102 = vector.extract_strided_slice %62 {offsets = [0, 384], sizes = [8, 128], strides = [1, 1]} : vector<8x512xf32> to vector<8x128xf32>
      %103 = arith.negf %102 : vector<8x128xf32>
      %104 = math.exp %103 : vector<8x128xf32>
      %cst_68 = arith.constant 1.000000e+00 : f32
      %105 = vector.broadcast %cst_68 : f32 to vector<8x128xf32>
      %106 = arith.addf %105, %104 : vector<8x128xf32>
      %107 = arith.divf %105, %106 : vector<8x128xf32>
      %108 = arith.mulf %99, %arg23 : vector<8x128xf32>
      %109 = arith.mulf %93, %101 : vector<8x128xf32>
      %110 = arith.addf %108, %109 : vector<8x128xf32>
      %111 = math.tanh %110 : vector<8x128xf32>
      %112 = arith.mulf %107, %111 : vector<8x128xf32>
      %113 = arith.truncf %87 : vector<8x128xf32> to vector<8x128xbf16>
      %114 = arith.index_cast %arg19 : i32 to index
      %c0_69 = arith.constant 0 : index
      %c0_70 = arith.constant 0 : index
      %115 = vector.load %arg17[%114, %c0_69, %c0_70] : memref<16x8x128xbf16, #tpu.memory_space<vmem>>, vector<1x8x128xbf16>
      %116 = vector.shape_cast %115 : vector<1x8x128xbf16> to vector<8x128xbf16>
      %117 = vector.shape_cast %113 : vector<8x128xbf16> to vector<1x8x128xbf16>
      tpu.vector_store %arg17[%114, %c0_69, %c0_70], %117 {strides = array<i32>} : memref<16x8x128xbf16, #tpu.memory_space<vmem>>, vector<1x8x128xbf16>,
      %118 = arith.truncf %112 : vector<8x128xf32> to vector<8x128xbf16>
      %119 = arith.index_cast %50 : i32 to index
      %c0_71 = arith.constant 0 : index
      %c0_72 = arith.constant 0 : index
      %120 = vector.load %arg18[%119, %c0_71, %c0_72] : memref<16x8x128xbf16, #tpu.memory_space<vmem>>, vector<1x8x128xbf16>
      %121 = vector.shape_cast %120 : vector<1x8x128xbf16> to vector<8x128xbf16>
      %122 = vector.shape_cast %118 : vector<8x128xbf16> to vector<1x8x128xbf16>
      tpu.vector_store %arg18[%119, %c0_71, %c0_72], %122 {strides = array<i32>} : memref<16x8x128xbf16, #tpu.memory_space<vmem>>, vector<1x8x128xbf16>,
      scf.yield %87, %85, %112, %110 : vector<8x128xf32>, vector<8x128xf32>, vector<8x128xf32>, vector<8x128xf32>
    }
    %c16_i32_37 = arith.constant 16 : i32
    %c0_38 = arith.constant 0 : index
    %c0_39 = arith.constant 0 : index
    %c0_40 = arith.constant 0 : index
    %28 = vector.load %arg17[%c0_38, %c0_39, %c0_40] : memref<16x8x128xbf16, #tpu.memory_space<vmem>>, vector<16x8x128xbf16>
    %c0_41 = arith.constant 0 : index
    %c0_42 = arith.constant 0 : index
    %29 = vector.load %arg10[%c0_41, %c0_42] : memref<128x128xbf16, #tpu.memory_space<vmem>>, vector<128x128xbf16>
    %cst_43 = arith.constant dense<0.000000e+00> : vector<16x8x128xf32>
    %30 = tpu.matmul %28, %29, %cst_43 {dimension_numbers = #tpu.dot_dimension_numbers<[2], [0], [0, 1], [1], [0, 0, 0, 1, 1, 1], [], []>} : vector<16x8x128xbf16>, vector<128x128xbf16>, vector<16x8x128xf32> -> vector<16x8x128xf32>
    %c0_44 = arith.constant 0 : index
    %c0_45 = arith.constant 0 : index
    %c0_46 = arith.constant 0 : index
    %31 = vector.load %arg18[%c0_44, %c0_45, %c0_46] : memref<16x8x128xbf16, #tpu.memory_space<vmem>>, vector<16x8x128xbf16>
    %c0_47 = arith.constant 0 : index
    %c0_48 = arith.constant 0 : index
    %32 = vector.load %arg11[%c0_47, %c0_48] : memref<128x128xbf16, #tpu.memory_space<vmem>>, vector<128x128xbf16>
    %cst_49 = arith.constant dense<0.000000e+00> : vector<16x8x128xf32>
    %33 = tpu.matmul %31, %32, %cst_49 {dimension_numbers = #tpu.dot_dimension_numbers<[2], [0], [0, 1], [1], [0, 0, 0, 1, 1, 1], [], []>} : vector<16x8x128xbf16>, vector<128x128xbf16>, vector<16x8x128xf32> -> vector<16x8x128xf32>
    %34 = arith.addf %30, %33 : vector<16x8x128xf32>
    %c0_50 = arith.constant 0 : index
    %c0_51 = arith.constant 0 : index
    %35 = vector.load %arg12[%c0_50, %c0_51] : memref<1x128xf32, #tpu.memory_space<vmem>>, vector<1x128xf32>
    %36 = vector.shape_cast %35 : vector<1x128xf32> to vector<1x1x128xf32>
    %37 = vector.broadcast %36 : vector<1x1x128xf32> to vector<16x8x128xf32>
    %38 = arith.addf %34, %37 : vector<16x8x128xf32>
    %cst_52 = arith.constant dense<0xFF800000> : vector<16x8xf32>
    %39 = vector.multi_reduction <maximumf>, %38, %cst_52 [2] : vector<16x8x128xf32> to vector<16x8xf32>
    %40 = vector.shape_cast %39 : vector<16x8xf32> to vector<16x8x1xf32>
    %41 = vector.broadcast %40 : vector<16x8x1xf32> to vector<16x8x128xf32>
    %42 = arith.subf %38, %41 : vector<16x8x128xf32>
    %43 = math.exp %42 : vector<16x8x128xf32>
    %cst_53 = arith.constant dense<0.000000e+00> : vector<16x8xf32>
    %44 = vector.multi_reduction <add>, %43, %cst_53 [2] : vector<16x8x128xf32> to vector<16x8xf32>
    %45 = vector.shape_cast %44 : vector<16x8xf32> to vector<16x8x1xf32>
    %46 = math.log %45 : vector<16x8x1xf32>
    %47 = vector.broadcast %46 : vector<16x8x1xf32> to vector<16x8x128xf32>
    %48 = arith.subf %42, %47 : vector<16x8x128xf32>
    %c0_54 = arith.constant 0 : index
    %c0_55 = arith.constant 0 : index
    %c0_56 = arith.constant 0 : index
    %49 = vector.load %arg13[%c0_54, %c0_55, %c0_56] : memref<16x8x128xf32, #tpu.memory_space<vmem>>, vector<16x8x128xf32>
    tpu.vector_store %arg13[%c0_54, %c0_55, %c0_56], %48 {strides = array<i32>} : memref<16x8x128xf32, #tpu.memory_space<vmem>>, vector<16x8x128xf32>,
    return
  }
  func.func @transform_0(%arg0: i32) -> (i32, i32, i32) {
    %c0_i32 = arith.constant 0 : i32
    %c0_i32_0 = arith.constant 0 : i32
    %c0_i32_1 = arith.constant 0 : i32
    return %c0_i32, %arg0, %c0_i32_0 : i32, i32, i32
  }
  func.func @transform_1(%arg0: i32) -> (i32, i32, i32) {
    %c0_i32 = arith.constant 0 : i32
    %c0_i32_0 = arith.constant 0 : i32
    %c0_i32_1 = arith.constant 0 : i32
    %c0_i32_2 = arith.constant 0 : i32
    return %c0_i32, %c0_i32_0, %c0_i32_1 : i32, i32, i32
  }
  func.func @transform_2(%arg0: i32) -> (i32, i32, i32) {
    %c0_i32 = arith.constant 0 : i32
    %c0_i32_0 = arith.constant 0 : i32
    %c0_i32_1 = arith.constant 0 : i32
    %c0_i32_2 = arith.constant 0 : i32
    return %c0_i32, %c0_i32_0, %c0_i32_1 : i32, i32, i32
  }
  func.func @transform_3(%arg0: i32) -> (i32, i32) {
    %c0_i32 = arith.constant 0 : i32
    %c0_i32_0 = arith.constant 0 : i32
    %c0_i32_1 = arith.constant 0 : i32
    return %c0_i32, %c0_i32_0 : i32, i32
  }
  func.func @transform_4(%arg0: i32) -> (i32, i32) {
    %c0_i32 = arith.constant 0 : i32
    %c0_i32_0 = arith.constant 0 : i32
    %c0_i32_1 = arith.constant 0 : i32
    return %c0_i32, %c0_i32_0 : i32, i32
  }
  func.func @transform_5(%arg0: i32) -> (i32, i32) {
    %c0_i32 = arith.constant 0 : i32
    %c0_i32_0 = arith.constant 0 : i32
    %c0_i32_1 = arith.constant 0 : i32
    return %c0_i32, %c0_i32_0 : i32, i32
  }
  func.func @transform_6(%arg0: i32) -> (i32, i32) {
    %c0_i32 = arith.constant 0 : i32
    %c0_i32_0 = arith.constant 0 : i32
    %c0_i32_1 = arith.constant 0 : i32
    return %c0_i32, %c0_i32_0 : i32, i32
  }
  func.func @transform_7(%arg0: i32) -> (i32, i32) {
    %c0_i32 = arith.constant 0 : i32
    %c0_i32_0 = arith.constant 0 : i32
    %c0_i32_1 = arith.constant 0 : i32
    return %c0_i32, %c0_i32_0 : i32, i32
  }
  func.func @transform_8(%arg0: i32) -> (i32, i32) {
    %c0_i32 = arith.constant 0 : i32
    %c0_i32_0 = arith.constant 0 : i32
    %c0_i32_1 = arith.constant 0 : i32
    return %c0_i32, %c0_i32_0 : i32, i32
  }
  func.func @transform_9(%arg0: i32) -> (i32, i32) {
    %c0_i32 = arith.constant 0 : i32
    %c0_i32_0 = arith.constant 0 : i32
    %c0_i32_1 = arith.constant 0 : i32
    return %c0_i32, %c0_i32_0 : i32, i32
  }
  func.func @transform_10(%arg0: i32) -> (i32, i32) {
    %c0_i32 = arith.constant 0 : i32
    %c0_i32_0 = arith.constant 0 : i32
    %c0_i32_1 = arith.constant 0 : i32
    return %c0_i32, %c0_i32_0 : i32, i32
  }
  func.func @transform_11(%arg0: i32) -> (i32, i32) {
    %c0_i32 = arith.constant 0 : i32
    %c0_i32_0 = arith.constant 0 : i32
    %c0_i32_1 = arith.constant 0 : i32
    return %c0_i32, %c0_i32_0 : i32, i32
  }
  func.func @transform_12(%arg0: i32) -> (i32, i32, i32) {
    %c0_i32 = arith.constant 0 : i32
    %c0_i32_0 = arith.constant 0 : i32
    %c0_i32_1 = arith.constant 0 : i32
    return %c0_i32, %arg0, %c0_i32_0 : i32, i32, i32
  }
}

</mosaic_0001>

<bundles_post_ra>
// kernel: network_forward.1
= control target key start
LH: loop header
LB: loop body
LE: loop exit
PB: predicated region body
PF: predicated region fallthrough
CT: control target
= control target key end

     0   :  { %v4419_v0 = vmov 0   ;;  %s4533_s17 = smov 0   ;;  %s6355_s1 = inlined_call_operand.vmem [shape: bf16[9,128,128], index: 1, kind: input, shape index: {}]   ;;  %s6356_s2 = inlined_call_operand.vmem [shape: f32[3,1,128], index: 2, kind: input, shape index: {}]   ;;  %s6357_s3 = inlined_call_operand.vmem [shape: bf16[128,512], index: 3, kind: input, shape index: {}]   ;;  %s6358_s4 = inlined_call_operand.vmem [shape: bf16[128,512], index: 4, kind: input, shape index: {}]   ;;  %s6359_s5 = inlined_call_operand.vmem [shape: f32[1,512], index: 5, kind: input, shape index: {}]   ;;  %s6360_s6 = inlined_call_operand.vmem [shape: bf16[128,512], index: 6, kind: input, shape index: {}]   ;;  %s6361_s7 = inlined_call_operand.vmem [shape: bf16[128,512], index: 7, kind: input, shape index: {}]   ;;  %s6362_s8 = inlined_call_operand.vmem [shape: f32[1,512], index: 8, kind: input, shape index: {}]   ;;  %s6363_s9 = inlined_call_operand.vmem [shape: bf16[128,128], index: 9, kind: input, shape index: {}]   ;;  %s6364_s10 = inlined_call_operand.vmem [shape: bf16[128,128], index: 10, kind: input, shape index: {}]   ;;  %s6365_s11 = inlined_call_operand.vmem [shape: f32[1,128], index: 11, kind: input, shape index: {}]   ;;  %s6366_s12 = inlined_call_operand.vmem [shape: f32[16,8,128], index: 12, kind: output, shape index: {}]   ;;  %s6367_s0 = inlined_call_operand.vmem [shape: f32[16,8,128], index: 0, kind: input, shape index: {}]  }
   0x1   :  { %42 = vst [vmem:[#allocation2] sm:$0xf] %v4419_v0  ;;  %v45_v1 = vld [vmem:[%s6367_s0] sm:$0xff]  ;;  %v46_v2 = vld [vmem:[%s6367_s0 + $0x8] sm:$0xff]  ;;  %v47_v3 = vld [vmem:[%s6367_s0 + $0x10] sm:$0xff] }
   0x2   :  { %44 = vst [vmem:[#allocation2 + $0x44] sm:$0xf] %v4419_v0  ;;  %v61_v4 = vpack.c.bf16 %v45_v1, %v45_v1  ;;  %v4103_v5 = vpack.c.bf16 %v47_v3, %v46_v2  ;;  %v48_v6 = vld [vmem:[%s6367_s0 + $0x18] sm:$0xff]  ;;  %v49_v7 = vld [vmem:[%s6367_s0 + $0x20] sm:$0xff]  ;;  %v50_v8 = vld [vmem:[%s6367_s0 + $0x28] sm:$0xff] }
   0x3   :  { %v4108_v9 = vpack.c.bf16 %v49_v7, %v48_v6  ;;  %v51_v10 = vld [vmem:[%s6367_s0 + $0x30] sm:$0xff]  ;;  %v52_v11 = vld [vmem:[%s6367_s0 + $0x38] sm:$0xff]  ;;  %v53_v12 = vld [vmem:[%s6367_s0 + $0x40] sm:$0xff] }
   0x4   :  { %78 = vst [vmem:[#allocation2 + $0x4] sm:$0xf] %v61_v4  ;;  %v4113_v13 = vpack.c.bf16 %v51_v10, %v50_v8  ;;  %v4118_v14 = vpack.c.bf16 %v53_v12, %v52_v11  ;;  %v54_v15 = vld [vmem:[%s6367_s0 + $0x48] sm:$0xff]  ;;  %v55_v16 = vld [vmem:[%s6367_s0 + $0x50] sm:$0xff]  ;;  %v56_v17 = vld [vmem:[%s6367_s0 + $0x58] sm:$0xff] }
   0x5   :  { %4170 = vst [vmem:[#allocation2 + $0x8] sm:$0xff] %v4103_v5   ;;  %v4123_v18 = vpack.c.bf16 %v55_v16, %v54_v15  ;;  %v57_v19 = vld [vmem:[%s6367_s0 + $0x60] sm:$0xff]  ;;  %v58_v20 = vld [vmem:[%s6367_s0 + $0x68] sm:$0xff]  ;;  %v59_v21 = vld [vmem:[%s6367_s0 + $0x70] sm:$0xff] }
   0x6   :  { %4171 = vst [vmem:[#allocation2 + $0x10] sm:$0xff] %v4108_v9   ;;  %v4128_v22 = vpack.c.bf16 %v57_v19, %v56_v17  ;;  %v60_v23 = vld [vmem:[%s6367_s0 + $0x78] sm:$0xff]  ;;  %v4133_v24 = vpack.c.bf16 %v59_v21, %v58_v20 }
   0x7   :  { %4172 = vst [vmem:[#allocation2 + $0x18] sm:$0xff] %v4113_v13   ;;  %v76_v25 = vpack.c.bf16 %v60_v23, %v60_v23 }
   0x8   :  { %4173 = vst [vmem:[#allocation2 + $0x20] sm:$0xff] %v4118_v14  }
   0x9   :  { %4174 = vst [vmem:[#allocation2 + $0x28] sm:$0xff] %v4123_v18  }
   0xa   :  { %4175 = vst [vmem:[#allocation2 + $0x30] sm:$0xff] %v4128_v22  }
   0xb   :  { %4176 = vst [vmem:[#allocation2 + $0x38] sm:$0xff] %v4133_v24  }
   0xc   :  { %93 = vst [vmem:[#allocation2 + $0x40] sm:$0xf] %v76_v25 }
   0xd LB: > { %s3889_s18 = smul.u32 192, %s4397_s17  ;;  %v3898_v50 = vld [vmem:[#allocation2 + $0x4] sm:$0xff]  ;;  %s660_s23 = scalar_lea.vmem %s6356_s2, %s4397_s17  ;;  %v3899_v54 = vld [vmem:[#allocation2 + $0xc] sm:$0xff]  ;;  %s4397_s17 = sphi %s4533_s17, %s99_s17  }
   0xe   : > { %v3881_v52 = vld [vmem:[#allocation2] sm:$0xff]  ;;  %v3914_v53 = vld [vmem:[#allocation2 + $0x8] sm:$0xff]  ;;  %v3915_v57 = vld [vmem:[#allocation2 + $0x10] sm:$0xff]  ;;  %s99_s17 = sadd.s32 1, %s4397_s17  }
   0xf   : > { %s4542_s0 = scalar_lea.vmem %s6355_s1, %s3889_s18  ;;  %v3882_v56 = vld [vmem:[#allocation2 + $0x8] sm:$0xff]  ;;  %v3900_v58 = vld [vmem:[#allocation2 + $0x14] sm:$0xff]  ;;  %v3901_v62 = vld [vmem:[#allocation2 + $0x1c] sm:$0xff]  ;;  %p96_p0 = scmp.ge.s32.totalorder %s99_s17, 3  }
  0x10   : > { %v3913_v26 = vld [vmem:[%s4542_s0 + $0x78] sm:$0xff]  ;;  %v3912_v29 = vld [vmem:[%s4542_s0 + $0x70] sm:$0xff]  ;;  %v3911_v32 = vld [vmem:[%s4542_s0 + $0x68] sm:$0xff]  ;;  %s5899_s26 = smov (%p96_p0), 0  }
  0x11   : > { %v3897_v27 = vld [vmem:[%s4542_s0 + $0x38] sm:$0xff]  ;;  %268 = vmatpush.bf16.msra.mxu0 %v3913_v26  ;;  %4184 = vmatpush.bf16.msra.mxu3 %v3913_v26  ;;  %v3896_v30 = vld [vmem:[%s4542_s0 + $0x30] sm:$0xff]  ;;  %v3895_v33 = vld [vmem:[%s4542_s0 + $0x28] sm:$0xff] }
  0x12   : > { %v4547_v28 = vld [vmem:[%s4542_s0 + $0xb8] sm:$0xff]  ;;  %413 = vmatpush.bf16.msra.mxu1 %v3897_v27  ;;  %v4553_v31 = vld [vmem:[%s4542_s0 + $0xb0] sm:$0xff]  ;;  %v4559_v34 = vld [vmem:[%s4542_s0 + $0xa8] sm:$0xff] }
  0x13   : > { %595 = vmatpush.bf16.msra.mxu2 %v4547_v28  ;;  %v3910_v35 = vld [vmem:[%s4542_s0 + $0x60] sm:$0xff]  ;;  %v3909_v38 = vld [vmem:[%s4542_s0 + $0x58] sm:$0xff]  ;;  %v3908_v41 = vld [vmem:[%s4542_s0 + $0x50] sm:$0xff] }
  0x14   : > { %v3894_v36 = vld [vmem:[%s4542_s0 + $0x20] sm:$0xff]  ;;  %v3893_v39 = vld [vmem:[%s4542_s0 + $0x18] sm:$0xff]  ;;  %v3892_v42 = vld [vmem:[%s4542_s0 + $0x10] sm:$0xff] }
  0x15   : > { %269 = vmatpush.bf16.msra.mxu0 %v3912_v29  ;;  %4185 = vmatpush.bf16.msra.mxu3 %v3912_v29  ;;  %v4565_v37 = vld [vmem:[%s4542_s0 + $0xa0] sm:$0xff]  ;;  %v4571_v40 = vld [vmem:[%s4542_s0 + $0x98] sm:$0xff]  ;;  %v4577_v43 = vld [vmem:[%s4542_s0 + $0x90] sm:$0xff] }
  0x16   : > { %414 = vmatpush.bf16.msra.mxu1 %v3896_v30  ;;  %v3907_v44 = vld [vmem:[%s4542_s0 + $0x48] sm:$0xff]  ;;  %v3906_v47 = vld [vmem:[%s4542_s0 + $0x40] sm:$0xff]  ;;  %v3904_v51 = vld [vmem:[#allocation2 + $0x34] sm:$0xff] }
  0x17   : > { %596 = vmatpush.bf16.msra.mxu2 %v4553_v31  ;;  %v3891_v45 = vld [vmem:[%s4542_s0 + $0x8] sm:$0xff]  ;;  %v3890_v48 = vld [vmem:[%s4542_s0] sm:$0xff]  ;;  %v3887_v59 = vld [vmem:[#allocation2 + $0x30] sm:$0xff] }
  0x18   : > { %v3923_v46 = vld [vmem:[%s4542_s0 + $0x88] sm:$0xff]  ;;  %v3922_v49 = vld [vmem:[%s4542_s0 + $0x80] sm:$0xff]  ;;  %v3883_v60 = vld [vmem:[#allocation2 + $0x10] sm:$0xff] }
  0x19   : > { %270 = vmatpush.bf16.msra.mxu0 %v3911_v32  ;;  %4186 = vmatpush.bf16.msra.mxu3 %v3911_v32  ;;  %v3905_v55 = vld [vmem:[#allocation2 + $0x3c] sm:$0xff]  ;;  %v3902_v2 = vld [vmem:[#allocation2 + $0x24] sm:$0xff]  ;;  %v3903_v6 = vld [vmem:[#allocation2 + $0x2c] sm:$0xff] }
  0x1a   : > { %415 = vmatpush.bf16.msra.mxu1 %v3895_v33  ;;  %v3916_v61 = vld [vmem:[#allocation2 + $0x18] sm:$0xff]  ;;  %v3917_v1 = vld [vmem:[#allocation2 + $0x20] sm:$0xff]  ;;  %v3918_v5 = vld [vmem:[#allocation2 + $0x28] sm:$0xff] }
  0x1b   : > { %597 = vmatpush.bf16.msra.mxu2 %v4559_v34  ;;  %v3888_v63 = vld [vmem:[#allocation2 + $0x38] sm:$0xff]  ;;  %v3885_v4 = vld [vmem:[#allocation2 + $0x20] sm:$0xff]  ;;  %v3886_v8 = vld [vmem:[#allocation2 + $0x28] sm:$0xff] }
  0x1c   : > { %v3884_v0 = vld [vmem:[#allocation2 + $0x18] sm:$0xff]  ;;  %v3921_v7 = vld [vmem:[#allocation2 + $0x40] sm:$0xff]  ;;  %v3919_v9 = vld [vmem:[#allocation2 + $0x30] sm:$0xff] }
  0x1d   : > { %271 = vmatpush.bf16.msra.mxu0 %v3910_v35  ;;  %4187 = vmatpush.bf16.msra.mxu3 %v3910_v35  ;;  %v3920_v3 = vld [vmem:[#allocation2 + $0x38] sm:$0xff]  ;;  %v4603_v14 = vld [vmem:[%s660_s23] ss:$0 sm:$0xff] }
  0x1e   : > { %416 = vmatpush.bf16.msra.mxu1 %v3894_v36 }
  0x1f   : > { %598 = vmatpush.bf16.msra.mxu2 %v4565_v37 }
  0x21   : > { %272 = vmatpush.bf16.msra.mxu0 %v3909_v38  ;;  %4188 = vmatpush.bf16.msra.mxu3 %v3909_v38 }
  0x22   : > { %417 = vmatpush.bf16.msra.mxu1 %v3893_v39 }
  0x23   : > { %599 = vmatpush.bf16.msra.mxu2 %v4571_v40 }
  0x25   : > { %273 = vmatpush.bf16.msra.mxu0 %v3908_v41  ;;  %4189 = vmatpush.bf16.msra.mxu3 %v3908_v41 }
  0x26   : > { %418 = vmatpush.bf16.msra.mxu1 %v3892_v42 }
  0x27   : > { %600 = vmatpush.bf16.msra.mxu2 %v4577_v43 }
  0x29   : > { %274 = vmatpush.bf16.msra.mxu0 %v3907_v44  ;;  %4190 = vmatpush.bf16.msra.mxu3 %v3907_v44 }
  0x2a   : > { %419 = vmatpush.bf16.msra.mxu1 %v3891_v45 }
  0x2b   : > { %601 = vmatpush.bf16.msra.mxu2 %v3923_v46 }
  0x2d   : > { %275 = vmatpush.bf16.msra.mxu0 %v3906_v47  ;;  %4191 = vmatpush.bf16.msra.mxu3 %v3906_v47 }
  0x2e   : > { %420 = vmatpush.bf16.msra.mxu1 %v3890_v48 }
  0x2f   : > { %602 = vmatpush.bf16.msra.mxu2 %v3922_v49 }
  0x30   : > { %276 = vmatmul.bf16.vlgmr.msra.gmra.mxu0 %v3898_v50  ;;  %306 = vmatmul.bf16.vlgmr.msra.gmra.mxu3 %v3904_v51 }
  0x31   : > { %4192 = vmatpush.bf16.msrb.mxu3 %v3897_v27  ;;  %421 = vmatmul.bf16.vlgmr.msra.gmra.mxu1 %v3881_v52 }
  0x32   : > { %603 = vmatmul.bf16.vlgmr.msra.gmra.mxu2 %v3914_v53 }
  0x35   : > { %4193 = vmatpush.bf16.msrb.mxu3 %v3896_v30 }
  0x39   : > { %4194 = vmatpush.bf16.msrb.mxu3 %v3895_v33 }
  0x3d   : > { %4195 = vmatpush.bf16.msrb.mxu3 %v3894_v36 }
  0x40   : > { %281 = vmatmul.bf16.gmra.mxu0 %v3899_v54  ;;  %311 = vmatmul.bf16.gmra.mxu3 %v3905_v55 }
  0x41   : > { %4196 = vmatpush.bf16.msrb.mxu3 %v3893_v39  ;;  %426 = vmatmul.bf16.gmra.mxu1 %v3882_v56 }
  0x42   : > { %608 = vmatmul.bf16.gmra.mxu2 %v3915_v57 }
  0x45   : > { %4197 = vmatpush.bf16.msrb.mxu3 %v3892_v42 }
  0x49   : > { %4198 = vmatpush.bf16.msrb.mxu3 %v3891_v45 }
  0x4d   : > { %4199 = vmatpush.bf16.msrb.mxu3 %v3890_v48 }
  0x50   : > { %286 = vmatmul.bf16.gmra.mxu0 %v3900_v58  ;;  %451 = vmatmul.bf16.vlgmr.msrb.gmra.mxu3 %v3887_v59 }
  0x51   : > { %4200 = vmatpush.bf16.msra.mxu3 %v4547_v28  ;;  %431 = vmatmul.bf16.gmra.mxu1 %v3883_v60 }
  0x52   : > { %613 = vmatmul.bf16.gmra.mxu2 %v3916_v61 }
  0x55   : > { %4201 = vmatpush.bf16.msra.mxu3 %v4553_v31 }
  0x59   : > { %4202 = vmatpush.bf16.msra.mxu3 %v4559_v34 }
  0x5d   : > { %4203 = vmatpush.bf16.msra.mxu3 %v4565_v37 }
  0x60   : > { %291 = vmatmul.bf16.gmra.mxu0 %v3901_v62  ;;  %456 = vmatmul.bf16.gmra.mxu3 %v3888_v63 }
  0x61   : > { %4204 = vmatpush.bf16.msra.mxu3 %v4571_v40  ;;  %436 = vmatmul.bf16.gmra.mxu1 %v3884_v0 }
  0x62   : > { %618 = vmatmul.bf16.gmra.mxu2 %v3917_v1 }
  0x65   : > { %4205 = vmatpush.bf16.msra.mxu3 %v4577_v43 }
  0x69   : > { %4206 = vmatpush.bf16.msra.mxu3 %v3923_v46 }
  0x6d   : > { %4207 = vmatpush.bf16.msra.mxu3 %v3922_v49 }
  0x70   : > { %296 = vmatmul.bf16.gmra.mxu0 %v3902_v2  ;;  %633 = vmatmul.bf16.vlgmr.msra.gmra.mxu3 %v3920_v3 }
  0x71   : > { %441 = vmatmul.bf16.gmra.mxu1 %v3885_v4 }
  0x72   : > { %623 = vmatmul.bf16.gmra.mxu2 %v3918_v5 }
  0x80   : > { %301 = vmatmul.bf16.gmra.mxu0 %v3903_v6  ;;  %638 = vmatmul.bf16.gmra.mxu3 %v3921_v7 }
  0x81   : > { %446 = vmatmul.bf16.gmra.mxu1 %v3886_v8 }
  0x82   : > { %628 = vmatmul.bf16.gmra.mxu2 %v3919_v9 }
  0xad   : > { %v277_v10 = vpop.f32.mrf.mxu0 }
  0xae   : > { %v422_v11 = vpop.f32.mrf.mxu1 }
  0xaf   : > { %v423_v12 = vadd.f32 %v422_v11, %v277_v10 }
  0xb3   : > { %v4596_v13 = vpop.f32.mrf.mxu3 }
  0xb5   : > { %v604_v15 = vpop.f32.mrf.mxu2  ;;  %v279_v17 = vpop.f32.mrf.mxu0 }
  0xb6   : > { %v644_v16 = vadd.f32 %v604_v15, %v423_v12  ;;  %v424_v18 = vpop.f32.mrf.mxu1 }
  0xb7   : > { %v425_v26 = vadd.f32 %v424_v18, %v279_v17 }
  0xb8   : > { %v665_v19 = vadd.f32 %v4603_v14, %v644_v16 }
  0xba   : > { %v681_v20 = vmax.f32 %v665_v19, 0.0 }
  0xbb   : > { %v4606_v22 = vpop.f32.mrf.mxu3 }
  0xbc   : > { %v697_v21 = vpack.c.bf16 %v681_v20, %v681_v20 }
  0xbd   : > { %v606_v23 = vpop.f32.mrf.mxu2  ;;  %v282_v24 = vpop.f32.mrf.mxu0 }
  0xbe   : > { %713 = vst [vmem:[#allocation2 + $0x4] sm:$0xf] %v697_v21  ;;  %v427_v25 = vpop.f32.mrf.mxu1  ;;  %v645_v27 = vadd.f32 %v606_v23, %v425_v26 }
  0xbf   : > { %v428_v28 = vadd.f32 %v427_v25, %v282_v24 }
  0xc0   : > { %v666_v31 = vadd.f32 %v4603_v14, %v645_v27 }
  0xc2   : > { %v682_v36 = vmax.f32 %v666_v31, 0.0 }
  0xc3   : > { %v4608_v29 = vpop.f32.mrf.mxu3 }
  0xc5   : > { %v609_v30 = vpop.f32.mrf.mxu2  ;;  %v284_v33 = vpop.f32.mrf.mxu0 }
  0xc6   : > { %v646_v32 = vadd.f32 %v609_v30, %v428_v28  ;;  %v429_v34 = vpop.f32.mrf.mxu1 }
  0xc7   : > { %v430_v43 = vadd.f32 %v429_v34, %v284_v33 }
  0xc8   : > { %v667_v35 = vadd.f32 %v4603_v14, %v646_v32 }
  0xca   : > { %v683_v37 = vmax.f32 %v667_v35, 0.0 }
  0xcb   : > { %v4612_v39 = vpop.f32.mrf.mxu3 }
  0xcc   : > { %v4138_v38 = vpack.c.bf16 %v683_v37, %v682_v36 }
  0xcd   : > { %v611_v40 = vpop.f32.mrf.mxu2  ;;  %v287_v41 = vpop.f32.mrf.mxu0 }
  0xce   : > { %4177 = vst [vmem:[#allocation2 + $0x8] sm:$0xff] %v4138_v38   ;;  %v432_v42 = vpop.f32.mrf.mxu1  ;;  %v647_v44 = vadd.f32 %v611_v40, %v430_v43 }
  0xcf   : > { %v433_v45 = vadd.f32 %v432_v42, %v287_v41 }
  0xd0   : > { %v668_v48 = vadd.f32 %v4603_v14, %v647_v44 }
  0xd2   : > { %v684_v53 = vmax.f32 %v668_v48, 0.0 }
  0xd3   : > { %v4614_v46 = vpop.f32.mrf.mxu3 }
  0xd5   : > { %v614_v47 = vpop.f32.mrf.mxu2  ;;  %v289_v50 = vpop.f32.mrf.mxu0 }
  0xd6   : > { %v648_v49 = vadd.f32 %v614_v47, %v433_v45  ;;  %v434_v51 = vpop.f32.mrf.mxu1 }
  0xd7   : > { %v435_v60 = vadd.f32 %v434_v51, %v289_v50 }
  0xd8   : > { %v669_v52 = vadd.f32 %v4603_v14, %v648_v49 }
  0xda   : > { %v685_v54 = vmax.f32 %v669_v52, 0.0 }
  0xdb   : > { %v454_v56 = vpop.f32.mrf.mxu3 }
  0xdc   : > { %v4143_v55 = vpack.c.bf16 %v685_v54, %v684_v53  ;;  %v455_v32 = vadd.f32 %v454_v56, %v4606_v22  ;;  %v453_v22 = vadd.f32 %v4614_v46, %v4596_v13 }
  0xdd   : > { %v616_v57 = vpop.f32.mrf.mxu2  ;;  %v292_v58 = vpop.f32.mrf.mxu0 }
  0xde   : > { %4178 = vst [vmem:[#allocation2 + $0x10] sm:$0xff] %v4143_v55   ;;  %v437_v59 = vpop.f32.mrf.mxu1  ;;  %v649_v61 = vadd.f32 %v616_v57, %v435_v60 }
  0xdf   : > { %v438_v62 = vadd.f32 %v437_v59, %v292_v58 }
  0xe0   : > { %v670_v1 = vadd.f32 %v4603_v14, %v649_v61 }
  0xe2   : > { %v686_v6 = vmax.f32 %v670_v1, 0.0 }
  0xe3   : > { %v457_v63 = vpop.f32.mrf.mxu3 }
  0xe4   : > { %v458_v40 = vadd.f32 %v457_v63, %v4608_v29 }
  0xe5   : > { %v619_v0 = vpop.f32.mrf.mxu2  ;;  %v294_v3 = vpop.f32.mrf.mxu0 }
  0xe6   : > { %v650_v2 = vadd.f32 %v619_v0, %v438_v62  ;;  %v439_v4 = vpop.f32.mrf.mxu1 }
  0xe7   : > { %v440_v15 = vadd.f32 %v439_v4, %v294_v3 }
  0xe8   : > { %v671_v5 = vadd.f32 %v4603_v14, %v650_v2 }
  0xea   : > { %v687_v7 = vmax.f32 %v671_v5, 0.0  ;;  %v3343_v5 = vld [vmem:[%s6357_s3 + $0xe0] sm:$0xf] (%p96_p0) }
  0xeb   : > { %v459_v9 = vpop.f32.mrf.mxu3 }
  0xec   : > { %v4148_v8 = vpack.c.bf16 %v687_v7, %v686_v6  ;;  %v460_v56 = vadd.f32 %v459_v9, %v4612_v39  ;;  %v3966_v6 = vld [vmem:[%s6357_s3 + $0xe4] sm:$0xf] (%p96_p0)  ;;  %v3351_v9 = vld [vmem:[%s6357_s3 + $0xe8] sm:$0xf] (%p96_p0) }
  0xed   : > { %v621_v10 = vpop.f32.mrf.mxu2  ;;  %v297_v11 = vpop.f32.mrf.mxu0 }
  0xee   : > { %4179 = vst [vmem:[#allocation2 + $0x18] sm:$0xff] %v4148_v8   ;;  %v442_v12 = vpop.f32.mrf.mxu1  ;;  %v651_v16 = vadd.f32 %v621_v10, %v440_v15  ;;  %v3345_v8 = vld [vmem:[%s6357_s3 + $0xf0] sm:$0xf0] (%p96_p0)  ;;  %v3969_v10 = vld [vmem:[%s6357_s3 + $0xf4] sm:$0xf0] (%p96_p0) }
  0xef   : > { %v443_v17 = vadd.f32 %v442_v12, %v297_v11  ;;  %v3348_v11 = vor.u32 (%p96_p0), %v3966_v6, %v3345_v8  ;;  %v3352_v12 = vor.u32 (%p96_p0), %v3969_v10, %v3351_v9  ;;  %v3967_v15 = vld [vmem:[%s6357_s3 + $0xec] sm:$0xf] (%p96_p0) }
  0xf0   : > { %v672_v20 = vadd.f32 %v4603_v14, %v651_v16  ;;  %v3353_v16 = vld [vmem:[%s6357_s3 + $0xf8] sm:$0xf0] (%p96_p0)  ;;  %v3947_v6 = vld [vmem:[%s6357_s3 + $0x4c] sm:$0xf] (%p96_p0) }
  0xf1   :  { %1044 = vmatpush.bf16.msra.mxu1 (%p96_p0), %v3348_v11  ;;  %1093 = vmatpush.bf16.msra.mxu2 (%p96_p0), %v3352_v12  ;;  %v3247_v11 = vld [vmem:[%s6357_s3 + $0x20] sm:$0xf] (%p96_p0)  ;;  %v3944_v12 = vld [vmem:[%s6357_s3 + $0x2c] sm:$0xf0] (%p96_p0) }
  0xf2   : > { %v688_v26 = vmax.f32 %v672_v20, 0.0  ;;  %v3962_v20 = vld [vmem:[%s6357_s3 + $0xc4] sm:$0xf] (%p96_p0) }
  0xf3   : > { %v634_v18 = vpop.f32.mrf.mxu3 }
  0xf4   : > { %v656_v29 = vadd.f32 %v634_v18, %v453_v22  ;;  %v3356_v18 = vor.u32 (%p96_p0), %v3967_v15, %v3353_v16  ;;  %v3297_v22 = vld [vmem:[%s6357_s3 + $0x90] sm:$0xf0] (%p96_p0)  ;;  %v3942_v15 = vld [vmem:[%s6357_s3 + $0x24] sm:$0xf] (%p96_p0) }
  0xf5   : > { %v624_v19 = vpop.f32.mrf.mxu2  ;;  %v299_v23 = vpop.f32.mrf.mxu0 }
  0xf6   : > { %v652_v21 = vadd.f32 %v624_v19, %v443_v17  ;;  %v444_v24 = vpop.f32.mrf.mxu1  ;;  %v677_v13 = vadd.f32 %v4603_v14, %v656_v29  ;;  %v3327_v17 = vld [vmem:[%s6357_s3 + $0xc0] sm:$0xf] (%p96_p0)  ;;  %v3964_v19 = vld [vmem:[%s6357_s3 + $0xcc] sm:$0xf0] (%p96_p0)  ;;  %1142 = vmatpush.bf16.msra.mxu3 (%p96_p0), %v3356_v18  ;;  %v3255_v18 = vld [vmem:[%s6357_s3 + $0x28] sm:$0xf] (%p96_p0) }
  0xf7   : > { %v445_v35 = vadd.f32 %v444_v24, %v299_v23  ;;  %v3328_v23 = vor.u32 (%p96_p0), %v3964_v19, %v3327_v17  ;;  %v3249_v17 = vld [vmem:[%s6357_s3 + $0x30] sm:$0xf0] (%p96_p0)  ;;  %v3945_v19 = vld [vmem:[%s6357_s3 + $0x34] sm:$0xf0] (%p96_p0) }
  0xf8   : > { %v673_v25 = vadd.f32 %v4603_v14, %v652_v21  ;;  %v693_v2 = vmax.f32 %v677_v13, 0.0  ;;  %v3329_v21 = vld [vmem:[%s6357_s3 + $0xd0] sm:$0xf0] (%p96_p0)  ;;  %v3289_v13 = vld [vmem:[%s6357_s3 + $0x78] sm:$0xf0] (%p96_p0) }
  0xf9   :  { %v3332_v24 = vor.u32 (%p96_p0), %v3962_v20, %v3329_v21  ;;  %v3943_v20 = vld [vmem:[%s6357_s3 + $0x2c] sm:$0xf] (%p96_p0)  ;;  %v3257_v21 = vld [vmem:[%s6357_s3 + $0x38] sm:$0xf0] (%p96_p0) }
  0xfa   : > { %v689_v27 = vmax.f32 %v673_v25, 0.0  ;;  %v3335_v25 = vld [vmem:[%s6357_s3 + $0xc8] sm:$0xf] (%p96_p0) }
  0xfb   : > { %v636_v30 = vpop.f32.mrf.mxu3  ;;  %1045 = vmatpush.bf16.msra.mxu1 (%p96_p0), %v3332_v24  ;;  %v3231_v24 = vld [vmem:[%s6357_s3] sm:$0xf] (%p96_p0) }
  0xfc   : > { %v4153_v28 = vpack.c.bf16 %v689_v27, %v688_v26  ;;  %v657_v36 = vadd.f32 %v636_v30, %v455_v32  ;;  %v3965_v26 = vld [vmem:[%s6357_s3 + $0xd4] sm:$0xf0] (%p96_p0)  ;;  %v3963_v27 = vld [vmem:[%s6357_s3 + $0xcc] sm:$0xf] (%p96_p0)  ;;  %v3337_v30 = vld [vmem:[%s6357_s3 + $0xd8] sm:$0xf0] (%p96_p0) }
  0xfd   : > { %v626_v31 = vpop.f32.mrf.mxu2  ;;  %v302_v33 = vpop.f32.mrf.mxu0  ;;  %v3960_v32 = vld [vmem:[%s6357_s3 + $0xac] sm:$0xf0] (%p96_p0) }
  0xfe   : > { %4180 = vst [vmem:[#allocation2 + $0x20] sm:$0xff] %v4153_v28   ;;  %v447_v34 = vpop.f32.mrf.mxu1  ;;  %v653_v37 = vadd.f32 %v626_v31, %v445_v35  ;;  %v678_v42 = vadd.f32 %v4603_v14, %v657_v36  ;;  %v3336_v28 = vor.u32 (%p96_p0), %v3965_v26, %v3335_v25  ;;  %v3311_v31 = vld [vmem:[%s6357_s3 + $0xa0] sm:$0xf] (%p96_p0)  ;;  %v3313_v35 = vld [vmem:[%s6357_s3 + $0xb0] sm:$0xf0] (%p96_p0)  ;;  %v3252_v25 = vor.u32 (%p96_p0), %v3942_v15, %v3249_v17 }
  0xff   : > { %v448_v38 = vadd.f32 %v447_v34, %v302_v33  ;;  %v3340_v33 = vor.u32 (%p96_p0), %v3963_v27, %v3337_v30  ;;  %v3958_v34 = vld [vmem:[%s6357_s3 + $0xa4] sm:$0xf] (%p96_p0)  ;;  %v3319_v36 = vld [vmem:[%s6357_s3 + $0xa8] sm:$0xf] (%p96_p0)  ;;  %v3256_v26 = vor.u32 (%p96_p0), %v3945_v19, %v3255_v18  ;;  %v3940_v27 = vld [vmem:[%s6357_s3 + $0xc] sm:$0xf0] (%p96_p0) }
 0x100   : > { %v674_v45 = vadd.f32 %v4603_v14, %v653_v37  ;;  %v694_v50 = vmax.f32 %v678_v42, 0.0  ;;  %v3312_v37 = vor.u32 (%p96_p0), %v3960_v32, %v3311_v31  ;;  %1094 = vmatpush.bf16.msra.mxu2 (%p96_p0), %v3336_v28  ;;  %v3316_v42 = vor.u32 (%p96_p0), %v3958_v34, %v3313_v35  ;;  %v3938_v28 = vld [vmem:[%s6357_s3 + $0x4] sm:$0xf] (%p96_p0)  ;;  %v3233_v30 = vld [vmem:[%s6357_s3 + $0x10] sm:$0xf0] (%p96_p0) }
 0x101   :  { %1143 = vmatpush.bf16.msra.mxu3 (%p96_p0), %v3340_v33  ;;  %v3260_v31 = vor.u32 (%p96_p0), %v3943_v20, %v3257_v21  ;;  %v3239_v32 = vld [vmem:[%s6357_s3 + $0x8] sm:$0xf] (%p96_p0)  ;;  %v3941_v33 = vld [vmem:[%s6357_s3 + $0x14] sm:$0xf0] (%p96_p0)  ;;  %v3939_v34 = vld [vmem:[%s6357_s3 + $0xc] sm:$0xf] (%p96_p0) }
 0x102   : > { %v690_v54 = vmax.f32 %v674_v45, 0.0  ;;  %v3956_v45 = vld [vmem:[%s6357_s3 + $0x8c] sm:$0xf0] (%p96_p0)  ;;  %1046 = vmatpush.bf16.msra.mxu1 (%p96_p0), %v3316_v42  ;;  %v3241_v35 = vld [vmem:[%s6357_s3 + $0x18] sm:$0xf0] (%p96_p0)  ;;  %v3236_v42 = vor.u32 (%p96_p0), %v3938_v28, %v3233_v30 }
 0x103   : > { %v639_v41 = vpop.f32.mrf.mxu3  ;;  %v3423_v17 = vld [vmem:[%s6360_s6 + $0x80] sm:$0xf] (%p96_p0)  ;;  %v3988_v18 = vld [vmem:[%s6360_s6 + $0x8c] sm:$0xf0] (%p96_p0)  ;;  %v3986_v21 = vld [vmem:[%s6360_s6 + $0x84] sm:$0xf] (%p96_p0) }
 0x104   : > { %v658_v44 = vadd.f32 %v639_v41, %v458_v40  ;;  %v3959_v40 = vld [vmem:[%s6357_s3 + $0xac] sm:$0xf] (%p96_p0)  ;;  %v3321_v41 = vld [vmem:[%s6357_s3 + $0xb8] sm:$0xf0] (%p96_p0)  ;;  %v3424_v20 = vor.u32 (%p96_p0), %v3988_v18, %v3423_v17 }
 0x105   : > { %v629_v43 = vpop.f32.mrf.mxu2  ;;  %v304_v52 = vpop.f32.mrf.mxu0  ;;  %v3983_v28 = vld [vmem:[%s6360_s6 + $0x6c] sm:$0xf] (%p96_p0) }
 0x106   : > { %v654_v47 = vadd.f32 %v629_v43, %v448_v38  ;;  %v679_v48 = vadd.f32 %v4603_v14, %v658_v44  ;;  %v449_v53 = vpop.f32.mrf.mxu1  ;;  %v3961_v38 = vld [vmem:[%s6357_s3 + $0xb4] sm:$0xf0] (%p96_p0)  ;;  %v3295_v44 = vld [vmem:[%s6357_s3 + $0x80] sm:$0xf] (%p96_p0) }
 0x107   : > { %v450_v59 = vadd.f32 %v449_v53, %v304_v52  ;;  %v3320_v43 = vor.u32 (%p96_p0), %v3961_v38, %v3319_v36  ;;  %v3305_v52 = vld [vmem:[%s6357_s3 + $0x98] sm:$0xf0] (%p96_p0)  ;;  %v3296_v53 = vor.u32 (%p96_p0), %v3956_v45, %v3295_v44  ;;  %v3479_v36 = vld [vmem:[%s6360_s6 + $0xe8] sm:$0xf] (%p96_p0)  ;;  %v3232_v38 = vor.u32 (%p96_p0), %v3940_v27, %v3231_v24  ;;  %v3985_v27 = vld [vmem:[%s6360_s6 + $0x74] sm:$0xf0] (%p96_p0) }
 0x108   : > { %v675_v49 = vadd.f32 %v4603_v14, %v654_v47  ;;  %v695_v51 = vmax.f32 %v679_v48, 0.0  ;;  %v3954_v47 = vld [vmem:[%s6357_s3 + $0x84] sm:$0xf] (%p96_p0)  ;;  %v3324_v48 = vor.u32 (%p96_p0), %v3959_v40, %v3321_v41  ;;  %v3999_v40 = vld [vmem:[%s6360_s6 + $0xec] sm:$0xf] (%p96_p0)  ;;  %v3244_v45 = vor.u32 (%p96_p0), %v3939_v34, %v3241_v35 }
 0x109   :  { %1095 = vmatpush.bf16.msra.mxu2 (%p96_p0), %v3320_v43  ;;  %v3300_v29 = vor.u32 (%p96_p0), %v3954_v47, %v3297_v22  ;;  %v3481_v41 = vld [vmem:[%s6360_s6 + $0xf8] sm:$0xf0] (%p96_p0)  ;;  %v3240_v43 = vor.u32 (%p96_p0), %v3941_v33, %v3239_v32  ;;  %v4841_v44 = vld [vmem:[#allocation2 + $0x4] sm:$0xff] (%p96_p0)  ;;  %v4000_v22 = vld [vmem:[%s6360_s6 + $0xec] sm:$0xf0] (%p96_p0) }
 0x10a   : > { %v691_v55 = vmax.f32 %v675_v49, 0.0  ;;  %v4168_v57 = vpack.c.bf16 %v695_v51, %v694_v50  ;;  %v3303_v49 = vld [vmem:[%s6357_s3 + $0x88] sm:$0xf] (%p96_p0)  ;;  %v3957_v50 = vld [vmem:[%s6357_s3 + $0x94] sm:$0xf0] (%p96_p0)  ;;  %1144 = vmatpush.bf16.msra.mxu3 (%p96_p0), %v3324_v48 }
 0x10b   : > { %v641_v60 = vpop.f32.mrf.mxu3  ;;  %v3955_v51 = vld [vmem:[%s6357_s3 + $0x8c] sm:$0xf] (%p96_p0)  ;;  %1047 = vmatpush.bf16.msra.mxu1 (%p96_p0), %v3300_v29  ;;  %v3471_v48 = vld [vmem:[%s6360_s6 + $0xe0] sm:$0xf] (%p96_p0)  ;;  %v3984_v33 = vld [vmem:[%s6360_s6 + $0x6c] sm:$0xf0] (%p96_p0) }
 0x10c   : > { %v4158_v58 = vpack.c.bf16 %v691_v55, %v690_v54  ;;  %4183 = vst [vmem:[#allocation2 + $0x38] sm:$0xff] %v4168_v57   ;;  %v659_v62 = vadd.f32 %v641_v60, %v460_v56  ;;  %v3304_v54 = vor.u32 (%p96_p0), %v3957_v50, %v3303_v49  ;;  %v3279_v55 = vld [vmem:[%s6357_s3 + $0x60] sm:$0xf] (%p96_p0)  ;;  %v3952_v56 = vld [vmem:[%s6357_s3 + $0x6c] sm:$0xf0] (%p96_p0)  ;;  %v3484_v50 = vor.u32 (%p96_p0), %v3999_v40, %v3481_v41 }
 0x10d   : > { %v631_v61 = vpop.f32.mrf.mxu2  ;;  %v3950_v57 = vld [vmem:[%s6357_s3 + $0x64] sm:$0xf] (%p96_p0)  ;;  %v3287_v60 = vld [vmem:[%s6357_s3 + $0x68] sm:$0xf] (%p96_p0)  ;;  %v3995_v29 = vld [vmem:[%s6360_s6 + $0xcc] sm:$0xf] (%p96_p0) }
 0x10e   : > { %4181 = vst [vmem:[#allocation2 + $0x28] sm:$0xff] %v4158_v58   ;;  %v655_v46 = vadd.f32 %v631_v61, %v450_v59  ;;  %v680_v63 = vadd.f32 %v4603_v14, %v659_v62  ;;  %v3308_v58 = vor.u32 (%p96_p0), %v3955_v51, %v3305_v52  ;;  %v3281_v59 = vld [vmem:[%s6357_s3 + $0x70] sm:$0xf0] (%p96_p0)  ;;  %v3953_v61 = vld [vmem:[%s6357_s3 + $0x74] sm:$0xf0] (%p96_p0)  ;;  %1096 = vmatpush.bf16.msra.mxu2 (%p96_p0), %v3304_v54  ;;  %v4967_v40 = vld [vmem:[#allocation2 + $0x1c] sm:$0xff] (%p96_p0) }
 0x10f   :  { %v3951_v62 = vld [vmem:[%s6357_s3 + $0x6c] sm:$0xf] (%p96_p0)  ;;  %v3998_v49 = vld [vmem:[%s6360_s6 + $0xe4] sm:$0xf] (%p96_p0)  ;;  %v3473_v51 = vld [vmem:[%s6360_s6 + $0xf0] sm:$0xf0] (%p96_p0) }
 0x110   : > { %v676_v0 = vadd.f32 %v4603_v14, %v655_v46  ;;  %v696_v1 = vmax.f32 %v680_v63, 0.0  ;;  %v3968_v14 = vld [vmem:[%s6357_s3 + $0xec] sm:$0xf0] (%p96_p0)  ;;  %v3280_v46 = vor.u32 (%p96_p0), %v3952_v56, %v3279_v55  ;;  %v3284_v63 = vor.u32 (%p96_p0), %v3950_v57, %v3281_v59  ;;  %1145 = vmatpush.bf16.msra.mxu3 (%p96_p0), %v3308_v58  ;;  %v3463_v52 = vld [vmem:[%s6360_s6 + $0xc8] sm:$0xf] (%p96_p0) }
 0x111   :  { %v3344_v7 = vor.u32 (%p96_p0), %v3968_v14, %v3343_v5  ;;  %v3271_v5 = vld [vmem:[%s6357_s3 + $0x48] sm:$0xf] (%p96_p0)  ;;  %v3949_v14 = vld [vmem:[%s6357_s3 + $0x54] sm:$0xf0] (%p96_p0)  ;;  %v3465_v54 = vld [vmem:[%s6360_s6 + $0xd8] sm:$0xf0] (%p96_p0)  ;;  %v3472_v55 = vor.u32 (%p96_p0), %v4000_v22, %v3471_v48  ;;  %v3476_v56 = vor.u32 (%p96_p0), %v3998_v49, %v3473_v51 }
 0x112   : > { %v692_v3 = vmax.f32 %v676_v0, 0.0  ;;  %v712_v4 = vpack.c.bf16 %v696_v1, %v696_v1  ;;  %98 = sbr.rel (!%p96_p0) target bundleno = 13 (0xd), region = 93  ;;  %v3288_v0 = vor.u32 (%p96_p0), %v3953_v61, %v3287_v60  ;;  %v3263_v1 = vld [vmem:[%s6357_s3 + $0x40] sm:$0xf] (%p96_p0)  ;;  %1048 = vmatpush.bf16.msra.mxu1 (%p96_p0), %v3284_v63  ;;  %v3272_v10 = vor.u32 (%p96_p0), %v3949_v14, %v3271_v5  ;;  %v3996_v59 = vld [vmem:[%s6360_s6 + $0xcc] sm:$0xf0] (%p96_p0) }
 0x113   :  { %995 = vmatpush.bf16.msra.mxu0 (%p96_p0), %v3344_v7  ;;  %v3273_v7 = vld [vmem:[%s6357_s3 + $0x58] sm:$0xf0] (%p96_p0)  ;;  %v3455_v58 = vld [vmem:[%s6360_s6 + $0xc0] sm:$0xf] (%p96_p0)  ;;  %v3468_v60 = vor.u32 (%p96_p0), %v3995_v29, %v3465_v54  ;;  %v3994_v61 = vld [vmem:[%s6360_s6 + $0xc4] sm:$0xf] (%p96_p0) }
 0x114   : > { %v4163_v39 = vpack.c.bf16 %v693_v2, %v692_v3  ;;  %728 = vst [vmem:[#allocation2 + $0x40] sm:$0xf] %v712_v4  ;;  %v3948_v2 = vld [vmem:[%s6357_s3 + $0x4c] sm:$0xf0] (%p96_p0)  ;;  %v3946_v3 = vld [vmem:[%s6357_s3 + $0x44] sm:$0xf] (%p96_p0)  ;;  %v3292_v4 = vor.u32 (%p96_p0), %v3951_v62, %v3289_v13  ;;  %1097 = vmatpush.bf16.msra.mxu2 (%p96_p0), %v3288_v0  ;;  %v3276_v16 = vor.u32 (%p96_p0), %v3947_v6, %v3273_v7 }
 0x115   :  { %v3264_v8 = vor.u32 (%p96_p0), %v3948_v2, %v3263_v1  ;;  %v3457_v62 = vld [vmem:[%s6360_s6 + $0xd0] sm:$0xf0] (%p96_p0)  ;;  %v3456_v13 = vor.u32 (%p96_p0), %v3996_v59, %v3455_v58  ;;  %v3993_v63 = vld [vmem:[%s6360_s6 + $0xb4] sm:$0xf0] (%p96_p0)  ;;  %v3991_v0 = vld [vmem:[%s6360_s6 + $0xac] sm:$0xf] (%p96_p0) }
 0x116   : > { %4182 = vst [vmem:[#allocation2 + $0x30] sm:$0xff] %v4163_v39   ;;  %v3265_v39 = vld [vmem:[%s6357_s3 + $0x50] sm:$0xf0] (%p96_p0)  ;;  %1146 = vmatpush.bf16.msra.mxu3 (%p96_p0), %v3292_v4  ;;  %v3460_v1 = vor.u32 (%p96_p0), %v3994_v61, %v3457_v62  ;;  %v3439_v4 = vld [vmem:[%s6360_s6 + $0xa0] sm:$0xf] (%p96_p0)  ;;  %v4997_v29 = vld [vmem:[#allocation2 + $0x24] sm:$0xff] (%p96_p0) }
 0x117   :  { %996 = vmatpush.bf16.msra.mxu0 %v3328_v23  ;;  %v3268_v9 = vor.u32 %v3946_v3, %v3265_v39  ;;  %v3248_v23 = vor.u32 %v3944_v12, %v3247_v11  ;;  %v3449_v3 = vld [vmem:[%s6360_s6 + $0xb8] sm:$0xf0]  ;;  %v3992_v39 = vld [vmem:[%s6360_s6 + $0xac] sm:$0xf0]  ;;  %v3990_v14 = vld [vmem:[%s6360_s6 + $0xa4] sm:$0xf] }
 0x118   :  { %1098 = vmatpush.bf16.msra.mxu2 %v3272_v10  ;;  %v3452_v5 = vor.u32 %v3991_v0, %v3449_v3  ;;  %v3441_v6 = vld [vmem:[%s6360_s6 + $0xb0] sm:$0xf0]  ;;  %v3440_v7 = vor.u32 %v3992_v39, %v3439_v4  ;;  %v3431_v10 = vld [vmem:[%s6360_s6 + $0x88] sm:$0xf]  ;;  %v3989_v11 = vld [vmem:[%s6360_s6 + $0x94] sm:$0xf0] }
 0x119   :  { %1049 = vmatpush.bf16.msra.mxu1 %v3268_v9  ;;  %v4907_v9 = vld [vmem:[#allocation2 + $0xc] sm:$0xff]  ;;  %v3432_v15 = vor.u32 %v3989_v11, %v3431_v10  ;;  %v3407_v32 = vld [vmem:[%s6360_s6 + $0x60] sm:$0xf]  ;;  %v3399_v41 = vld [vmem:[%s6360_s6 + $0x48] sm:$0xf] }
 0x11a   :  { %1147 = vmatpush.bf16.msra.mxu3 %v3276_v16  ;;  %v3987_v12 = vld [vmem:[%s6360_s6 + $0x8c] sm:$0xf]  ;;  %v3433_v16 = vld [vmem:[%s6360_s6 + $0x98] sm:$0xf0]  ;;  %v3408_v35 = vor.u32 %v3984_v33, %v3407_v32  ;;  %v3391_v48 = vld [vmem:[%s6360_s6 + $0x40] sm:$0xf] }
 0x11b   :  { %997 = vmatpush.bf16.msra.mxu0 %v3312_v37  ;;  %v4001_v37 = vld [vmem:[%s6360_s6 + $0xf4] sm:$0xf0]  ;;  %v3436_v19 = vor.u32 %v3987_v12, %v3433_v16  ;;  %v3980_v22 = vld [vmem:[%s6360_s6 + $0x4c] sm:$0xf0]  ;;  %v3978_v51 = vld [vmem:[%s6360_s6 + $0x44] sm:$0xf] }
 0x11c   :  { %1099 = vmatpush.bf16.msra.mxu2 %v3256_v26  ;;  %v3480_v47 = vor.u32 %v4001_v37, %v3479_v36  ;;  %v3415_v26 = vld [vmem:[%s6360_s6 + $0x68] sm:$0xf]  ;;  %v3982_v36 = vld [vmem:[%s6360_s6 + $0x64] sm:$0xf]  ;;  %v3409_v37 = vld [vmem:[%s6360_s6 + $0x70] sm:$0xf0] }
 0x11d   :  { %1050 = vmatpush.bf16.msra.mxu1 %v3252_v25  ;;  %v4937_v25 = vld [vmem:[#allocation2 + $0x14] sm:$0xff]  ;;  %v3416_v30 = vor.u32 %v3985_v27, %v3415_v26  ;;  %v3383_v54 = vld [vmem:[%s6360_s6 + $0x28] sm:$0xf]  ;;  %v3385_v58 = vld [vmem:[%s6360_s6 + $0x38] sm:$0xf0] }
 0x11e   :  { %1148 = vmatpush.bf16.msra.mxu3 %v3260_v31  ;;  %v3417_v31 = vld [vmem:[%s6360_s6 + $0x78] sm:$0xf0]  ;;  %v3375_v59 = vld [vmem:[%s6360_s6 + $0x20] sm:$0xf]  ;;  %v5027_v0 = vld [vmem:[#allocation2 + $0x2c] sm:$0xff] }
 0x11f   :  { %998 = vmatpush.bf16.msra.mxu0 %v3296_v53  ;;  %v3997_v53 = vld [vmem:[%s6360_s6 + $0xd4] sm:$0xf0]  ;;  %v3420_v34 = vor.u32 %v3983_v28, %v3417_v31  ;;  %v3971_v3 = vld [vmem:[%s6360_s6 + $0xc] sm:$0xf]  ;;  %v3369_v39 = vld [vmem:[%s6360_s6 + $0x18] sm:$0xf0] }
 0x120   :  { %1100 = vmatpush.bf16.msra.mxu2 %v3240_v43  ;;  %v3464_v57 = vor.u32 %v3997_v53, %v3463_v52  ;;  %v3979_v43 = vld [vmem:[%s6360_s6 + $0x4c] sm:$0xf]  ;;  %v3393_v52 = vld [vmem:[%s6360_s6 + $0x50] sm:$0xf0]  ;;  %v777_v16 = vld [vmem:[%s6359_s5] sm:$0xf] }
 0x121   :  { %1051 = vmatpush.bf16.msra.mxu1 %v3236_v42  ;;  %v3981_v42 = vld [vmem:[%s6360_s6 + $0x54] sm:$0xf0]  ;;  %v3396_v53 = vor.u32 %v3978_v51, %v3393_v52  ;;  %v3361_v10 = vld [vmem:[%s6360_s6 + $0x10] sm:$0xf0]  ;;  %v5072_v17 = vperm.slane %v777_v16, 0  ;;  %v5074_v18 = vperm.slane %v777_v16, 1 }
 0x122   :  { %1149 = vmatpush.bf16.msra.mxu3 %v3244_v45  ;;  %v3400_v45 = vor.u32 %v3981_v42, %v3399_v41  ;;  %v5057_v12 = vld [vmem:[#allocation2 + $0x34] sm:$0xff]  ;;  %v5084_v26 = vperm.slane %v777_v16, 3 }
 0x123   :  { %999 = vmatpush.bf16.msra.mxu0 %v3280_v46  ;;  %1101 = vmatmul.bf16.vlgmr.msra.gmra.mxu2 %v4841_v44  ;;  %v3447_v46 = vld [vmem:[%s6360_s6 + $0xa8] sm:$0xf] }
 0x124   :  { %1555 = vmatpush.bf16.msrb.mxu2 %v3480_v47  ;;  %1052 = vmatmul.bf16.vlgmr.msra.gmra.mxu1 %v4841_v44  ;;  %v3448_v2 = vor.u32 %v3993_v63, %v3447_v46  ;;  %v3401_v47 = vld [vmem:[%s6360_s6 + $0x58] sm:$0xf0]  ;;  %v3377_v46 = vld [vmem:[%s6360_s6 + $0x30] sm:$0xf0] }
 0x125   :  { %1150 = vmatmul.bf16.vlgmr.msra.gmra.mxu3 %v4841_v44  ;;  %1506 = vmatpush.bf16.msrb.mxu1 %v3476_v56  ;;  %v3404_v49 = vor.u32 %v3979_v43, %v3401_v47  ;;  %v3975_v56 = vld [vmem:[%s6360_s6 + $0x2c] sm:$0xf] }
 0x126   :  { %1604 = vmatpush.bf16.msrb.mxu3 %v3484_v50  ;;  %v3392_v50 = vor.u32 %v3980_v22, %v3391_v48  ;;  %v3388_v61 = vor.u32 %v3975_v56, %v3385_v58 }
 0x127   :  { %1000 = vmatpush.bf16.msra.mxu0 %v3264_v8  ;;  %v3444_v8 = vor.u32 %v3990_v14, %v3441_v6  ;;  %v3972_v14 = vld [vmem:[%s6360_s6 + $0xc] sm:$0xf0]  ;;  %v3372_v6 = vor.u32 %v3971_v3, %v3369_v39 }
 0x128   :  { %1556 = vmatpush.bf16.msrb.mxu2 %v3464_v57 }
 0x129   :  { %1507 = vmatpush.bf16.msrb.mxu1 %v3460_v1  ;;  %v3367_v1 = vld [vmem:[%s6360_s6 + $0x8] sm:$0xf] }
 0x12a   :  { %1605 = vmatpush.bf16.msrb.mxu3 %v3468_v60  ;;  %v3976_v60 = vld [vmem:[%s6360_s6 + $0x2c] sm:$0xf0] }
 0x12b   :  { %1001 = vmatpush.bf16.msra.mxu0 %v3248_v23  ;;  %v3425_v23 = vld [vmem:[%s6360_s6 + $0x90] sm:$0xf0]  ;;  %v3376_v62 = vor.u32 %v3976_v60, %v3375_v59 }
 0x12c   :  { %1557 = vmatpush.bf16.msrb.mxu2 %v3448_v2  ;;  %v3428_v24 = vor.u32 %v3986_v21, %v3425_v23  ;;  %v3973_v2 = vld [vmem:[%s6360_s6 + $0x14] sm:$0xf0] }
 0x12d   :  { %1508 = vmatpush.bf16.msrb.mxu1 %v3444_v8  ;;  %v3368_v4 = vor.u32 %v3973_v2, %v3367_v1  ;;  %v3970_v8 = vld [vmem:[%s6360_s6 + $0x4] sm:$0xf] }
 0x12e   :  { %1606 = vmatpush.bf16.msrb.mxu3 %v3452_v5  ;;  %v3359_v5 = vld [vmem:[%s6360_s6] sm:$0xf]  ;;  %v3364_v11 = vor.u32 %v3970_v8, %v3361_v10 }
 0x12f   :  { %1002 = vmatpush.bf16.msra.mxu0 %v3232_v38  ;;  %v3412_v38 = vor.u32 %v3982_v36, %v3409_v37 }
 0x130   :  { %1558 = vmatpush.bf16.msrb.mxu2 %v3432_v15  ;;  %v5063_v15 = vld [vmem:[#allocation2 + $0x3c] sm:$0xff] }
 0x131   :  { %1509 = vmatpush.bf16.msrb.mxu1 %v3428_v24  ;;  %v5081_v24 = vperm.slane %v777_v16, 2 }
 0x132   :  { %1003 = vmatmul.bf16.vlgmr.msra.gmra.mxu0 %v4841_v44  ;;  %1607 = vmatpush.bf16.msrb.mxu3 %v3436_v19 }
 0x133   :  { %1457 = vmatpush.bf16.msrb.mxu0 %v3472_v55  ;;  %1106 = vmatmul.bf16.gmra.mxu2 %v4907_v9  ;;  %v3977_v55 = vld [vmem:[%s6360_s6 + $0x34] sm:$0xf0] }
 0x134   :  { %1057 = vmatmul.bf16.gmra.mxu1 %v4907_v9  ;;  %1559 = vmatpush.bf16.msrb.mxu2 %v3416_v30  ;;  %v3384_v57 = vor.u32 %v3977_v55, %v3383_v54 }
 0x135   :  { %1155 = vmatmul.bf16.gmra.mxu3 %v4907_v9  ;;  %1510 = vmatpush.bf16.msrb.mxu1 %v3412_v38 }
 0x136   :  { %1608 = vmatpush.bf16.msrb.mxu3 %v3420_v34 }
 0x137   :  { %1458 = vmatpush.bf16.msrb.mxu0 %v3456_v13  ;;  %v3974_v13 = vld [vmem:[%s6360_s6 + $0x24] sm:$0xf] }
 0x138   :  { %1560 = vmatpush.bf16.msrb.mxu2 %v3400_v45  ;;  %v3380_v63 = vor.u32 %v3974_v13, %v3377_v46 }
 0x139   :  { %1511 = vmatpush.bf16.msrb.mxu1 %v3396_v53 }
 0x13a   :  { %1609 = vmatpush.bf16.msrb.mxu3 %v3404_v49 }
 0x13b   :  { %1459 = vmatpush.bf16.msrb.mxu0 %v3440_v7  ;;  %v3360_v7 = vor.u32 %v3972_v14, %v3359_v5 }
 0x13c   :  { %1561 = vmatpush.bf16.msrb.mxu2 %v3384_v57 }
 0x13d   :  { %1512 = vmatpush.bf16.msrb.mxu1 %v3380_v63 }
 0x13e   :  { %1610 = vmatpush.bf16.msrb.mxu3 %v3388_v61 }
 0x13f   :  { %1460 = vmatpush.bf16.msrb.mxu0 %v3424_v20 }
 0x140   :  { %1562 = vmatpush.bf16.msrb.mxu2 %v3368_v4 }
 0x141   :  { %1513 = vmatpush.bf16.msrb.mxu1 %v3364_v11 }
 0x142   :  { %1008 = vmatmul.bf16.gmra.mxu0 %v4907_v9  ;;  %1611 = vmatpush.bf16.msrb.mxu3 %v3372_v6 }
 0x143   :  { %1111 = vmatmul.bf16.gmra.mxu2 %v4937_v25  ;;  %1461 = vmatpush.bf16.msrb.mxu0 %v3408_v35 }
 0x144   :  { %1062 = vmatmul.bf16.gmra.mxu1 %v4937_v25 }
 0x145   :  { %1160 = vmatmul.bf16.gmra.mxu3 %v4937_v25 }
 0x147   :  { %1462 = vmatpush.bf16.msrb.mxu0 %v3392_v50 }
 0x14b   :  { %1463 = vmatpush.bf16.msrb.mxu0 %v3376_v62 }
 0x14f   :  { %1464 = vmatpush.bf16.msrb.mxu0 %v3360_v7 }
 0x152   :  { %1013 = vmatmul.bf16.gmra.mxu0 %v4937_v25 }
 0x153   :  { %1116 = vmatmul.bf16.gmra.mxu2 %v4967_v40 }
 0x154   :  { %1067 = vmatmul.bf16.gmra.mxu1 %v4967_v40 }
 0x155   :  { %1165 = vmatmul.bf16.gmra.mxu3 %v4967_v40 }
 0x162   :  { %1018 = vmatmul.bf16.gmra.mxu0 %v4967_v40 }
 0x163   :  { %1121 = vmatmul.bf16.gmra.mxu2 %v4997_v29 }
 0x164   :  { %1072 = vmatmul.bf16.gmra.mxu1 %v4997_v29 }
 0x165   :  { %1170 = vmatmul.bf16.gmra.mxu3 %v4997_v29 }
 0x172   :  { %1023 = vmatmul.bf16.gmra.mxu0 %v4997_v29 }
 0x173   :  { %1126 = vmatmul.bf16.gmra.mxu2 %v5027_v0 }
 0x174   :  { %1077 = vmatmul.bf16.gmra.mxu1 %v5027_v0 }
 0x175   :  { %1175 = vmatmul.bf16.gmra.mxu3 %v5027_v0 }
 0x182   :  { %1028 = vmatmul.bf16.gmra.mxu0 %v5027_v0 }
 0x183   :  { %1131 = vmatmul.bf16.gmra.mxu2 %v5057_v12 }
 0x184   :  { %1082 = vmatmul.bf16.gmra.mxu1 %v5057_v12 }
 0x185   :  { %1180 = vmatmul.bf16.gmra.mxu3 %v5057_v12 }
 0x192   :  { %1033 = vmatmul.bf16.gmra.mxu0 %v5057_v12 }
 0x193   :  { %1136 = vmatmul.bf16.gmra.mxu2 %v5063_v15 }
 0x194   :  { %1087 = vmatmul.bf16.gmra.mxu1 %v5063_v15 }
 0x195   :  { %1185 = vmatmul.bf16.gmra.mxu3 %v5063_v15 }
 0x1a1   :  { %v1053_v21 = vpop.f32.mrf.mxu1 }
 0x1a2   :  { %1038 = vmatmul.bf16.gmra.mxu0 %v5063_v15  ;;  %v1054_v23 = vadd.f32 %v1053_v21, %v5074_v18 }
 0x1a3   :  { %1563 = vmatmul.bf16.vlgmr.msrb.gmra.mxu2 %v4841_v44 }
 0x1a4   :  { %1192 = vst [vmem:[#allocation3 + $0x8] sm:$0xff] %v1054_v23  ;;  %1514 = vmatmul.bf16.vlgmr.msrb.gmra.mxu1 %v4841_v44 }
 0x1a5   :  { %1612 = vmatmul.bf16.vlgmr.msrb.gmra.mxu3 %v4841_v44 }
 0x1a6   :  { %v1102_v27 = vpop.f32.mrf.mxu2 }
 0x1a7   :  { %v1103_v28 = vadd.f32 %v1102_v27, %v5081_v24 }
 0x1a8   :  { %v1151_v30 = vpop.f32.mrf.mxu3 }
 0x1a9   :  { %v1152_v32 = vadd.f32 %v1151_v30, %v5084_v26  ;;  %v1055_v34 = vpop.f32.mrf.mxu1  ;;  %1193 = vst [vmem:[#allocation3 + $0x10] sm:$0xff] %v1103_v28 }
 0x1aa   :  { %v1056_v35 = vadd.f32 %v1055_v34, %v5074_v18 }
 0x1ab   :  { %1194 = vst [vmem:[#allocation3 + $0x18] sm:$0xff] %v1152_v32 }
 0x1ac   :  { %1196 = vst [vmem:[#allocation3 + $0x28] sm:$0xff] %v1056_v35 }
 0x1ae   :  { %v1104_v36 = vpop.f32.mrf.mxu2 }
 0x1af   :  { %v1004_v19 = vpop.f32.mrf.mxu0 }
 0x1b0   :  { %v1005_v20 = vadd.f32 %v1004_v19, %v5072_v17  ;;  %v1153_v37 = vpop.f32.mrf.mxu3 }
 0x1b1   :  { %v1154_v41 = vadd.f32 %v1153_v37, %v5084_v26  ;;  %v1058_v43 = vpop.f32.mrf.mxu1 }
 0x1b2   :  { %1191 = vst [vmem:[#allocation3] sm:$0xff] %v1005_v20  ;;  %1465 = vmatmul.bf16.vlgmr.msrb.gmra.mxu0 %v4841_v44  ;;  %v1105_v44 = vadd.f32 %v1104_v36, %v5081_v24  ;;  %v1059_v45 = vadd.f32 %v1058_v43, %v5074_v18 }
 0x1b3   :  { %1198 = vst [vmem:[#allocation3 + $0x38] sm:$0xff] %v1154_v41  ;;  %1568 = vmatmul.bf16.gmra.mxu2 %v4907_v9 }
 0x1b4   :  { %1197 = vst [vmem:[#allocation3 + $0x30] sm:$0xff] %v1105_v44  ;;  %1519 = vmatmul.bf16.gmra.mxu1 %v4907_v9 }
 0x1b5   :  { %1200 = vst [vmem:[#allocation3 + $0x48] sm:$0xff] %v1059_v45  ;;  %1617 = vmatmul.bf16.gmra.mxu3 %v4907_v9 }
 0x1b6   :  { %v1107_v47 = vpop.f32.mrf.mxu2 }
 0x1b7   :  { %v1006_v31 = vpop.f32.mrf.mxu0  ;;  %v1108_v48 = vadd.f32 %v1107_v47, %v5081_v24 }
 0x1b8   :  { %v1007_v33 = vadd.f32 %v1006_v31, %v5072_v17  ;;  %v1156_v22 = vpop.f32.mrf.mxu3 }
 0x1b9   :  { %v1157_v50 = vadd.f32 %v1156_v22, %v5084_v26  ;;  %v1060_v52 = vpop.f32.mrf.mxu1  ;;  %1201 = vst [vmem:[#allocation3 + $0x50] sm:$0xff] %v1108_v48 }
 0x1ba   :  { %1195 = vst [vmem:[#allocation3 + $0x20] sm:$0xff] %v1007_v33  ;;  %v1061_v53 = vadd.f32 %v1060_v52, %v5074_v18 }
 0x1bb   :  { %1202 = vst [vmem:[#allocation3 + $0x58] sm:$0xff] %v1157_v50 }
 0x1bc   :  { %1204 = vst [vmem:[#allocation3 + $0x68] sm:$0xff] %v1061_v53 }
 0x1be   :  { %v1109_v54 = vpop.f32.mrf.mxu2 }
 0x1bf   :  { %v1009_v38 = vpop.f32.mrf.mxu0  ;;  %v1110_v55 = vadd.f32 %v1109_v54, %v5081_v24 }
 0x1c0   :  { %v1010_v42 = vadd.f32 %v1009_v38, %v5072_v17 }
 0x1c1   :  { %v1063_v59 = vpop.f32.mrf.mxu1  ;;  %1205 = vst [vmem:[#allocation3 + $0x70] sm:$0xff] %v1110_v55 }
 0x1c2   :  { %1470 = vmatmul.bf16.gmra.mxu0 %v4907_v9  ;;  %1199 = vst [vmem:[#allocation3 + $0x40] sm:$0xff] %v1010_v42  ;;  %v1158_v9 = vpop.f32.mrf.mxu3  ;;  %v1064_v60 = vadd.f32 %v1063_v59, %v5074_v18 }
 0x1c3   :  { %v1159_v57 = vadd.f32 %v1158_v9, %v5084_v26  ;;  %1573 = vmatmul.bf16.gmra.mxu2 %v4937_v25 }
 0x1c4   :  { %1524 = vmatmul.bf16.gmra.mxu1 %v4937_v25  ;;  %1208 = vst [vmem:[#allocation3 + $0x88] sm:$0xff] %v1064_v60 }
 0x1c5   :  { %1206 = vst [vmem:[#allocation3 + $0x78] sm:$0xff] %v1159_v57  ;;  %1622 = vmatmul.bf16.gmra.mxu3 %v4937_v25 }
 0x1c6   :  { %v1112_v61 = vpop.f32.mrf.mxu2 }
 0x1c7   :  { %v1011_v49 = vpop.f32.mrf.mxu0  ;;  %v1113_v62 = vadd.f32 %v1112_v61, %v5081_v24 }
 0x1c8   :  { %v1012_v51 = vadd.f32 %v1011_v49, %v5072_v17 }
 0x1c9   :  { %v1065_v2 = vpop.f32.mrf.mxu1  ;;  %1209 = vst [vmem:[#allocation3 + $0x90] sm:$0xff] %v1113_v62 }
 0x1ca   :  { %1203 = vst [vmem:[#allocation3 + $0x60] sm:$0xff] %v1012_v51  ;;  %v1161_v13 = vpop.f32.mrf.mxu3  ;;  %v1066_v3 = vadd.f32 %v1065_v2, %v5074_v18 }
 0x1cb   :  { %v1162_v63 = vadd.f32 %v1161_v13, %v5084_v26 }
 0x1cc   :  { %1212 = vst [vmem:[#allocation3 + $0xa8] sm:$0xff] %v1066_v3 }
 0x1cd   :  { %1210 = vst [vmem:[#allocation3 + $0x98] sm:$0xff] %v1162_v63 }
 0x1ce   :  { %v1114_v4 = vpop.f32.mrf.mxu2 }
 0x1cf   :  { %v1014_v56 = vpop.f32.mrf.mxu0  ;;  %v1115_v39 = vadd.f32 %v1114_v4, %v5081_v24 }
 0x1d0   :  { %v1015_v58 = vadd.f32 %v1014_v56, %v5072_v17 }
 0x1d1   :  { %v1068_v7 = vpop.f32.mrf.mxu1  ;;  %1213 = vst [vmem:[#allocation3 + $0xb0] sm:$0xff] %v1115_v39 }
 0x1d2   :  { %1475 = vmatmul.bf16.gmra.mxu0 %v4937_v25  ;;  %1207 = vst [vmem:[#allocation3 + $0x80] sm:$0xff] %v1015_v58  ;;  %v1163_v25 = vpop.f32.mrf.mxu3  ;;  %v1069_v8 = vadd.f32 %v1068_v7, %v5074_v18 }
 0x1d3   :  { %v1164_v14 = vadd.f32 %v1163_v25, %v5084_v26  ;;  %1578 = vmatmul.bf16.gmra.mxu2 %v4967_v40 }
 0x1d4   :  { %1529 = vmatmul.bf16.gmra.mxu1 %v4967_v40  ;;  %1216 = vst [vmem:[#allocation3 + $0xc8] sm:$0xff] %v1069_v8 }
 0x1d5   :  { %1214 = vst [vmem:[#allocation3 + $0xb8] sm:$0xff] %v1164_v14  ;;  %1627 = vmatmul.bf16.gmra.mxu3 %v4967_v40 }
 0x1d6   :  { %v1117_v10 = vpop.f32.mrf.mxu2 }
 0x1d7   :  { %v1016_v46 = vpop.f32.mrf.mxu0  ;;  %v1118_v11 = vadd.f32 %v1117_v10, %v5081_v24 }
 0x1d8   :  { %v1017_v1 = vadd.f32 %v1016_v46, %v5072_v17 }
 0x1d9   :  { %v1070_v23 = vpop.f32.mrf.mxu1  ;;  %1217 = vst [vmem:[#allocation3 + $0xd0] sm:$0xff] %v1118_v11 }
 0x1da   :  { %1211 = vst [vmem:[#allocation3 + $0xa0] sm:$0xff] %v1017_v1  ;;  %v1166_v16 = vpop.f32.mrf.mxu3  ;;  %v1071_v27 = vadd.f32 %v1070_v23, %v5074_v18 }
 0x1db   :  { %v1167_v20 = vadd.f32 %v1166_v16, %v5084_v26 }
 0x1dc   :  { %1220 = vst [vmem:[#allocation3 + $0xe8] sm:$0xff] %v1071_v27 }
 0x1dd   :  { %1218 = vst [vmem:[#allocation3 + $0xd8] sm:$0xff] %v1167_v20 }
 0x1de   :  { %v1119_v28 = vpop.f32.mrf.mxu2 }
 0x1df   :  { %v1019_v5 = vpop.f32.mrf.mxu0  ;;  %v1120_v30 = vadd.f32 %v1119_v28, %v5081_v24 }
 0x1e0   :  { %v1020_v6 = vadd.f32 %v1019_v5, %v5072_v17 }
 0x1e1   :  { %v1073_v34 = vpop.f32.mrf.mxu1  ;;  %1221 = vst [vmem:[#allocation3 + $0xf0] sm:$0xff] %v1120_v30 }
 0x1e2   :  { %1480 = vmatmul.bf16.gmra.mxu0 %v4967_v40  ;;  %1215 = vst [vmem:[#allocation3 + $0xc0] sm:$0xff] %v1020_v6  ;;  %v1168_v40 = vpop.f32.mrf.mxu3  ;;  %v1074_v35 = vadd.f32 %v1073_v34, %v5074_v18 }
 0x1e3   :  { %v1169_v32 = vadd.f32 %v1168_v40, %v5084_v26  ;;  %1583 = vmatmul.bf16.gmra.mxu2 %v4997_v29 }
 0x1e4   :  { %1534 = vmatmul.bf16.gmra.mxu1 %v4997_v29  ;;  %1224 = vst [vmem:[#allocation3 + $0x108] sm:$0xff] %v1074_v35 }
 0x1e5   :  { %1222 = vst [vmem:[#allocation3 + $0xf8] sm:$0xff] %v1169_v32  ;;  %1632 = vmatmul.bf16.gmra.mxu3 %v4997_v29 }
 0x1e6   :  { %v1122_v36 = vpop.f32.mrf.mxu2 }
 0x1e7   :  { %v1021_v19 = vpop.f32.mrf.mxu0  ;;  %v1123_v44 = vadd.f32 %v1122_v36, %v5081_v24 }
 0x1e8   :  { %v1022_v21 = vadd.f32 %v1021_v19, %v5072_v17 }
 0x1e9   :  { %v1075_v43 = vpop.f32.mrf.mxu1  ;;  %1225 = vst [vmem:[#allocation3 + $0x110] sm:$0xff] %v1123_v44 }
 0x1ea   :  { %1219 = vst [vmem:[#allocation3 + $0xe0] sm:$0xff] %v1022_v21  ;;  %v1171_v37 = vpop.f32.mrf.mxu3  ;;  %v1076_v45 = vadd.f32 %v1075_v43, %v5074_v18 }
 0x1eb   :  { %v1172_v41 = vadd.f32 %v1171_v37, %v5084_v26 }
 0x1ec   :  { %1228 = vst [vmem:[#allocation3 + $0x128] sm:$0xff] %v1076_v45 }
 0x1ed   :  { %1226 = vst [vmem:[#allocation3 + $0x118] sm:$0xff] %v1172_v41 }
 0x1ee   :  { %v1124_v47 = vpop.f32.mrf.mxu2 }
 0x1ef   :  { %v1024_v31 = vpop.f32.mrf.mxu0  ;;  %v1125_v48 = vadd.f32 %v1124_v47, %v5081_v24 }
 0x1f0   :  { %v1025_v33 = vadd.f32 %v1024_v31, %v5072_v17 }
 0x1f1   :  { %v1078_v51 = vpop.f32.mrf.mxu1  ;;  %1229 = vst [vmem:[#allocation3 + $0x130] sm:$0xff] %v1125_v48 }
 0x1f2   :  { %1485 = vmatmul.bf16.gmra.mxu0 %v4997_v29  ;;  %1223 = vst [vmem:[#allocation3 + $0x100] sm:$0xff] %v1025_v33  ;;  %v1173_v29 = vpop.f32.mrf.mxu3  ;;  %v1079_v52 = vadd.f32 %v1078_v51, %v5074_v18  ;;  %v1287_v33 = vld [vmem:[%s6362_s8] sm:$0xf] }
 0x1f3   :  { %v1174_v49 = vadd.f32 %v1173_v29, %v5084_v26  ;;  %1588 = vmatmul.bf16.gmra.mxu2 %v5027_v0  ;;  %v5179_v34 = vperm.slane %v1287_v33, 1  ;;  %v5187_v43 = vperm.slane %v1287_v33, 3 }
 0x1f4   :  { %1539 = vmatmul.bf16.gmra.mxu1 %v5027_v0  ;;  %1232 = vst [vmem:[#allocation3 + $0x148] sm:$0xff] %v1079_v52 }
 0x1f5   :  { %1230 = vst [vmem:[#allocation3 + $0x138] sm:$0xff] %v1174_v49  ;;  %1637 = vmatmul.bf16.gmra.mxu3 %v5027_v0 }
 0x1f6   :  { %v1127_v53 = vpop.f32.mrf.mxu2 }
 0x1f7   :  { %v1026_v38 = vpop.f32.mrf.mxu0  ;;  %v1128_v54 = vadd.f32 %v1127_v53, %v5081_v24 }
 0x1f8   :  { %v1027_v42 = vadd.f32 %v1026_v38, %v5072_v17 }
 0x1f9   :  { %v1080_v58 = vpop.f32.mrf.mxu1  ;;  %1233 = vst [vmem:[#allocation3 + $0x150] sm:$0xff] %v1128_v54 }
 0x1fa   :  { %1227 = vst [vmem:[#allocation3 + $0x120] sm:$0xff] %v1027_v42  ;;  %v1176_v55 = vpop.f32.mrf.mxu3  ;;  %v1081_v59 = vadd.f32 %v1080_v58, %v5074_v18  ;;  %v5185_v42 = vperm.slane %v1287_v33, 2 }
 0x1fb   :  { %v1177_v56 = vadd.f32 %v1176_v55, %v5084_v26 }
 0x1fc   :  { %1236 = vst [vmem:[#allocation3 + $0x168] sm:$0xff] %v1081_v59 }
 0x1fd   :  { %1234 = vst [vmem:[#allocation3 + $0x158] sm:$0xff] %v1177_v56 }
 0x1fe   :  { %v1129_v60 = vpop.f32.mrf.mxu2 }
 0x1ff   :  { %v1029_v22 = vpop.f32.mrf.mxu0  ;;  %v1130_v61 = vadd.f32 %v1129_v60, %v5081_v24 }
 0x200   :  { %v1030_v50 = vadd.f32 %v1029_v22, %v5072_v17 }
 0x201   :  { %v1083_v63 = vpop.f32.mrf.mxu1  ;;  %1237 = vst [vmem:[#allocation3 + $0x170] sm:$0xff] %v1130_v61 }
 0x202   :  { %1490 = vmatmul.bf16.gmra.mxu0 %v5027_v0  ;;  %1231 = vst [vmem:[#allocation3 + $0x140] sm:$0xff] %v1030_v50  ;;  %v1178_v0 = vpop.f32.mrf.mxu3  ;;  %v1084_v1 = vadd.f32 %v1083_v63, %v5074_v18 }
 0x203   :  { %v1179_v13 = vadd.f32 %v1178_v0, %v5084_v26  ;;  %1593 = vmatmul.bf16.gmra.mxu2 %v5057_v12 }
 0x204   :  { %1544 = vmatmul.bf16.gmra.mxu1 %v5057_v12  ;;  %1240 = vst [vmem:[#allocation3 + $0x188] sm:$0xff] %v1084_v1 }
 0x205   :  { %1238 = vst [vmem:[#allocation3 + $0x178] sm:$0xff] %v1179_v13  ;;  %1642 = vmatmul.bf16.gmra.mxu3 %v5057_v12 }
 0x206   :  { %v1132_v2 = vpop.f32.mrf.mxu2 }
 0x207   :  { %v1031_v9 = vpop.f32.mrf.mxu0  ;;  %v1133_v3 = vadd.f32 %v1132_v2, %v5081_v24 }
 0x208   :  { %v1032_v57 = vadd.f32 %v1031_v9, %v5072_v17 }
 0x209   :  { %v1085_v14 = vpop.f32.mrf.mxu1  ;;  %1241 = vst [vmem:[#allocation3 + $0x190] sm:$0xff] %v1133_v3 }
 0x20a   :  { %1235 = vst [vmem:[#allocation3 + $0x160] sm:$0xff] %v1032_v57  ;;  %v1181_v4 = vpop.f32.mrf.mxu3  ;;  %v1086_v6 = vadd.f32 %v1085_v14, %v5074_v18 }
 0x20b   :  { %v1182_v25 = vadd.f32 %v1181_v4, %v5084_v26 }
 0x20c   :  { %1244 = vst [vmem:[#allocation3 + $0x1a8] sm:$0xff] %v1086_v6 }
 0x20d   :  { %1242 = vst [vmem:[#allocation3 + $0x198] sm:$0xff] %v1182_v25 }
 0x20e   :  { %v1134_v7 = vpop.f32.mrf.mxu2 }
 0x20f   :  { %v1034_v62 = vpop.f32.mrf.mxu0  ;;  %v1135_v8 = vadd.f32 %v1134_v7, %v5081_v24 }
 0x210   :  { %v1035_v46 = vadd.f32 %v1034_v62, %v5072_v17 }
 0x211   :  { %v1088_v19 = vpop.f32.mrf.mxu1  ;;  %1245 = vst [vmem:[#allocation3 + $0x1b0] sm:$0xff] %v1135_v8 }
 0x212   :  { %1495 = vmatmul.bf16.gmra.mxu0 %v5057_v12  ;;  %1239 = vst [vmem:[#allocation3 + $0x180] sm:$0xff] %v1035_v46  ;;  %v1183_v12 = vpop.f32.mrf.mxu3  ;;  %v1089_v20 = vadd.f32 %v1088_v19, %v5074_v18 }
 0x213   :  { %v1184_v11 = vadd.f32 %v1183_v12, %v5084_v26  ;;  %1598 = vmatmul.bf16.gmra.mxu2 %v5063_v15 }
 0x214   :  { %1549 = vmatmul.bf16.gmra.mxu1 %v5063_v15  ;;  %1248 = vst [vmem:[#allocation3 + $0x1c8] sm:$0xff] %v1089_v20 }
 0x215   :  { %1246 = vst [vmem:[#allocation3 + $0x1b8] sm:$0xff] %v1184_v11  ;;  %1647 = vmatmul.bf16.gmra.mxu3 %v5063_v15 }
 0x216   :  { %v1137_v21 = vpop.f32.mrf.mxu2 }
 0x217   :  { %v1036_v39 = vpop.f32.mrf.mxu0  ;;  %v1138_v23 = vadd.f32 %v1137_v21, %v5081_v24 }
 0x218   :  { %v1037_v5 = vadd.f32 %v1036_v39, %v5072_v17 }
 0x219   :  { %v1090_v31 = vpop.f32.mrf.mxu1  ;;  %1249 = vst [vmem:[#allocation3 + $0x1d0] sm:$0xff] %v1138_v23 }
 0x21a   :  { %1243 = vst [vmem:[#allocation3 + $0x1a0] sm:$0xff] %v1037_v5  ;;  %v1186_v27 = vpop.f32.mrf.mxu3  ;;  %v1091_v32 = vadd.f32 %v1090_v31, %v5074_v18 }
 0x21b   :  { %v1187_v30 = vadd.f32 %v1186_v27, %v5084_v26 }
 0x21c   :  { %1252 = vst [vmem:[#allocation3 + $0x1e8] sm:$0xff] %v1091_v32 }
 0x21d   :  { %1250 = vst [vmem:[#allocation3 + $0x1d8] sm:$0xff] %v1187_v30 }
 0x21e   :  { %v1139_v35 = vpop.f32.mrf.mxu2 }
 0x21f   :  { %v1039_v10 = vpop.f32.mrf.mxu0  ;;  %v1140_v36 = vadd.f32 %v1139_v35, %v5081_v24 }
 0x220   :  { %v1040_v16 = vadd.f32 %v1039_v10, %v5072_v17 }
 0x221   :  { %v1515_v38 = vpop.f32.mrf.mxu1  ;;  %1253 = vst [vmem:[#allocation3 + $0x1f0] sm:$0xff] %v1140_v36 }
 0x222   :  { %1500 = vmatmul.bf16.gmra.mxu0 %v5063_v15  ;;  %1247 = vst [vmem:[#allocation3 + $0x1c0] sm:$0xff] %v1040_v16  ;;  %v5177_v15 = vperm.slane %v1287_v33, 0  ;;  %v1188_v44 = vpop.f32.mrf.mxu3  ;;  %v1516_v41 = vadd.f32 %v1515_v38, %v5179_v34 }
 0x223   :  { %v1189_v37 = vadd.f32 %v1188_v44, %v5084_v26 }
 0x224   :  { %1654 = vst [vmem:[#allocation4 + $0x8] sm:$0xff] %v1516_v41 }
 0x225   :  { %1254 = vst [vmem:[#allocation3 + $0x1f8] sm:$0xff] %v1189_v37 }
 0x226   :  { %v1564_v45 = vpop.f32.mrf.mxu2 }
 0x227   :  { %v1041_v28 = vpop.f32.mrf.mxu0  ;;  %v1565_v24 = vadd.f32 %v1564_v45, %v5185_v42 }
 0x228   :  { %v1042_v40 = vadd.f32 %v1041_v28, %v5072_v17 }
 0x229   :  { %v1517_v22 = vpop.f32.mrf.mxu1  ;;  %1655 = vst [vmem:[#allocation4 + $0x10] sm:$0xff] %v1565_v24 }
 0x22a   :  { %1251 = vst [vmem:[#allocation3 + $0x1e0] sm:$0xff] %v1042_v40  ;;  %v1613_v47 = vpop.f32.mrf.mxu3  ;;  %v1518_v49 = vadd.f32 %v1517_v22, %v5179_v34 }
 0x22b   :  { %v1614_v26 = vadd.f32 %v1613_v47, %v5187_v43 }
 0x22c   :  { %1658 = vst [vmem:[#allocation4 + $0x28] sm:$0xff] %v1518_v49 }
 0x22d   :  { %1656 = vst [vmem:[#allocation4 + $0x18] sm:$0xff] %v1614_v26 }
 0x22e   :  { %v1566_v50 = vpop.f32.mrf.mxu2 }
 0x22f   :  { %v1466_v17 = vpop.f32.mrf.mxu0  ;;  %v1567_v51 = vadd.f32 %v1566_v50, %v5185_v42 }
 0x230   :  { %v1467_v18 = vadd.f32 %v1466_v17, %v5177_v15 }
 0x231   :  { %v1520_v9 = vpop.f32.mrf.mxu1  ;;  %1659 = vst [vmem:[#allocation4 + $0x30] sm:$0xff] %v1567_v51 }
 0x232   :  { %1653 = vst [vmem:[#allocation4] sm:$0xff] %v1467_v18  ;;  %v1615_v52 = vpop.f32.mrf.mxu3  ;;  %v1521_v56 = vadd.f32 %v1520_v9, %v5179_v34 }
 0x233   :  { %v1616_v54 = vadd.f32 %v1615_v52, %v5187_v43 }
 0x234   :  { %1662 = vst [vmem:[#allocation4 + $0x48] sm:$0xff] %v1521_v56 }
 0x235   :  { %1660 = vst [vmem:[#allocation4 + $0x38] sm:$0xff] %v1616_v54 }
 0x236   :  { %v1569_v57 = vpop.f32.mrf.mxu2 }
 0x237   :  { %v1468_v48 = vpop.f32.mrf.mxu0  ;;  %v1570_v58 = vadd.f32 %v1569_v57, %v5185_v42 }
 0x238   :  { %v1469_v29 = vadd.f32 %v1468_v48, %v5177_v15 }
 0x239   :  { %v1522_v62 = vpop.f32.mrf.mxu1  ;;  %1663 = vst [vmem:[#allocation4 + $0x50] sm:$0xff] %v1570_v58 }
 0x23a   :  { %1657 = vst [vmem:[#allocation4 + $0x20] sm:$0xff] %v1469_v29  ;;  %v1618_v59 = vpop.f32.mrf.mxu3  ;;  %v1523_v13 = vadd.f32 %v1522_v62, %v5179_v34 }
 0x23b   :  { %v1619_v61 = vadd.f32 %v1618_v59, %v5187_v43 }
 0x23c   :  { %1666 = vst [vmem:[#allocation4 + $0x68] sm:$0xff] %v1523_v13 }
 0x23d   :  { %1664 = vst [vmem:[#allocation4 + $0x58] sm:$0xff] %v1619_v61 }
 0x23e   :  { %v1571_v46 = vpop.f32.mrf.mxu2 }
 0x23f   :  { %v1471_v53 = vpop.f32.mrf.mxu0  ;;  %v1572_v63 = vadd.f32 %v1571_v46, %v5185_v42 }
 0x240   :  { %v1472_v55 = vadd.f32 %v1471_v53, %v5177_v15 }
 0x241   :  { %v1525_v39 = vpop.f32.mrf.mxu1  ;;  %1667 = vst [vmem:[#allocation4 + $0x70] sm:$0xff] %v1572_v63 }
 0x242   :  { %1661 = vst [vmem:[#allocation4 + $0x40] sm:$0xff] %v1472_v55  ;;  %v1620_v1 = vpop.f32.mrf.mxu3  ;;  %v1526_v25 = vadd.f32 %v1525_v39, %v5179_v34 }
 0x243   :  { %v1621_v3 = vadd.f32 %v1620_v1, %v5187_v43 }
 0x244   :  { %1670 = vst [vmem:[#allocation4 + $0x88] sm:$0xff] %v1526_v25 }
 0x245   :  { %1668 = vst [vmem:[#allocation4 + $0x78] sm:$0xff] %v1621_v3 }
 0x246   :  { %v1574_v5 = vpop.f32.mrf.mxu2 }
 0x247   :  { %v1473_v60 = vpop.f32.mrf.mxu0  ;;  %v1575_v14 = vadd.f32 %v1574_v5, %v5185_v42 }
 0x248   :  { %v1474_v0 = vadd.f32 %v1473_v60, %v5177_v15 }
 0x249   :  { %v1527_v10 = vpop.f32.mrf.mxu1  ;;  %1671 = vst [vmem:[#allocation4 + $0x90] sm:$0xff] %v1575_v14 }
 0x24a   :  { %1665 = vst [vmem:[#allocation4 + $0x60] sm:$0xff] %v1474_v0  ;;  %v1623_v6 = vpop.f32.mrf.mxu3  ;;  %v1528_v11 = vadd.f32 %v1527_v10, %v5179_v34  ;;  %v5250_v10 = vld [vmem:[%s6358_s4 + $0xc] sm:$0xf] }
 0x24b   :  { %v1624_v8 = vadd.f32 %v1623_v6, %v5187_v43  ;;  %6370 = vst [vmem:[#allocation9_spill] sm:$0xff] %v5250_v10  ;;  %v5531_v10 = vld [vmem:[%s6358_s4 + $0xe4] sm:$0xf] }
 0x24c   :  { %1674 = vst [vmem:[#allocation4 + $0xa8] sm:$0xff] %v1528_v11  ;;  %v5255_v11 = vld [vmem:[%s6358_s4 + $0x8] sm:$0xf] }
 0x24d   :  { %1672 = vst [vmem:[#allocation4 + $0x98] sm:$0xff] %v1624_v8  ;;  %v5240_v8 = vld [vmem:[%s6358_s4 + $0x4] sm:$0xf] }
 0x24e   :  { %v1576_v16 = vpop.f32.mrf.mxu2  ;;  %6368 = vst [vmem:[#allocation7_spill] sm:$0xff] %v5240_v8  ;;  %v5552_v8 = vld [vmem:[%s6358_s4 + $0xf0] sm:$0xf0] }
 0x24f   :  { %v1476_v2 = vpop.f32.mrf.mxu0  ;;  %v1577_v19 = vadd.f32 %v1576_v16, %v5185_v42  ;;  %6371 = vst [vmem:[#allocation10_spill] sm:$0xff] %v5255_v11  ;;  %v5260_v16 = vld [vmem:[%s6358_s4 + $0x10] sm:$0xf0]  ;;  %v5526_v11 = vld [vmem:[%s6358_s4 + $0xd4] sm:$0xf0] }
 0x250   :  { %v1477_v4 = vadd.f32 %v1476_v2, %v5177_v15  ;;  %6372 = vst [vmem:[#allocation11_spill] sm:$0xff] %v5260_v16  ;;  %v5582_v16 = vld [vmem:[%s6361_s7 + $0xc] sm:$0xf] }
 0x251   :  { %v1530_v28 = vpop.f32.mrf.mxu1  ;;  %1675 = vst [vmem:[#allocation4 + $0xb0] sm:$0xff] %v1577_v19  ;;  %v5265_v19 = vld [vmem:[%s6358_s4 + $0xc] sm:$0xf0] }
 0x252   :  { %1669 = vst [vmem:[#allocation4 + $0x80] sm:$0xff] %v1477_v4  ;;  %v1625_v20 = vpop.f32.mrf.mxu3  ;;  %v1531_v30 = vadd.f32 %v1530_v28, %v5179_v34  ;;  %v5285_v28 = vld [vmem:[%s6358_s4 + $0x20] sm:$0xf] }
 0x253   :  { %v1626_v23 = vadd.f32 %v1625_v20, %v5187_v43  ;;  %6373 = vst [vmem:[#allocation12_spill] sm:$0xff] %v5265_v19  ;;  %v5270_v20 = vld [vmem:[%s6358_s4 + $0x18] sm:$0xf0]  ;;  %v5587_v19 = vld [vmem:[%s6361_s7 + $0x8] sm:$0xf] }
 0x254   :  { %1678 = vst [vmem:[#allocation4 + $0xc8] sm:$0xff] %v1531_v30  ;;  %v5290_v30 = vld [vmem:[%s6358_s4 + $0x2c] sm:$0xf] }
 0x255   :  { %1676 = vst [vmem:[#allocation4 + $0xb8] sm:$0xff] %v1626_v23  ;;  %v5280_v23 = vld [vmem:[%s6358_s4 + $0x24] sm:$0xf] }
 0x256   :  { %v1579_v40 = vpop.f32.mrf.mxu2  ;;  %6374 = vst [vmem:[#allocation13_spill] sm:$0xff] %v5270_v20  ;;  %v5536_v20 = vld [vmem:[%s6358_s4 + $0xe0] sm:$0xf] }
 0x257   :  { %v1478_v7 = vpop.f32.mrf.mxu0  ;;  %v1580_v31 = vadd.f32 %v1579_v40, %v5185_v42  ;;  %6376 = vst [vmem:[#allocation15_spill] sm:$0xff] %v5280_v23  ;;  %v5295_v40 = vld [vmem:[%s6358_s4 + $0x28] sm:$0xf] }
 0x258   :  { %v1479_v12 = vadd.f32 %v1478_v7, %v5177_v15  ;;  %6392 = vst [vmem:[#allocation31_spill] sm:$0xff] %v5526_v11 }
 0x259   :  { %v1532_v44 = vpop.f32.mrf.mxu1  ;;  %1679 = vst [vmem:[#allocation4 + $0xd0] sm:$0xff] %v1580_v31 }
 0x25a   :  { %1673 = vst [vmem:[#allocation4 + $0xa0] sm:$0xff] %v1479_v12  ;;  %v1628_v32 = vpop.f32.mrf.mxu3  ;;  %v1533_v17 = vadd.f32 %v1532_v44, %v5179_v34  ;;  %v5245_v12 = vld [vmem:[%s6358_s4] sm:$0xf]  ;;  %v5311_v44 = vld [vmem:[%s6358_s4 + $0x38] sm:$0xf0] }
 0x25b   :  { %v1629_v35 = vadd.f32 %v1628_v32, %v5187_v43  ;;  %6369 = vst [vmem:[#allocation8_spill] sm:$0xff] %v5245_v12 }
 0x25c   :  { %1682 = vst [vmem:[#allocation4 + $0xe8] sm:$0xff] %v1533_v17 }
 0x25d   :  { %1680 = vst [vmem:[#allocation4 + $0xd8] sm:$0xff] %v1629_v35  ;;  %v5301_v35 = vld [vmem:[%s6358_s4 + $0x30] sm:$0xf0] }
 0x25e   :  { %v1581_v37 = vpop.f32.mrf.mxu2  ;;  %6393 = vst [vmem:[#allocation32_spill] sm:$0xff] %v5531_v10 }
 0x25f   :  { %v1481_v21 = vpop.f32.mrf.mxu0  ;;  %v1582_v18 = vadd.f32 %v1581_v37, %v5185_v42  ;;  %6394 = vst [vmem:[#allocation33_spill] sm:$0xff] %v5536_v20 }
 0x260   :  { %v1482_v27 = vadd.f32 %v1481_v21, %v5177_v15  ;;  %v5275_v21 = vld [vmem:[%s6358_s4 + $0x14] sm:$0xf0]  ;;  %6396 = vst [vmem:[#allocation35_spill] sm:$0xff] %v5552_v8 }
 0x261   :  { %v1535_v47 = vpop.f32.mrf.mxu1  ;;  %1683 = vst [vmem:[#allocation4 + $0xf0] sm:$0xff] %v1582_v18 }
 0x262   :  { %1677 = vst [vmem:[#allocation4 + $0xc0] sm:$0xff] %v1482_v27  ;;  %v1630_v38 = vpop.f32.mrf.mxu3  ;;  %v1536_v48 = vadd.f32 %v1535_v47, %v5179_v34  ;;  %v5334_v47 = vld [vmem:[%s6358_s4 + $0x4c] sm:$0xf] }
 0x263   :  { %v1631_v45 = vadd.f32 %v1630_v38, %v5187_v43  ;;  %6375 = vst [vmem:[#allocation14_spill] sm:$0xff] %v5275_v21  ;;  %v5318_v38 = vld [vmem:[%s6358_s4 + $0x34] sm:$0xf0] }
 0x264   :  { %1686 = vst [vmem:[#allocation4 + $0x108] sm:$0xff] %v1536_v48  ;;  %v5339_v48 = vld [vmem:[%s6358_s4 + $0x48] sm:$0xf] }
 0x265   :  { %1684 = vst [vmem:[#allocation4 + $0xf8] sm:$0xff] %v1631_v45  ;;  %v5328_v45 = vld [vmem:[%s6358_s4 + $0x40] sm:$0xf] }
 0x266   :  { %v1584_v26 = vpop.f32.mrf.mxu2  ;;  %6377 = vst [vmem:[#allocation16_spill] sm:$0xff] %v5318_v38 }
 0x267   :  { %v1483_v33 = vpop.f32.mrf.mxu0  ;;  %v1585_v29 = vadd.f32 %v1584_v26, %v5185_v42  ;;  %v5344_v26 = vld [vmem:[%s6358_s4 + $0x50] sm:$0xf0]  ;;  %6400 = vst [vmem:[#allocation39_spill] sm:$0xff] %v5582_v16  ;;  %v5602_v16 = vld [vmem:[%s6361_s7 + $0x18] sm:$0xf0] }
 0x268   :  { %v1484_v36 = vadd.f32 %v1483_v33, %v5177_v15  ;;  %6401 = vst [vmem:[#allocation40_spill] sm:$0xff] %v5587_v19  ;;  %v5607_v19 = vld [vmem:[%s6361_s7 + $0x14] sm:$0xf0] }
 0x269   :  { %v1537_v52 = vpop.f32.mrf.mxu1  ;;  %1687 = vst [vmem:[#allocation4 + $0x110] sm:$0xff] %v1585_v29  ;;  %v5349_v29 = vld [vmem:[%s6358_s4 + $0x4c] sm:$0xf0] }
 0x26a   :  { %1681 = vst [vmem:[#allocation4 + $0xe0] sm:$0xff] %v1484_v36  ;;  %v1633_v22 = vpop.f32.mrf.mxu3  ;;  %v1538_v53 = vadd.f32 %v1537_v52, %v5179_v34  ;;  %v5306_v36 = vld [vmem:[%s6358_s4 + $0x2c] sm:$0xf0]  ;;  %v5374_v52 = vld [vmem:[%s6358_s4 + $0x6c] sm:$0xf] }
 0x26b   :  { %v1634_v50 = vadd.f32 %v1633_v22, %v5187_v43  ;;  %v5354_v22 = vld [vmem:[%s6358_s4 + $0x58] sm:$0xf0]  ;;  %6404 = vst [vmem:[#allocation43_spill] sm:$0xff] %v5602_v16  ;;  %v5623_v16 = vld [vmem:[%s6361_s7 + $0x2c] sm:$0xf] }
 0x26c   :  { %1690 = vst [vmem:[#allocation4 + $0x128] sm:$0xff] %v1538_v53  ;;  %v5379_v53 = vld [vmem:[%s6358_s4 + $0x68] sm:$0xf] }
 0x26d   :  { %1688 = vst [vmem:[#allocation4 + $0x118] sm:$0xff] %v1634_v50  ;;  %v5364_v50 = vld [vmem:[%s6358_s4 + $0x64] sm:$0xf] }
 0x26e   :  { %v1586_v54 = vpop.f32.mrf.mxu2  ;;  %6378 = vst [vmem:[#allocation17_spill] sm:$0xff] %v5354_v22 }
 0x26f   :  { %v1486_v41 = vpop.f32.mrf.mxu0  ;;  %v1587_v55 = vadd.f32 %v1586_v54, %v5185_v42  ;;  %v5384_v54 = vld [vmem:[%s6358_s4 + $0x70] sm:$0xf0]  ;;  %6405 = vst [vmem:[#allocation44_spill] sm:$0xff] %v5607_v19 }
 0x270   :  { %v1487_v24 = vadd.f32 %v1486_v41, %v5177_v15  ;;  %v5323_v41 = vld [vmem:[%s6358_s4 + $0x44] sm:$0xf]  ;;  %6408 = vst [vmem:[#allocation47_spill] sm:$0xff] %v5623_v16  ;;  %v5664_v16 = vld [vmem:[%s6361_s7 + $0x4c] sm:$0xf] }
 0x271   :  { %v1540_v59 = vpop.f32.mrf.mxu1  ;;  %1691 = vst [vmem:[#allocation4 + $0x130] sm:$0xff] %v1587_v55 }
 0x272   :  { %1685 = vst [vmem:[#allocation4 + $0x100] sm:$0xff] %v1487_v24  ;;  %v1635_v9 = vpop.f32.mrf.mxu3  ;;  %v1541_v60 = vadd.f32 %v1540_v59, %v5179_v34 }
 0x273   :  { %v1636_v57 = vadd.f32 %v1635_v9, %v5187_v43  ;;  %v5389_v9 = vld [vmem:[%s6358_s4 + $0x6c] sm:$0xf0]  ;;  %6416 = vst [vmem:[#allocation55_spill] sm:$0xff] %v5664_v16  ;;  %v5704_v16 = vld [vmem:[%s6361_s7 + $0x6c] sm:$0xf] }
 0x274   :  { %1694 = vst [vmem:[#allocation4 + $0x148] sm:$0xff] %v1541_v60 }
 0x275   :  { %1692 = vst [vmem:[#allocation4 + $0x138] sm:$0xff] %v1636_v57  ;;  %v5399_v57 = vld [vmem:[%s6358_s4 + $0x74] sm:$0xf0] }
 0x276   :  { %v1589_v61 = vpop.f32.mrf.mxu2  ;;  %6379 = vst [vmem:[#allocation18_spill] sm:$0xff] %v5389_v9 }
 0x277   :  { %v1488_v49 = vpop.f32.mrf.mxu0  ;;  %v1590_v0 = vadd.f32 %v1589_v61, %v5185_v42  ;;  %v5405_v61 = vld [vmem:[%s6358_s4 + $0x84] sm:$0xf]  ;;  %6424 = vst [vmem:[#allocation63_spill] sm:$0xff] %v5704_v16  ;;  %v5744_v16 = vld [vmem:[%s6361_s7 + $0x8c] sm:$0xf] }
 0x278   :  { %v1489_v51 = vadd.f32 %v1488_v49, %v5177_v15  ;;  %v5359_v49 = vld [vmem:[%s6358_s4 + $0x54] sm:$0xf0]  ;;  %6432 = vst [vmem:[#allocation71_spill] sm:$0xff] %v5744_v16  ;;  %v5784_v16 = vld [vmem:[%s6361_s7 + $0xac] sm:$0xf] }
 0x279   :  { %v1542_v1 = vpop.f32.mrf.mxu1  ;;  %1695 = vst [vmem:[#allocation4 + $0x150] sm:$0xff] %v1590_v0  ;;  %v5410_v0 = vld [vmem:[%s6358_s4 + $0x80] sm:$0xf] }
 0x27a   :  { %1689 = vst [vmem:[#allocation4 + $0x120] sm:$0xff] %v1489_v51  ;;  %v1638_v62 = vpop.f32.mrf.mxu3  ;;  %v1543_v2 = vadd.f32 %v1542_v1, %v5179_v34  ;;  %v5369_v51 = vld [vmem:[%s6358_s4 + $0x60] sm:$0xf]  ;;  %v5422_v1 = vld [vmem:[%s6358_s4 + $0x88] sm:$0xf] }
 0x27b   :  { %v1639_v46 = vadd.f32 %v1638_v62, %v5187_v43  ;;  %6380 = vst [vmem:[#allocation19_spill] sm:$0xff] %v5410_v0  ;;  %v5415_v62 = vld [vmem:[%s6358_s4 + $0x8c] sm:$0xf] }
 0x27c   :  { %1698 = vst [vmem:[#allocation4 + $0x168] sm:$0xff] %v1543_v2  ;;  %v5427_v2 = vld [vmem:[%s6358_s4 + $0x90] sm:$0xf0] }
 0x27d   :  { %1696 = vst [vmem:[#allocation4 + $0x158] sm:$0xff] %v1639_v46 }
 0x27e   :  { %v1591_v3 = vpop.f32.mrf.mxu2  ;;  %6381 = vst [vmem:[#allocation20_spill] sm:$0xff] %v5422_v1 }
 0x27f   :  { %v1491_v56 = vpop.f32.mrf.mxu0  ;;  %v1592_v4 = vadd.f32 %v1591_v3, %v5185_v42  ;;  %6382 = vst [vmem:[#allocation21_spill] sm:$0xff] %v5427_v2  ;;  %v5432_v3 = vld [vmem:[%s6358_s4 + $0x8c] sm:$0xf0] }
 0x280   :  { %v1492_v58 = vadd.f32 %v1491_v56, %v5177_v15  ;;  %v5394_v56 = vld [vmem:[%s6358_s4 + $0x78] sm:$0xf0]  ;;  %6383 = vst [vmem:[#allocation22_spill] sm:$0xff] %v5432_v3 }
 0x281   :  { %v1545_v6 = vpop.f32.mrf.mxu1  ;;  %1699 = vst [vmem:[#allocation4 + $0x170] sm:$0xff] %v1592_v4 }
 0x282   :  { %1693 = vst [vmem:[#allocation4 + $0x140] sm:$0xff] %v1492_v58  ;;  %v1640_v39 = vpop.f32.mrf.mxu3  ;;  %v1546_v7 = vadd.f32 %v1545_v6, %v5179_v34  ;;  %v5458_v6 = vld [vmem:[%s6358_s4 + $0xac] sm:$0xf] }
 0x283   :  { %v1641_v5 = vadd.f32 %v1640_v39, %v5187_v43  ;;  %v5438_v39 = vld [vmem:[%s6358_s4 + $0x98] sm:$0xf0]  ;;  %6386 = vst [vmem:[#allocation25_spill] sm:$0xff] %v5458_v6 }
 0x284   :  { %1702 = vst [vmem:[#allocation4 + $0x188] sm:$0xff] %v1546_v7  ;;  %v5463_v7 = vld [vmem:[%s6358_s4 + $0xa8] sm:$0xf] }
 0x285   :  { %1700 = vst [vmem:[#allocation4 + $0x178] sm:$0xff] %v1641_v5  ;;  %v5448_v5 = vld [vmem:[%s6358_s4 + $0xa4] sm:$0xf] }
 0x286   :  { %v1594_v27 = vpop.f32.mrf.mxu2  ;;  %6384 = vst [vmem:[#allocation23_spill] sm:$0xff] %v5448_v5 }
 0x287   :  { %v1493_v13 = vpop.f32.mrf.mxu0  ;;  %v1595_v31 = vadd.f32 %v1594_v27, %v5185_v42  ;;  %6387 = vst [vmem:[#allocation26_spill] sm:$0xff] %v5463_v7  ;;  %v5468_v27 = vld [vmem:[%s6358_s4 + $0xb0] sm:$0xf0] }
 0x288   :  { %v1494_v63 = vadd.f32 %v1493_v13, %v5177_v15  ;;  %6440 = vst [vmem:[#allocation79_spill] sm:$0xff] %v5784_v16  ;;  %v5824_v16 = vld [vmem:[%s6361_s7 + $0xcc] sm:$0xf] }
 0x289   :  { %v1547_v18 = vpop.f32.mrf.mxu1  ;;  %1703 = vst [vmem:[#allocation4 + $0x190] sm:$0xff] %v1595_v31  ;;  %v5473_v31 = vld [vmem:[%s6358_s4 + $0xac] sm:$0xf0] }
 0x28a   :  { %1697 = vst [vmem:[#allocation4 + $0x160] sm:$0xff] %v1494_v63  ;;  %v1643_v32 = vpop.f32.mrf.mxu3  ;;  %v1548_v24 = vadd.f32 %v1547_v18, %v5179_v34  ;;  %v5493_v18 = vld [vmem:[%s6358_s4 + $0xc0] sm:$0xf] }
 0x28b   :  { %v1644_v17 = vadd.f32 %v1643_v32, %v5187_v43  ;;  %v5478_v32 = vld [vmem:[%s6358_s4 + $0xb8] sm:$0xf0]  ;;  %6389 = vst [vmem:[#allocation28_spill] sm:$0xff] %v5493_v18 }
 0x28c   :  { %1706 = vst [vmem:[#allocation4 + $0x1a8] sm:$0xff] %v1548_v24  ;;  %v5498_v24 = vld [vmem:[%s6358_s4 + $0xcc] sm:$0xf] }
 0x28d   :  { %1704 = vst [vmem:[#allocation4 + $0x198] sm:$0xff] %v1644_v17  ;;  %v5488_v17 = vld [vmem:[%s6358_s4 + $0xc4] sm:$0xf] }
 0x28e   :  { %v1596_v55 = vpop.f32.mrf.mxu2  ;;  %6388 = vst [vmem:[#allocation27_spill] sm:$0xff] %v5488_v17 }
 0x28f   :  { %v1496_v25 = vpop.f32.mrf.mxu0  ;;  %v1597_v58 = vadd.f32 %v1596_v55, %v5185_v42  ;;  %6390 = vst [vmem:[#allocation29_spill] sm:$0xff] %v5498_v24  ;;  %v5503_v55 = vld [vmem:[%s6358_s4 + $0xc8] sm:$0xf] }
 0x290   :  { %v1497_v14 = vadd.f32 %v1496_v25, %v5177_v15  ;;  %v5443_v25 = vld [vmem:[%s6358_s4 + $0x94] sm:$0xf0]  ;;  %6448 = vst [vmem:[#allocation87_spill] sm:$0xff] %v5824_v16  ;;  %v5864_v16 = vld [vmem:[%s6361_s7 + $0xec] sm:$0xf] }
 0x291   :  { %v1550_v63 = vpop.f32.mrf.mxu1  ;;  %1707 = vst [vmem:[#allocation4 + $0x1b0] sm:$0xff] %v1597_v58 }
 0x292   :  { %1701 = vst [vmem:[#allocation4 + $0x180] sm:$0xff] %v1497_v14  ;;  %v1645_v59 = vpop.f32.mrf.mxu3  ;;  %v1551_v4 = vadd.f32 %v1550_v63, %v5179_v34  ;;  %v5453_v14 = vld [vmem:[%s6358_s4 + $0xa0] sm:$0xf]  ;;  %v5519_v63 = vld [vmem:[%s6358_s4 + $0xd8] sm:$0xf0] }
 0x293   :  { %v1646_v13 = vadd.f32 %v1645_v59, %v5187_v43  ;;  %6385 = vst [vmem:[#allocation24_spill] sm:$0xff] %v5453_v14 }
 0x294   :  { %1710 = vst [vmem:[#allocation4 + $0x1c8] sm:$0xff] %v1551_v4 }
 0x295   :  { %1708 = vst [vmem:[#allocation4 + $0x1b8] sm:$0xff] %v1646_v13  ;;  %v5509_v13 = vld [vmem:[%s6358_s4 + $0xd0] sm:$0xf0] }
 0x296   :  { %6391 = vst [vmem:[#allocation30_spill] sm:$0xff] %v5509_v13 }
 0x297   :  { %v1498_v33 = vpop.f32.mrf.mxu0  ;;  %6455 = vst [vmem:[#allocation94_spill] sm:$0xff] %v5864_v16  ;;  %v5895_v16 = vmov 0.0  }
 0x298   :  { %v1499_v37 = vadd.f32 %v1498_v33, %v5177_v15  ;;  %v5483_v33 = vld [vmem:[%s6358_s4 + $0xb4] sm:$0xf0] }
 0x299   :  { %v1552_v21 = vpop.f32.mrf.mxu1 }
 0x29a   :  { %1705 = vst [vmem:[#allocation4 + $0x1a0] sm:$0xff] %v1499_v37  ;;  %v1599_v37 = vpop.f32.mrf.mxu2  ;;  %v1648_v59 = vpop.f32.mrf.mxu3 }
 0x29b   :  { %v1600_v58 = vadd.f32 %v1599_v37, %v5185_v42  ;;  %v1649_v4 = vadd.f32 %v1648_v59, %v5187_v43  ;;  %v1553_v59 = vadd.f32 %v1552_v21, %v5179_v34  ;;  %v5557_v34 = vld [vmem:[%s6358_s4 + $0xec] sm:$0xf0]  ;;  %v5562_v21 = vld [vmem:[%s6358_s4 + $0xf8] sm:$0xf0] }
 0x29c   :  { %6397 = vst [vmem:[#allocation36_spill] sm:$0xff] %v5562_v21 }
 0x29d   :  { %1711 = vst [vmem:[#allocation4 + $0x1d0] sm:$0xff] %v1600_v58  ;;  %v5567_v58 = vld [vmem:[%s6358_s4 + $0xf4] sm:$0xf0] }
 0x29e   :  { %1712 = vst [vmem:[#allocation4 + $0x1d8] sm:$0xff] %v1649_v4  ;;  %v5572_v4 = vld [vmem:[%s6361_s7 + $0x4] sm:$0xf] }
 0x29f   :  { %v1501_v60 = vpop.f32.mrf.mxu0  ;;  %1714 = vst [vmem:[#allocation4 + $0x1e8] sm:$0xff] %v1553_v59  ;;  %v5592_v59 = vld [vmem:[%s6361_s7 + $0x10] sm:$0xf0] }
 0x2a0   :  { %v1502_v46 = vadd.f32 %v1501_v60, %v5177_v15  ;;  %6398 = vst [vmem:[#allocation37_spill] sm:$0xff] %v5572_v4 }
 0x2a1   :  { %6402 = vst [vmem:[#allocation41_spill] sm:$0xff] %v5592_v59  ;;  %v5613_v59 = vld [vmem:[%s6361_s7 + $0x24] sm:$0xf] }
 0x2a2   :  { %1709 = vst [vmem:[#allocation4 + $0x1c0] sm:$0xff] %v1502_v46  ;;  %v5514_v46 = vld [vmem:[%s6358_s4 + $0xcc] sm:$0xf0]  ;;  %v1601_v4 = vpop.f32.mrf.mxu2  ;;  %v1650_v38 = vpop.f32.mrf.mxu3 }
 0x2a3   :  { %v1602_v12 = vadd.f32 %v1601_v4, %v5185_v42  ;;  %6406 = vst [vmem:[#allocation45_spill] sm:$0xff] %v5613_v59  ;;  %v1651_v19 = vadd.f32 %v1650_v38, %v5187_v43  ;;  %v5629_v42 = vld [vmem:[%s6361_s7 + $0x28] sm:$0xf]  ;;  %v5634_v4 = vld [vmem:[%s6361_s7 + $0x30] sm:$0xf0] }
 0x2a4   :  { %6409 = vst [vmem:[#allocation48_spill] sm:$0xff] %v5629_v42  ;;  %v5639_v59 = vld [vmem:[%s6361_s7 + $0x2c] sm:$0xf0]  ;;  %v5644_v43 = vld [vmem:[%s6361_s7 + $0x38] sm:$0xf0] }
 0x2a5   :  { %6410 = vst [vmem:[#allocation49_spill] sm:$0xff] %v5634_v4  ;;  %v5649_v38 = vld [vmem:[%s6361_s7 + $0x34] sm:$0xf0]  ;;  %v5654_v42 = vld [vmem:[%s6361_s7 + $0x44] sm:$0xf] }
 0x2a6   :  { %6411 = vst [vmem:[#allocation50_spill] sm:$0xff] %v5639_v59  ;;  %v5684_v4 = vld [vmem:[%s6361_s7 + $0x58] sm:$0xf0]  ;;  %v5689_v59 = vld [vmem:[%s6361_s7 + $0x54] sm:$0xf0] }
 0x2a7   :  { %v1503_v60 = vpop.f32.mrf.mxu0  ;;  %1715 = vst [vmem:[#allocation4 + $0x1f0] sm:$0xff] %v1602_v12  ;;  %v5659_v12 = vld [vmem:[%s6361_s7 + $0x40] sm:$0xf] }
 0x2a8   :  { %v1504_v37 = vadd.f32 %v1503_v60, %v5177_v15  ;;  %v5542_v15 = vld [vmem:[%s6358_s4 + $0xec] sm:$0xf]  ;;  %v5547_v60 = vld [vmem:[%s6358_s4 + $0xe8] sm:$0xf]  ;;  %6412 = vst [vmem:[#allocation51_spill] sm:$0xff] %v5644_v43 }
 0x2a9   :  { %6395 = vst [vmem:[#allocation34_spill] sm:$0xff] %v5542_v15  ;;  %v5679_v43 = vld [vmem:[%s6361_s7 + $0x4c] sm:$0xf0] }
 0x2aa   :  { %1713 = vst [vmem:[#allocation4 + $0x1e0] sm:$0xff] %v1504_v37  ;;  %v5577_v37 = vld [vmem:[%s6361_s7] sm:$0xf] }
 0x2ab   :  { %6399 = vst [vmem:[#allocation38_spill] sm:$0xff] %v5577_v37  ;;  %v5597_v37 = vld [vmem:[%s6361_s7 + $0xc] sm:$0xf0] }
 0x2ac   :  { %6403 = vst [vmem:[#allocation42_spill] sm:$0xff] %v5597_v37  ;;  %v5618_v37 = vld [vmem:[%s6361_s7 + $0x20] sm:$0xf] }
 0x2ad   :  { %6407 = vst [vmem:[#allocation46_spill] sm:$0xff] %v5618_v37  ;;  %v5699_v37 = vld [vmem:[%s6361_s7 + $0x60] sm:$0xf] }
 0x2ae   :  { %6413 = vst [vmem:[#allocation52_spill] sm:$0xff] %v5649_v38  ;;  %v5669_v38 = vld [vmem:[%s6361_s7 + $0x48] sm:$0xf] }
 0x2af   :  { %1716 = vst [vmem:[#allocation4 + $0x1f8] sm:$0xff] %v1651_v19  ;;  %v5674_v19 = vld [vmem:[%s6361_s7 + $0x50] sm:$0xf0] }
 0x2b0   :  { %6414 = vst [vmem:[#allocation53_spill] sm:$0xff] %v5654_v42  ;;  %v5719_v42 = vld [vmem:[%s6361_s7 + $0x6c] sm:$0xf0] }
 0x2b1   :  { %6415 = vst [vmem:[#allocation54_spill] sm:$0xff] %v5659_v12  ;;  %v5739_v12 = vld [vmem:[%s6361_s7 + $0x80] sm:$0xf] }
 0x2b2   :  { %6417 = vst [vmem:[#allocation56_spill] sm:$0xff] %v5669_v38  ;;  %v5694_v38 = vld [vmem:[%s6361_s7 + $0x64] sm:$0xf] }
 0x2b3   :  { %6418 = vst [vmem:[#allocation57_spill] sm:$0xff] %v5674_v19  ;;  %v5724_v19 = vld [vmem:[%s6361_s7 + $0x78] sm:$0xf0] }
 0x2b4   :  { %6419 = vst [vmem:[#allocation58_spill] sm:$0xff] %v5679_v43  ;;  %v5729_v43 = vld [vmem:[%s6361_s7 + $0x74] sm:$0xf0] }
 0x2b5   :  { %6420 = vst [vmem:[#allocation59_spill] sm:$0xff] %v5684_v4  ;;  %v5709_v4 = vld [vmem:[%s6361_s7 + $0x68] sm:$0xf] }
 0x2b6   :  { %6421 = vst [vmem:[#allocation60_spill] sm:$0xff] %v5689_v59  ;;  %v5714_v59 = vld [vmem:[%s6361_s7 + $0x70] sm:$0xf0] }
 0x2b7   :  { %6422 = vst [vmem:[#allocation61_spill] sm:$0xff] %v5694_v38  ;;  %v5759_v38 = vld [vmem:[%s6361_s7 + $0x8c] sm:$0xf0] }
 0x2b8   :  { %6423 = vst [vmem:[#allocation62_spill] sm:$0xff] %v5699_v37  ;;  %v5779_v37 = vld [vmem:[%s6361_s7 + $0xa0] sm:$0xf] }
 0x2b9   :  { %6425 = vst [vmem:[#allocation64_spill] sm:$0xff] %v5709_v4  ;;  %v5734_v4 = vld [vmem:[%s6361_s7 + $0x84] sm:$0xf] }
 0x2ba   :  { %6426 = vst [vmem:[#allocation65_spill] sm:$0xff] %v5714_v59  ;;  %v5764_v59 = vld [vmem:[%s6361_s7 + $0x98] sm:$0xf0] }
 0x2bb   :  { %6427 = vst [vmem:[#allocation66_spill] sm:$0xff] %v5719_v42  ;;  %v5769_v42 = vld [vmem:[%s6361_s7 + $0x94] sm:$0xf0] }
 0x2bc   :  { %6428 = vst [vmem:[#allocation67_spill] sm:$0xff] %v5724_v19  ;;  %v5749_v19 = vld [vmem:[%s6361_s7 + $0x88] sm:$0xf] }
 0x2bd   :  { %6429 = vst [vmem:[#allocation68_spill] sm:$0xff] %v5729_v43  ;;  %v5754_v43 = vld [vmem:[%s6361_s7 + $0x90] sm:$0xf0] }
 0x2be   :  { %6430 = vst [vmem:[#allocation69_spill] sm:$0xff] %v5734_v4  ;;  %v5799_v4 = vld [vmem:[%s6361_s7 + $0xac] sm:$0xf0] }
 0x2bf   :  { %6431 = vst [vmem:[#allocation70_spill] sm:$0xff] %v5739_v12  ;;  %v5819_v12 = vld [vmem:[%s6361_s7 + $0xc0] sm:$0xf] }
 0x2c0   :  { %6433 = vst [vmem:[#allocation72_spill] sm:$0xff] %v5749_v19  ;;  %v5774_v19 = vld [vmem:[%s6361_s7 + $0xa4] sm:$0xf] }
 0x2c1   :  { %6434 = vst [vmem:[#allocation73_spill] sm:$0xff] %v5754_v43  ;;  %v5804_v43 = vld [vmem:[%s6361_s7 + $0xb8] sm:$0xf0] }
 0x2c2   :  { %6435 = vst [vmem:[#allocation74_spill] sm:$0xff] %v5759_v38  ;;  %v5809_v38 = vld [vmem:[%s6361_s7 + $0xb4] sm:$0xf0] }
 0x2c3   :  { %6436 = vst [vmem:[#allocation75_spill] sm:$0xff] %v5764_v59  ;;  %v5789_v59 = vld [vmem:[%s6361_s7 + $0xa8] sm:$0xf] }
 0x2c4   :  { %6437 = vst [vmem:[#allocation76_spill] sm:$0xff] %v5769_v42  ;;  %v5794_v42 = vld [vmem:[%s6361_s7 + $0xb0] sm:$0xf0] }
 0x2c5   :  { %6438 = vst [vmem:[#allocation77_spill] sm:$0xff] %v5774_v19  ;;  %v5839_v19 = vld [vmem:[%s6361_s7 + $0xcc] sm:$0xf0] }
 0x2c6   :  { %6439 = vst [vmem:[#allocation78_spill] sm:$0xff] %v5779_v37  ;;  %v5859_v37 = vld [vmem:[%s6361_s7 + $0xe0] sm:$0xf] }
 0x2c7   :  { %6441 = vst [vmem:[#allocation80_spill] sm:$0xff] %v5789_v59  ;;  %v5814_v59 = vld [vmem:[%s6361_s7 + $0xc4] sm:$0xf] }
 0x2c8   :  { %6442 = vst [vmem:[#allocation81_spill] sm:$0xff] %v5794_v42  ;;  %v5844_v42 = vld [vmem:[%s6361_s7 + $0xd8] sm:$0xf0] }
 0x2c9   :  { %6443 = vst [vmem:[#allocation82_spill] sm:$0xff] %v5799_v4  ;;  %v5849_v4 = vld [vmem:[%s6361_s7 + $0xd4] sm:$0xf0] }
 0x2ca   :  { %6444 = vst [vmem:[#allocation83_spill] sm:$0xff] %v5804_v43  ;;  %v5829_v43 = vld [vmem:[%s6361_s7 + $0xc8] sm:$0xf] }
 0x2cb   :  { %6445 = vst [vmem:[#allocation84_spill] sm:$0xff] %v5809_v38  ;;  %v5834_v38 = vld [vmem:[%s6361_s7 + $0xd0] sm:$0xf0] }
 0x2cc   :  { %6446 = vst [vmem:[#allocation85_spill] sm:$0xff] %v5814_v59  ;;  %v5879_v59 = vld [vmem:[%s6361_s7 + $0xec] sm:$0xf0] }
 0x2cd   :  { %6447 = vst [vmem:[#allocation86_spill] sm:$0xff] %v5819_v12  ;;  %v5893_v12 = vmov 0.0  }
 0x2ce   :  { %6449 = vst [vmem:[#allocation88_spill] sm:$0xff] %v5829_v43  ;;  %v5854_v43 = vld [vmem:[%s6361_s7 + $0xe4] sm:$0xf] }
 0x2cf   :  { %6450 = vst [vmem:[#allocation89_spill] sm:$0xff] %v5834_v38  ;;  %v5884_v38 = vld [vmem:[%s6361_s7 + $0xf8] sm:$0xf0] }
 0x2d0   :  { %6451 = vst [vmem:[#allocation90_spill] sm:$0xff] %v5839_v19  ;;  %v5889_v19 = vld [vmem:[%s6361_s7 + $0xf4] sm:$0xf0] }
 0x2d1   :  { %6452 = vst [vmem:[#allocation91_spill] sm:$0xff] %v5844_v42  ;;  %v5869_v42 = vld [vmem:[%s6361_s7 + $0xe8] sm:$0xf] }
 0x2d2   :  { %6453 = vst [vmem:[#allocation92_spill] sm:$0xff] %v5849_v4  ;;  %v5874_v4 = vld [vmem:[%s6361_s7 + $0xf0] sm:$0xf0] }
 0x2d3   :  { %6454 = vst [vmem:[#allocation93_spill] sm:$0xff] %v5854_v43  ;;  %v5897_v43 = vmov 0.0  }
 0x2d4   :  { %6456 = vst [vmem:[#allocation95_spill] sm:$0xff] %v5869_v42  ;;  %v5891_v42 = vmov 0.0  }
 0x2d5   :  { %6457 = vst [vmem:[#allocation96_spill] sm:$0xff] %v5874_v4 }
 0x2d6   :  { %6458 = vst [vmem:[#allocation97_spill] sm:$0xff] %v5884_v38 }
 0x2d7   :  { %6459 = vst [vmem:[#allocation98_spill] sm:$0xff] %v5889_v19 }
 0x2d8 LB: > { %6460 = vst [vmem:[#allocation99_spill] sm:$0xff] %v4401_v42  ;;  %v6464_v20 = vld [vmem:[#allocation33_spill] sm:$0xff]  ;;  %v6465_v8 = vld [vmem:[#allocation35_spill] sm:$0xff]  ;;  %v6466_v10 = vld [vmem:[#allocation32_spill] sm:$0xff]  ;;  %s4066_s7 = sshll.u32 %s4417_s26, 5  ;;  %s1791_s28 = ssub.s32 15, %s4417_s26  ;;  %s4417_s26 = sphi %s5899_s26, %s1786_s26   ;;  %v4413_v43 = vphi %v5897_v43, %v6089_v43   ;;  %v4409_v16 = vphi %v5895_v16, %v6082_v16   ;;  %v4405_v12 = vphi %v5893_v12, %v2365_v12   ;;  %v4401_v42 = vphi %v5891_v42, %v2363_v42  }
 0x2d9   : > { %6461 = vst [vmem:[#allocation100_spill] sm:$0xff] %v4405_v12  ;;  %v3602_v19 = vor.u32 %v5557_v34, %v6464_v20  ;;  %v3606_v38 = vor.u32 %v6466_v10, %v6465_v8  ;;  %v6467_v21 = vld [vmem:[#allocation36_spill] sm:$0xff]  ;;  %v6468_v15 = vld [vmem:[#allocation34_spill] sm:$0xff]  ;;  %v3610_v12 = vor.u32 %v5567_v58, %v5547_v60  ;;  %v6471_v17 = vld [vmem:[#allocation27_spill] sm:$0xff]  ;;  %s1794_s27 = scalar_lea.vmem [#allocation3], %s4066_s7  ;;  %s4067_s29 = sshll.u32 %s1791_s28, 5 }
 0x2da   : > { %6462 = vst [vmem:[#allocation101_spill] sm:$0xff] %v4409_v16  ;;  %v3614_v42 = vor.u32 %v6468_v15, %v6467_v21  ;;  %v6469_v18 = vld [vmem:[#allocation28_spill] sm:$0xff]  ;;  %v6470_v13 = vld [vmem:[#allocation30_spill] sm:$0xff]  ;;  %v6472_v24 = vld [vmem:[#allocation29_spill] sm:$0xff]  ;;  %s6063_s30 = scalar_lea.vmem [#allocation4], %s4067_s29  ;;  %s3751_s13 = sshll.u32 %s4417_s26, 2 }
 0x2db   : > { %6463 = vst [vmem:[#allocation102_spill] sm:$0xff] %v4413_v43  ;;  %1960 = vmatpush.bf16.msra.mxu0 %v3602_v19  ;;  %1973 = vmatpush.bf16.msra.mxu1 %v3606_v38  ;;  %v3586_v16 = vor.u32 %v5514_v46, %v6469_v18  ;;  %v3590_v43 = vor.u32 %v6471_v17, %v6470_v13  ;;  %v6473_v11 = vld [vmem:[#allocation31_spill] sm:$0xff]  ;;  %v6474_v14 = vld [vmem:[#allocation24_spill] sm:$0xff]  ;;  %v6476_v6 = vld [vmem:[#allocation25_spill] sm:$0xff]  ;;  %s2368_s14 = scalar_lea.vmem [#allocation5], %s3751_s13  ;;  %s3752_s15 = sshll.u32 %s1791_s28, 2 }
 0x2dc   : > { %1999 = vmatpush.bf16.msra.mxu3 %v3614_v42  ;;  %v3598_v20 = vor.u32 %v6472_v24, %v5519_v63  ;;  %1986 = vmatpush.bf16.msra.mxu2 %v3610_v12  ;;  %v3594_v8 = vor.u32 %v6473_v11, %v5503_v55  ;;  %v3570_v19 = vor.u32 %v5473_v31, %v6474_v14  ;;  %v6475_v5 = vld [vmem:[#allocation23_spill] sm:$0xff]  ;;  %v6477_v7 = vld [vmem:[#allocation26_spill] sm:$0xff]  ;;  %v6480_v2 = vld [vmem:[#allocation21_spill] sm:$0xff]  ;;  %s2372_s16 = scalar_lea.vmem [#allocation6], %s3752_s15  ;;  %s1786_s26 = sadd.s32 1, %s4417_s26  }
 0x2dd   : > { %v3574_v38 = vor.u32 %v6475_v5, %v5468_v27  ;;  %v3582_v10 = vor.u32 %v6476_v6, %v5478_v32  ;;  %v3578_v42 = vor.u32 %v5483_v33, %v6477_v7  ;;  %v6478_v0 = vld [vmem:[#allocation19_spill] sm:$0xff]  ;;  %v6479_v3 = vld [vmem:[#allocation22_spill] sm:$0xff]  ;;  %v3566_v12 = vor.u32 %v5415_v62, %v5438_v39  ;;  %v6481_v1 = vld [vmem:[#allocation20_spill] sm:$0xff]  ;;  %p1783_p1 = scmp.ge.s32.totalorder %s1786_s26, 16  }
 0x2de   : > { %v6482_v9 = vld [vmem:[#allocation18_spill] sm:$0xff]  ;;  %v6483_v22 = vld [vmem:[#allocation17_spill] sm:$0xff]  ;;  %v6484_v23 = vld [vmem:[#allocation15_spill] sm:$0xff] }
 0x2df   : > { %1961 = vmatpush.bf16.msra.mxu0 %v3586_v16  ;;  %1974 = vmatpush.bf16.msra.mxu1 %v3590_v43  ;;  %v3554_v16 = vor.u32 %v6479_v3, %v6478_v0  ;;  %v3558_v43 = vor.u32 %v5405_v61, %v6480_v2  ;;  %v6489_v2 = vld [vmem:[#allocation7_spill] sm:$0xff]  ;;  %v6490_v5 = vld [vmem:[#allocation13_spill] sm:$0xff]  ;;  %v6492_v4 = vld [vmem:[#allocation96_spill] sm:$0xff] }
 0x2e0   : > { %2000 = vmatpush.bf16.msra.mxu3 %v3598_v20  ;;  %1987 = vmatpush.bf16.msra.mxu2 %v3594_v8  ;;  %v3562_v20 = vor.u32 %v5443_v25, %v6481_v1  ;;  %v3538_v8 = vor.u32 %v6482_v9, %v5369_v51  ;;  %v6487_v1 = vld [vmem:[#allocation12_spill] sm:$0xff]  ;;  %v6491_v6 = vld [vmem:[#allocation9_spill] sm:$0xff]  ;;  %v6502_v13 = vld [vmem:[#allocation98_spill] sm:$0xff] }
 0x2e1   : > { %v3502_v7 = vor.u32 %v6491_v6, %v6490_v5  ;;  %v6499_v5 = vld [vmem:[#allocation86_spill] sm:$0xff] }
 0x2e2   : > { %v6496_v11 = vld [vmem:[#allocation102_spill] sm:$0xff] }
 0x2e3   : > { %1962 = vmatpush.bf16.msra.mxu0 %v3570_v19  ;;  %1975 = vmatpush.bf16.msra.mxu1 %v3574_v38  ;;  %v3542_v19 = vor.u32 %v5364_v50, %v5384_v54  ;;  %v3550_v38 = vor.u32 %v5374_v52, %v5394_v56  ;;  %v6500_v6 = vld [vmem:[#allocation90_spill] sm:$0xff] }
 0x2e4   : > { %2001 = vmatpush.bf16.msra.mxu3 %v3582_v10  ;;  %1988 = vmatpush.bf16.msra.mxu2 %v3578_v42  ;;  %v3546_v10 = vor.u32 %v5399_v57, %v5379_v53  ;;  %v3522_v42 = vor.u32 %v5349_v29, %v5328_v45  ;;  %v4078_v45 = vld [vmem:[%s6363_s9 + $0x10] sm:$0xff] (%p1783_p1)  ;;  %v4076_v29 = vld [vmem:[%s6363_s9] sm:$0xff] (%p1783_p1) }
 0x2e5   :  { %v6161_v46 = vld [vmem:[%s6365_s11] ss:$0 sm:$0xff] (%p1783_p1) }
 0x2e7   : > { %1963 = vmatpush.bf16.msra.mxu0 %v3554_v16  ;;  %1976 = vmatpush.bf16.msra.mxu1 %v3558_v43  ;;  %v3526_v16 = vor.u32 %v5323_v41, %v5344_v26  ;;  %v3534_v43 = vor.u32 %v5334_v47, %v6483_v22  ;;  %v4094_v41 = vld [vmem:[%s6364_s10 + $0x10] sm:$0xff] (%p1783_p1)  ;;  %v4093_v47 = vld [vmem:[%s6364_s10 + $0x8] sm:$0xff] (%p1783_p1)  ;;  %v4092_v26 = vld [vmem:[%s6364_s10] sm:$0xff] (%p1783_p1) }
 0x2e8   : > { %2002 = vmatpush.bf16.msra.mxu3 %v3566_v12  ;;  %1989 = vmatpush.bf16.msra.mxu2 %v3562_v20  ;;  %v3530_v12 = vor.u32 %v5359_v49, %v5339_v48  ;;  %v3506_v20 = vor.u32 %v5306_v36, %v5285_v28  ;;  %v4097_v28 = vld [vmem:[%s6364_s10 + $0x28] sm:$0xff] (%p1783_p1)  ;;  %v4095_v36 = vld [vmem:[%s6364_s10 + $0x18] sm:$0xff] (%p1783_p1) }
 0x2e9   :  { %v4077_v48 = vld [vmem:[%s6363_s9 + $0x8] sm:$0xff] (%p1783_p1) }
 0x2eb   : > { %1964 = vmatpush.bf16.msra.mxu0 %v3538_v8  ;;  %1977 = vmatpush.bf16.msra.mxu1 %v3542_v19  ;;  %v3510_v8 = vor.u32 %v6484_v23, %v5301_v35  ;;  %v3518_v19 = vor.u32 %v5290_v30, %v5311_v44  ;;  %v6562_v23 = vld [vmem:[#allocation101_spill] sm:$0xff]  ;;  %v4081_v30 = vld [vmem:[%s6363_s9 + $0x28] sm:$0xff] (%p1783_p1)  ;;  %v4080_v35 = vld [vmem:[%s6363_s9 + $0x20] sm:$0xff] (%p1783_p1) }
 0x2ec   : > { %2003 = vmatpush.bf16.msra.mxu3 %v3550_v38  ;;  %1990 = vmatpush.bf16.msra.mxu2 %v3546_v10  ;;  %v6485_v38 = vld [vmem:[#allocation16_spill] sm:$0xff]  ;;  %v4079_v44 = vld [vmem:[%s6363_s9 + $0x18] sm:$0xff] (%p1783_p1) }
 0x2ed   : > { %v3514_v0 = vor.u32 %v6485_v38, %v5295_v40  ;;  %v6486_v10 = vld [vmem:[#allocation8_spill] sm:$0xff]  ;;  %v6494_v38 = vld [vmem:[#allocation97_spill] sm:$0xff]  ;;  %v4096_v40 = vld [vmem:[%s6364_s10 + $0x20] sm:$0xff] (%p1783_p1) }
 0x2ef   : > { %1965 = vmatpush.bf16.msra.mxu0 %v3522_v42  ;;  %1978 = vmatpush.bf16.msra.mxu1 %v3526_v16  ;;  %v3490_v42 = vor.u32 %v6487_v1, %v6486_v10  ;;  %v6488_v16 = vld [vmem:[#allocation11_spill] sm:$0xff]  ;;  %v1799_v1 = vpack.c.bf16 %v6496_v11, %v6496_v11 }
 0x2f0   : > { %2004 = vmatpush.bf16.msra.mxu3 %v3534_v43  ;;  %1991 = vmatpush.bf16.msra.mxu2 %v3530_v12  ;;  %v3494_v3 = vor.u32 %v6489_v2, %v6488_v16  ;;  %v3732_v43 = vor.u32 %v5879_v59, %v5859_v37  ;;  %v6493_v12 = vld [vmem:[#allocation93_spill] sm:$0xff]  ;;  %v6497_v2 = vld [vmem:[#allocation10_spill] sm:$0xff]  ;;  %v3716_v16 = vor.u32 %v6500_v6, %v6499_v5  ;;  %v6506_v11 = vld [vmem:[#allocation87_spill] sm:$0xff] }
 0x2f1   : > { %v3736_v9 = vor.u32 %v6493_v12, %v6492_v4  ;;  %v6503_v12 = vld [vmem:[#allocation89_spill] sm:$0xff]  ;;  %v6505_v4 = vld [vmem:[#allocation91_spill] sm:$0xff] }
 0x2f2   : > { %v6513_v6 = vld [vmem:[#allocation83_spill] sm:$0xff] }
 0x2f3   : > { %1966 = vmatpush.bf16.msra.mxu0 %v3506_v20  ;;  %1979 = vmatpush.bf16.msra.mxu1 %v3510_v8  ;;  %v6495_v20 = vld [vmem:[#allocation94_spill] sm:$0xff] }
 0x2f4   : > { %2005 = vmatpush.bf16.msra.mxu3 %v3518_v19  ;;  %1992 = vmatpush.bf16.msra.mxu2 %v3514_v0  ;;  %v3744_v8 = vor.u32 %v6495_v20, %v6494_v38  ;;  %v6498_v19 = vld [vmem:[#allocation14_spill] sm:$0xff]  ;;  %v6501_v0 = vld [vmem:[#allocation95_spill] sm:$0xff]  ;;  %v6504_v38 = vld [vmem:[#allocation85_spill] sm:$0xff] }
 0x2f5   : > { %v3498_v10 = vor.u32 %v6498_v19, %v6497_v2  ;;  %v3740_v14 = vor.u32 %v6502_v13, %v6501_v0  ;;  %v3720_v20 = vor.u32 %v6504_v38, %v6503_v12  ;;  %v6509_v2 = vld [vmem:[#allocation88_spill] sm:$0xff]  ;;  %v6514_v0 = vld [vmem:[#allocation79_spill] sm:$0xff] }
 0x2f6   : > { %v6510_v19 = vld [vmem:[#allocation92_spill] sm:$0xff] }
 0x2f7   : > { %1967 = vmatpush.bf16.msra.mxu0 %v3490_v42  ;;  %1980 = vmatpush.bf16.msra.mxu1 %v3494_v3  ;;  %v3728_v42 = vor.u32 %v6506_v11, %v6505_v4  ;;  %v6507_v3 = vld [vmem:[#allocation78_spill] sm:$0xff]  ;;  %v3724_v13 = vor.u32 %v6510_v19, %v6509_v2  ;;  %v3712_v4 = vor.u32 %v6514_v0, %v6513_v6  ;;  %v6517_v12 = vld [vmem:[#allocation80_spill] sm:$0xff]  ;;  %v6522_v2 = vld [vmem:[#allocation71_spill] sm:$0xff] }
 0x2f8   : > { %2006 = vmatpush.bf16.msra.mxu3 %v3502_v7  ;;  %1993 = vmatpush.bf16.msra.mxu2 %v3498_v10  ;;  %v6508_v7 = vld [vmem:[#allocation82_spill] sm:$0xff]  ;;  %v6518_v38 = vld [vmem:[#allocation84_spill] sm:$0xff]  ;;  %v6527_v0 = vld [vmem:[#allocation65_spill] sm:$0xff] }
 0x2f9   : > { %v6515_v10 = vld [vmem:[#allocation70_spill] sm:$0xff]  ;;  %v3708_v11 = vor.u32 %v6518_v38, %v6517_v12 }
 0x2fa   : > { %1968 = vmatmul.bf16.vlgmr.msra.gmra.mxu0 %v1799_v1  ;;  %1981 = vmatmul.bf16.vlgmr.msra.gmra.mxu1 %v1799_v1  ;;  %v6531_v38 = vld [vmem:[#allocation54_spill] sm:$0xff] }
 0x2fb   : > { %2184 = vmatpush.bf16.msrb.mxu0 %v3732_v43  ;;  %2197 = vmatpush.bf16.msrb.mxu1 %v3736_v9  ;;  %v3700_v43 = vor.u32 %v6508_v7, %v6507_v3  ;;  %v6511_v9 = vld [vmem:[#allocation81_spill] sm:$0xff]  ;;  %v6521_v7 = vld [vmem:[#allocation75_spill] sm:$0xff] }
 0x2fc   : > { %2223 = vmatpush.bf16.msrb.mxu3 %v3744_v8  ;;  %2210 = vmatpush.bf16.msrb.mxu2 %v3740_v14  ;;  %v6512_v8 = vld [vmem:[#allocation77_spill] sm:$0xff]  ;;  %v3696_v19 = vor.u32 %v6522_v2, %v6521_v7 }
 0x2fd   : > { %2007 = vmatmul.bf16.vlgmr.msra.gmra.mxu3 %v1799_v1  ;;  %v3704_v5 = vor.u32 %v6512_v8, %v6511_v9  ;;  %1994 = vmatmul.bf16.vlgmr.msra.gmra.mxu2 %v1799_v1  ;;  %v6519_v3 = vld [vmem:[#allocation73_spill] sm:$0xff]  ;;  %v6523_v9 = vld [vmem:[#allocation62_spill] sm:$0xff]  ;;  %v6526_v8 = vld [vmem:[#allocation76_spill] sm:$0xff] }
 0x2fe   : > { %v6524_v1 = vld [vmem:[#allocation66_spill] sm:$0xff]  ;;  %v6535_v2 = vld [vmem:[#allocation57_spill] sm:$0xff] }
 0x2ff   : > { %2185 = vmatpush.bf16.msrb.mxu0 %v3716_v16  ;;  %2198 = vmatpush.bf16.msrb.mxu1 %v3720_v20  ;;  %v6516_v16 = vld [vmem:[#allocation74_spill] sm:$0xff]  ;;  %v6520_v20 = vld [vmem:[#allocation69_spill] sm:$0xff] }
 0x300   : > { %2224 = vmatpush.bf16.msrb.mxu3 %v3728_v42  ;;  %2211 = vmatpush.bf16.msrb.mxu2 %v3724_v13  ;;  %v3684_v14 = vor.u32 %v6516_v16, %v6515_v10  ;;  %v3688_v42 = vor.u32 %v6520_v20, %v6519_v3  ;;  %v6525_v13 = vld [vmem:[#allocation72_spill] sm:$0xff]  ;;  %v6528_v10 = vld [vmem:[#allocation61_spill] sm:$0xff]  ;;  %v6530_v16 = vld [vmem:[#allocation63_spill] sm:$0xff] }
 0x301   : > { %v3692_v6 = vor.u32 %v6526_v8, %v6525_v13  ;;  %v6532_v3 = vld [vmem:[#allocation58_spill] sm:$0xff]  ;;  %v6534_v20 = vld [vmem:[#allocation68_spill] sm:$0xff] }
 0x302   : > { %v6539_v8 = vld [vmem:[#allocation46_spill] sm:$0xff] }
 0x303   : > { %2186 = vmatpush.bf16.msrb.mxu0 %v3700_v43  ;;  %2199 = vmatpush.bf16.msrb.mxu1 %v3704_v5  ;;  %v3668_v43 = vor.u32 %v6524_v1, %v6523_v9  ;;  %v3672_v5 = vor.u32 %v6528_v10, %v6527_v0  ;;  %v6536_v9 = vld [vmem:[#allocation53_spill] sm:$0xff]  ;;  %v6538_v1 = vld [vmem:[#allocation55_spill] sm:$0xff]  ;;  %v6540_v0 = vld [vmem:[#allocation50_spill] sm:$0xff] }
 0x304   : > { %2225 = vmatpush.bf16.msrb.mxu3 %v3712_v4  ;;  %2212 = vmatpush.bf16.msrb.mxu2 %v3708_v11  ;;  %v6529_v4 = vld [vmem:[#allocation67_spill] sm:$0xff]  ;;  %v6533_v11 = vld [vmem:[#allocation64_spill] sm:$0xff] }
 0x305   : > { %v3680_v12 = vor.u32 %v6530_v16, %v6529_v4  ;;  %v3676_v7 = vor.u32 %v6534_v20, %v6533_v11  ;;  %v6542_v10 = vld [vmem:[#allocation60_spill] sm:$0xff]  ;;  %v6543_v16 = vld [vmem:[#allocation49_spill] sm:$0xff]  ;;  %v6547_v20 = vld [vmem:[#allocation38_spill] sm:$0xff] }
 0x307   : > { %2187 = vmatpush.bf16.msrb.mxu0 %v3684_v14  ;;  %2200 = vmatpush.bf16.msrb.mxu1 %v3688_v42  ;;  %v3652_v14 = vor.u32 %v6532_v3, %v6531_v38  ;;  %v3656_v42 = vor.u32 %v6536_v9, %v6535_v2  ;;  %v6544_v38 = vld [vmem:[#allocation45_spill] sm:$0xff]  ;;  %v6546_v3 = vld [vmem:[#allocation47_spill] sm:$0xff]  ;;  %v6548_v2 = vld [vmem:[#allocation42_spill] sm:$0xff] }
 0x308   : > { %2226 = vmatpush.bf16.msrb.mxu3 %v3696_v19  ;;  %2213 = vmatpush.bf16.msrb.mxu2 %v3692_v6  ;;  %v6537_v19 = vld [vmem:[#allocation59_spill] sm:$0xff]  ;;  %v6541_v6 = vld [vmem:[#allocation56_spill] sm:$0xff] }
 0x309   : > { %v3664_v13 = vor.u32 %v6538_v1, %v6537_v19  ;;  %v3660_v4 = vor.u32 %v6542_v10, %v6541_v6  ;;  %v6550_v9 = vld [vmem:[#allocation52_spill] sm:$0xff]  ;;  %v6551_v1 = vld [vmem:[#allocation41_spill] sm:$0xff] }
 0x30a   : > { %v6555_v10 = vld [vmem:[#allocation100_spill] sm:$0xff] }
 0x30b   : > { %2188 = vmatpush.bf16.msrb.mxu0 %v3668_v43  ;;  %2201 = vmatpush.bf16.msrb.mxu1 %v3672_v5  ;;  %v3636_v43 = vor.u32 %v6540_v0, %v6539_v8  ;;  %v3640_v5 = vor.u32 %v6544_v38, %v6543_v16  ;;  %v6553_v8 = vld [vmem:[#allocation43_spill] sm:$0xff]  ;;  %v2023_v16 = vpack.c.bf16 %v6555_v10, %v6555_v10 }
 0x30c   : > { %2227 = vmatpush.bf16.msrb.mxu3 %v3680_v12  ;;  %2214 = vmatpush.bf16.msrb.mxu2 %v3676_v7  ;;  %v6545_v12 = vld [vmem:[#allocation51_spill] sm:$0xff]  ;;  %v6549_v7 = vld [vmem:[#allocation48_spill] sm:$0xff] }
 0x30d   : > { %v3648_v11 = vor.u32 %v6546_v3, %v6545_v12  ;;  %v3644_v19 = vor.u32 %v6550_v9, %v6549_v7  ;;  %v6554_v0 = vld [vmem:[#allocation39_spill] sm:$0xff]  ;;  %v1798_v9 = vld [vmem:[%s1794_s27 + $0x18] sm:$0xff] }
 0x30e   : > { %v3632_v6 = vor.u32 %v6554_v0, %v6553_v8  ;;  %v1796_v12 = vld [vmem:[%s1794_s27 + $0x8] sm:$0xff] }
 0x30f   : > { %2189 = vmatpush.bf16.msrb.mxu0 %v3652_v14  ;;  %2202 = vmatpush.bf16.msrb.mxu1 %v3656_v42  ;;  %v3620_v14 = vor.u32 %v6548_v2, %v6547_v20  ;;  %v6552_v42 = vld [vmem:[#allocation37_spill] sm:$0xff] }
 0x310   : > { %2228 = vmatpush.bf16.msrb.mxu3 %v3664_v13  ;;  %2215 = vmatpush.bf16.msrb.mxu2 %v3660_v4  ;;  %v3624_v13 = vor.u32 %v6552_v42, %v6551_v1  ;;  %v6557_v4 = vld [vmem:[#allocation44_spill] sm:$0xff] }
 0x313   : > { %2190 = vmatpush.bf16.msrb.mxu0 %v3636_v43  ;;  %2203 = vmatpush.bf16.msrb.mxu1 %v3640_v5  ;;  %v6556_v43 = vld [vmem:[#allocation40_spill] sm:$0xff]  ;;  %v1795_v5 = vld [vmem:[%s1794_s27] sm:$0xff] }
 0x314   : > { %2229 = vmatpush.bf16.msrb.mxu3 %v3648_v11  ;;  %2216 = vmatpush.bf16.msrb.mxu2 %v3644_v19  ;;  %v3628_v38 = vor.u32 %v6557_v4, %v6556_v43  ;;  %v1797_v4 = vld [vmem:[%s1794_s27 + $0x10] sm:$0xff] }
 0x317   : > { %2191 = vmatpush.bf16.msrb.mxu0 %v3620_v14  ;;  %2204 = vmatpush.bf16.msrb.mxu1 %v3624_v13 }
 0x318   : > { %2230 = vmatpush.bf16.msrb.mxu3 %v3632_v6  ;;  %2217 = vmatpush.bf16.msrb.mxu2 %v3628_v38 }
 0x31a   : > { %2192 = vmatmul.bf16.vlgmr.msrb.gmra.mxu0 %v2023_v16  ;;  %2205 = vmatmul.bf16.vlgmr.msrb.gmra.mxu1 %v2023_v16 }
 0x31b   : > { %2231 = vmatmul.bf16.vlgmr.msrb.gmra.mxu3 %v2023_v16  ;;  %2218 = vmatmul.bf16.vlgmr.msrb.gmra.mxu2 %v2023_v16 }
 0x377   : > { %v1969_v3 = vpop.f32.mrf.mxu0  ;;  %v1982_v11 = vpop.f32.mrf.mxu1 }
 0x378   : > { %v2012_v20 = vadd.f32 %v1969_v3, %v1795_v5  ;;  %v2013_v2 = vadd.f32 %v1982_v11, %v1796_v12 }
 0x37a   : > { %v3745_v14 = vmul.f32 -1.442695, %v2012_v20  ;;  %v3746_v7 = vmul.f32 -1.442695, %v2013_v2 }
 0x37c   : > { %4274 = vpow2.f32 %v3745_v14 }
 0x37d   : > { %4276 = vpow2.f32 %v3746_v7 }
 0x37f   : > { %v1971_v42 = vpop.f32.mrf.mxu0  ;;  %v1984_v13 = vpop.f32.mrf.mxu1 }
 0x380   : > { %v2008_v19 = vpop.f32.mrf.mxu3  ;;  %v1995_v0 = vpop.f32.mrf.mxu2 }
 0x381   : > { %v2015_v1 = vadd.f32 %v2008_v19, %v1798_v9  ;;  %v2014_v12 = vadd.f32 %v1995_v0, %v1797_v4 }
 0x382   : > { %v4275_v6 = vpop.eup %4274 }
 0x383   : > { %v3747_v8 = vmul.f32 -1.442695, %v2015_v1  ;;  %v4277_v10 = vpop.eup %4276  ;;  %v2243_v16 = vadd.f32 1.0, %v4275_v6 }
 0x384   : > { %v2262_v43 = vadd.f32 1.0, %v4277_v10 }
 0x385   : > { %4278 = vpow2.f32 %v3747_v8  ;;  %vm2249_vm0 = vweird.f32 %v2243_v16  ;;  %v2255_v9 = vand.u32 2147483648, %v2243_v16  ;;  %v2253_v42 = vand.u32 2147483647, %v2243_v16 }
 0x386   : > { %4280 = vrcp.f32 %v2243_v16  ;;  %v2274_v1 = vand.u32 2147483648, %v2262_v43  ;;  %vm2268_vm2 = vweird.f32 %v2262_v43  ;;  %v2272_v8 = vand.u32 2147483647, %v2262_v43 }
 0x387   : > { %4282 = vrcp.f32 %v2262_v43  ;;  %v2256_v4 = vor.u32 1.1754944e-38, %v2255_v9  ;;  %vm2254_vm6 = vcmp.eq.f32.partialorder %v2253_v42, 8.507059e+37 }
 0x388   : > { %v2010_v38 = vpop.f32.mrf.mxu3  ;;  %v1997_v3 = vpop.f32.mrf.mxu2  ;;  %vm2273_vm7 = vcmp.eq.f32.partialorder %v2272_v8, 8.507059e+37 }
 0x38b   : > { %v4279_v5 = vpop.eup %4278 }
 0x38c   : > { %v6050_v11 = vadd.f32 1.0, %v4279_v5  ;;  %v4281_v20 = vpop.eup %4280 }
 0x38d   : > { %v4283_v2 = vpop.eup %4282  ;;  %v2245_v14 = vmul.f32 %v4281_v20, %v2243_v16  ;;  %vm2250_vm1 = vweird.f32 %v4281_v20  ;;  %v2019_v16 = vld [vmem:[%s6063_s30] sm:$0xff] }
 0x38e   : > { %4284 = vrcp.f32 %v6050_v11  ;;  %v2264_v7 = vmul.f32 %v4283_v2, %v2262_v43  ;;  %vm2269_vm3 = vweird.f32 %v4283_v2  ;;  %vm6055_vm4 = vmor %vm2249_vm0, %vm2250_vm1  ;;  %vm2288_vm8 = vweird.f32 %v6050_v11 }
 0x38f   : > { %4286 = vtanh.f32 %v2014_v12  ;;  %v2246_v19 = vsub.f32 1.0, %v2245_v14  ;;  %vm6059_vm5 = vmor %vm2268_vm2, %vm2269_vm3  ;;  %v2275_v12 = vor.u32 1.1754944e-38, %v2274_v1  ;;  %v2294_v22 = vand.u32 2147483648, %v6050_v11 }
 0x390   : > { %v2265_v13 = vsub.f32 1.0, %v2264_v7 }
 0x391   : > { %v2247_v0 = vmul.f32 %v4281_v20, %v2246_v19  ;;  %v2020_v19 = vld [vmem:[%s6063_s30 + $0x8] sm:$0xff]  ;;  %v2295_v5 = vor.u32 1.1754944e-38, %v2294_v22 }
 0x392   : > { %v2266_v6 = vmul.f32 %v4283_v2, %v2265_v13 }
 0x393   : > { %v2248_v3 = vadd.f32 %v4281_v20, %v2247_v0 }
 0x394   : > { %v4285_v38 = vpop.eup %4284  ;;  %v2267_v7 = vadd.f32 %v4283_v2, %v2266_v6 }
 0x395   : > { %v4287_v43 = vpop.eup %4286  ;;  %v2284_v14 = vmul.f32 %v4285_v38, %v6050_v11  ;;  %v2252_v9 = vsel %vm6055_vm4, %v4281_v20, %v2248_v3  ;;  %vm2289_vm9 = vweird.f32 %v4285_v38  ;;  %v2292_v20 = vand.u32 2147483647, %v6050_v11 }
 0x396   : > { %v2257_v0 = vsel %vm2254_vm6, %v2256_v4, %v2252_v9  ;;  %v2271_v42 = vsel %vm6059_vm5, %v4283_v2, %v2267_v7  ;;  %vm6078_vm10 = vmor %vm2288_vm8, %vm2289_vm9 }
 0x397   : > { %v2193_v13 = vpop.f32.mrf.mxu0  ;;  %v2285_v1 = vsub.f32 1.0, %v2284_v14  ;;  %v2206_v17 = vpop.f32.mrf.mxu1  ;;  %v2276_v18 = vsel %vm2273_vm7, %v2275_v12, %v2271_v42  ;;  %v2299_v21 = vmul.f32 %v4287_v43, %v2257_v0  ;;  %vm2293_vm11 = vcmp.eq.f32.partialorder %v2292_v20, 8.507059e+37 }
 0x398   : > { %v2236_v15 = vadd.f32 %v2193_v13, %v2019_v16  ;;  %v2237_v6 = vadd.f32 %v2206_v17, %v2020_v19  ;;  %v2298_v24 = vmul.f32 %v6562_v23, %v2276_v18  ;;  %v2022_v17 = vld [vmem:[%s6063_s30 + $0x18] sm:$0xff] }
 0x399   : > { %v2286_v8 = vmul.f32 %v4285_v38, %v2285_v1 }
 0x39a   : > { %v3748_v10 = vmul.f32 -1.442695, %v2236_v15  ;;  %v3749_v3 = vmul.f32 -1.442695, %v2237_v6  ;;  %v6082_v16 = vadd.f32 %v2299_v21, %v2298_v24  }
 0x39b   : > { %v2287_v4 = vadd.f32 %v4285_v38, %v2286_v8 }
 0x39c   : > { %4288 = vpow2.f32 %v3748_v10 }
 0x39d   : > { %4290 = vpow2.f32 %v3749_v3  ;;  %v2291_v18 = vsel %vm6078_vm10, %v4285_v38, %v2287_v4  ;;  %v2021_v38 = vld [vmem:[%s6063_s30 + $0x10] sm:$0xff] }
 0x39e   : > { %4292 = vtanh.f32 %v6082_v16  ;;  %v2232_v23 = vpop.f32.mrf.mxu3  ;;  %v2296_v24 = vsel %vm2293_vm11, %v2295_v5, %v2291_v18  ;;  %v2219_v21 = vpop.f32.mrf.mxu2 }
 0x39f   : > { %v2239_v15 = vadd.f32 %v2232_v23, %v2022_v17  ;;  %v2195_v11 = vpop.f32.mrf.mxu0  ;;  %v2208_v12 = vpop.f32.mrf.mxu1  ;;  %v2238_v42 = vadd.f32 %v2219_v21, %v2021_v38 }
 0x3a1   : > { %v3750_v43 = vmul.f32 -1.442695, %v2239_v15 }
 0x3a2   : > { %v4289_v14 = vpop.eup %4288 }
 0x3a3   : > { %v4291_v7 = vpop.eup %4290  ;;  %v2306_v19 = vadd.f32 1.0, %v4289_v14  ;;  %4294 = vpow2.f32 %v3750_v43 }
 0x3a4   : > { %v4293_v22 = vpop.eup %4292  ;;  %v2325_v9 = vadd.f32 1.0, %v4291_v7 }
 0x3a5   : > { %v6089_v43 = vmul.f32 %v4293_v22, %v2296_v24   ;;  %4296 = vrcp.f32 %v2306_v19  ;;  %v2318_v5 = vand.u32 2147483648, %v2306_v19  ;;  %v2316_v15 = vand.u32 2147483647, %v2306_v19 }
 0x3a6   : > { %4298 = vrcp.f32 %v2325_v9  ;;  %v2234_v13 = vpop.f32.mrf.mxu3  ;;  %v2221_v8 = vpop.f32.mrf.mxu2  ;;  %v2337_v23 = vand.u32 2147483648, %v2325_v9  ;;  %v2335_v12 = vand.u32 2147483647, %v2325_v9  ;;  %vm2312_vm14 = vweird.f32 %v2306_v19 }
 0x3a7   : > { %v2366_v1 = vpack.c.bf16 %v6089_v43, %v6089_v43  ;;  %vm2331_vm15 = vweird.f32 %v2325_v9  ;;  %v2319_v22 = vor.u32 1.1754944e-38, %v2318_v5  ;;  %vm2317_vm2 = vcmp.eq.f32.partialorder %v2316_v15, 8.507059e+37  ;;  %v4082_v43 = vld [vmem:[%s6363_s9 + $0x30] sm:$0xff] (%p1783_p1) }
 0x3a8   : > { %v2338_v13 = vor.u32 1.1754944e-38, %v2337_v23  ;;  %vm2336_vm3 = vcmp.eq.f32.partialorder %v2335_v12, 8.507059e+37 }
 0x3a9   : > { %v4295_v0 = vpop.eup %4294  ;;  %2369 = vst [vmem:[%s2368_s14] sm:$0xf] %v2366_v1 }
 0x3aa   : > { %v2345_v6 = vadd.f32 1.0, %v4295_v0 }
 0x3ab   : > { %v4297_v10 = vpop.eup %4296 }
 0x3ac   : > { %v4299_v20 = vpop.eup %4298  ;;  %v2308_v3 = vmul.f32 %v4297_v10, %v2306_v19  ;;  %4300 = vrcp.f32 %v2345_v6  ;;  %vm2313_vm12 = vweird.f32 %v4297_v10  ;;  %vm2351_vm5 = vweird.f32 %v2345_v6 }
 0x3ad   : > { %v2327_v4 = vmul.f32 %v4299_v20, %v2325_v9  ;;  %4302 = vtanh.f32 %v2238_v42  ;;  %vm2332_vm13 = vweird.f32 %v4299_v20  ;;  %vm2314_vm0 = vmor %vm2312_vm14, %vm2313_vm12  ;;  %v2355_v5 = vand.u32 2147483647, %v2345_v6 }
 0x3ae   : > { %v2309_v2 = vsub.f32 1.0, %v2308_v3  ;;  %vm2333_vm1 = vmor %vm2331_vm15, %vm2332_vm13 }
 0x3af   : > { %v2328_v17 = vsub.f32 1.0, %v2327_v4  ;;  %vm2356_vm7 = vcmp.eq.f32.partialorder %v2355_v5, 8.507059e+37 }
 0x3b0   : > { %v2310_v18 = vmul.f32 %v4297_v10, %v2309_v2  ;;  %v4068_v51 = vld [vmem:[#allocation5] sm:$0xff] (%p1783_p1)  ;;  %v4069_v56 = vld [vmem:[#allocation5 + $0x8] sm:$0xff] (%p1783_p1)  ;;  %v4070_v39 = vld [vmem:[#allocation5 + $0x10] sm:$0xff] (%p1783_p1) }
 0x3b1   : > { %v2329_v11 = vmul.f32 %v4299_v20, %v2328_v17  ;;  %v6565_v17 = vld [vmem:[#allocation99_spill] sm:$0xff]  ;;  %v4073_v57 = vld [vmem:[#allocation5 + $0x28] sm:$0xff] (%p1783_p1)  ;;  %v4074_v25 = vld [vmem:[#allocation5 + $0x30] sm:$0xff] (%p1783_p1) }
 0x3b2   : > { %v4301_v14 = vpop.eup %4300  ;;  %v2311_v24 = vadd.f32 %v4297_v10, %v2310_v18  ;;  %v2357_v18 = vand.u32 2147483648, %v2345_v6  ;;  %v4072_v52 = vld [vmem:[#allocation5 + $0x20] sm:$0xff] (%p1783_p1)  ;;  %v4071_v32 = vld [vmem:[#allocation5 + $0x18] sm:$0xff] (%p1783_p1) }
 0x3b3   : > { %v4303_v21 = vpop.eup %4302  ;;  %v2347_v7 = vmul.f32 %v4301_v14, %v2345_v6  ;;  %v2330_v38 = vadd.f32 %v4299_v20, %v2329_v11  ;;  %vm2352_vm4 = vweird.f32 %v4301_v14  ;;  %v4099_v6 = vld [vmem:[%s6364_s10 + $0x38] sm:$0xff] (%p1783_p1)  ;;  %v4075_v33 = vld [vmem:[#allocation5 + $0x38] sm:$0xff] (%p1783_p1) }
 0x3b4   : > { %v2315_v1 = vsel %vm2314_vm0, %v4297_v10, %v2311_v24  ;;  %vm2353_vm6 = vmor %vm2351_vm5, %vm2352_vm4  ;;  %v2358_v23 = vor.u32 1.1754944e-38, %v2357_v18  ;;  %2534 = vmatpush.bf16.msra.mxu0 (%p1783_p1), %v4099_v6  ;;  %4208 = vmatpush.bf16.msra.mxu2 (%p1783_p1), %v4099_v6  ;;  %v4098_v24 = vld [vmem:[%s6364_s10 + $0x30] sm:$0xff] (%p1783_p1) }
 0x3b5   : > { %v2348_v0 = vsub.f32 1.0, %v2347_v7  ;;  %v2320_v42 = vsel %vm2317_vm2, %v2319_v22, %v2315_v1  ;;  %v2334_v8 = vsel %vm2333_vm1, %v4299_v20, %v2330_v38 }
 0x3b6   : > { %v2339_v3 = vsel %vm2336_vm3, %v2338_v13, %v2334_v8  ;;  %v2362_v4 = vmul.f32 %v4303_v21, %v2320_v42 }
 0x3b7   : > { %v2349_v2 = vmul.f32 %v4301_v14, %v2348_v0  ;;  %v2361_v19 = vmul.f32 %v6565_v17, %v2339_v3 }
 0x3b8   :  { %2535 = vmatpush.bf16.msra.mxu0 (%p1783_p1), %v4098_v24  ;;  %4209 = vmatpush.bf16.msra.mxu2 (%p1783_p1), %v4098_v24 }
 0x3b9   : > { %v2363_v42 = vadd.f32 %v2362_v4, %v2361_v19   ;;  %v2350_v9 = vadd.f32 %v4301_v14, %v2349_v2 }
 0x3bb   : > { %4304 = vtanh.f32 %v2363_v42  ;;  %v2354_v10 = vsel %vm2353_vm6, %v4301_v14, %v2350_v9  ;;  %v4083_v14 = vld [vmem:[%s6363_s9 + $0x38] sm:$0xff] (%p1783_p1) }
 0x3bc   : > { %v2359_v15 = vsel %vm2356_vm7, %v2358_v23, %v2354_v10  ;;  %2679 = vmatpush.bf16.msra.mxu1 (%p1783_p1), %v4083_v14  ;;  %4216 = vmatpush.bf16.msra.mxu3 (%p1783_p1), %v4083_v14 }
 0x3bd   :  { %2536 = vmatpush.bf16.msra.mxu0 (%p1783_p1), %v4097_v28  ;;  %4210 = vmatpush.bf16.msra.mxu2 (%p1783_p1), %v4097_v28 }
 0x3c0   :  { %2680 = vmatpush.bf16.msra.mxu1 (%p1783_p1), %v4082_v43  ;;  %4217 = vmatpush.bf16.msra.mxu3 (%p1783_p1), %v4082_v43 }
 0x3c1   : > { %v4305_v20 = vpop.eup %4304  ;;  %2537 = vmatpush.bf16.msra.mxu0 (%p1783_p1), %v4096_v40  ;;  %4211 = vmatpush.bf16.msra.mxu2 (%p1783_p1), %v4096_v40 }
 0x3c2   : > { %v2365_v12 = vmul.f32 %v4305_v20, %v2359_v15   ;;  %1785 = sbr.rel (!%p1783_p1) target bundleno = 728 (0x2d8), region = 104 }
 0x3c4   : > { %v2370_v11 = vpack.c.bf16 %v2365_v12, %v2365_v12  ;;  %2681 = vmatpush.bf16.msra.mxu1 (%p1783_p1), %v4081_v30  ;;  %4218 = vmatpush.bf16.msra.mxu3 (%p1783_p1), %v4081_v30 }
 0x3c5   :  { %2538 = vmatpush.bf16.msra.mxu0 (%p1783_p1), %v4095_v36  ;;  %4212 = vmatpush.bf16.msra.mxu2 (%p1783_p1), %v4095_v36 }
 0x3c6   : > { %2373 = vst [vmem:[%s2372_s16] sm:$0xf] %v2370_v11 }
 0x3c8   :  { %2682 = vmatpush.bf16.msra.mxu1 %v4080_v35  ;;  %4219 = vmatpush.bf16.msra.mxu3 %v4080_v35 }
 0x3c9   :  { %2539 = vmatpush.bf16.msra.mxu0 %v4094_v41  ;;  %4213 = vmatpush.bf16.msra.mxu2 %v4094_v41 }
 0x3cc   :  { %2683 = vmatpush.bf16.msra.mxu1 %v4079_v44  ;;  %4220 = vmatpush.bf16.msra.mxu3 %v4079_v44 }
 0x3cd   :  { %2540 = vmatpush.bf16.msra.mxu0 %v4093_v47  ;;  %4214 = vmatpush.bf16.msra.mxu2 %v4093_v47  ;;  %v4084_v49 = vld [vmem:[#allocation6] sm:$0xff]  ;;  %v4085_v53 = vld [vmem:[#allocation6 + $0x8] sm:$0xff]  ;;  %v4086_v61 = vld [vmem:[#allocation6 + $0x10] sm:$0xff] }
 0x3ce   :  { %v4088_v50 = vld [vmem:[#allocation6 + $0x20] sm:$0xff]  ;;  %v4089_v54 = vld [vmem:[#allocation6 + $0x28] sm:$0xff]  ;;  %v4090_v62 = vld [vmem:[#allocation6 + $0x30] sm:$0xff] }
 0x3cf   :  { %v4087_v27 = vld [vmem:[#allocation6 + $0x18] sm:$0xff] }
 0x3d0   :  { %2684 = vmatpush.bf16.msra.mxu1 %v4078_v45  ;;  %4221 = vmatpush.bf16.msra.mxu3 %v4078_v45  ;;  %v4091_v31 = vld [vmem:[#allocation6 + $0x38] sm:$0xff] }
 0x3d1   :  { %2541 = vmatpush.bf16.msra.mxu0 %v4092_v26  ;;  %4215 = vmatpush.bf16.msra.mxu2 %v4092_v26 }
 0x3d4   :  { %2685 = vmatpush.bf16.msra.mxu1 %v4077_v48  ;;  %4222 = vmatpush.bf16.msra.mxu3 %v4077_v48 }
 0x3d5   :  { %2542 = vmatmul.bf16.vlgmr.msra.gmra.mxu0 %v4084_v49  ;;  %2562 = vmatmul.bf16.vlgmr.msra.gmra.mxu2 %v4088_v50 }
 0x3d8   :  { %2686 = vmatpush.bf16.msra.mxu1 %v4076_v29  ;;  %4223 = vmatpush.bf16.msra.mxu3 %v4076_v29 }
 0x3db   :  { %2687 = vmatmul.bf16.vlgmr.msra.gmra.mxu1 %v4068_v51  ;;  %2707 = vmatmul.bf16.vlgmr.msra.gmra.mxu3 %v4072_v52 }
 0x3e5   :  { %2547 = vmatmul.bf16.gmra.mxu0 %v4085_v53  ;;  %2567 = vmatmul.bf16.gmra.mxu2 %v4089_v54 }
 0x3eb   :  { %2692 = vmatmul.bf16.gmra.mxu1 %v4069_v56  ;;  %2712 = vmatmul.bf16.gmra.mxu3 %v4073_v57 }
 0x3f5   :  { %2552 = vmatmul.bf16.gmra.mxu0 %v4086_v61  ;;  %2572 = vmatmul.bf16.gmra.mxu2 %v4090_v62 }
 0x3fb   :  { %2697 = vmatmul.bf16.gmra.mxu1 %v4070_v39  ;;  %2717 = vmatmul.bf16.gmra.mxu3 %v4074_v25 }
 0x405   :  { %2557 = vmatmul.bf16.gmra.mxu0 %v4087_v27  ;;  %2577 = vmatmul.bf16.gmra.mxu2 %v4091_v31 }
 0x40b   :  { %2702 = vmatmul.bf16.gmra.mxu1 %v4071_v32  ;;  %2722 = vmatmul.bf16.gmra.mxu3 %v4075_v33 }
 0x452   :  { %v2543_v55 = vpop.f32.mrf.mxu0 }
 0x458   :  { %v2688_v63 = vpop.f32.mrf.mxu1  ;;  %v2563_v58 = vpop.f32.mrf.mxu2 }
 0x459   :  { %v2689_v60 = vadd.f32 %v2688_v63, %v2543_v55 }
 0x45a   :  { %v2545_v16 = vpop.f32.mrf.mxu0 }
 0x45b   :  { %v6164_v34 = vadd.f32 %v6161_v46, %v2689_v60 }
 0x45d   :  { %2748 = vmax.xlane.f32.xlu0 %v6164_v34 }
 0x45e   :  { %v2708_v37 = vpop.f32.mrf.mxu3 }
 0x45f   :  { %v2709_v59 = vadd.f32 %v2708_v37, %v2563_v58 }
 0x460   :  { %v2690_v12 = vpop.f32.mrf.mxu1  ;;  %v2565_v38 = vpop.f32.mrf.mxu2 }
 0x461   :  { %v2691_v21 = vadd.f32 %v2690_v12, %v2545_v16  ;;  %v6168_v7 = vadd.f32 %v6161_v46, %v2709_v59 }
 0x462   :  { %v2548_v0 = vpop.f32.mrf.mxu0 }
 0x463   :  { %2764 = vmax.xlane.f32.xlu2 %v6168_v7  ;;  %v6172_v22 = vadd.f32 %v6161_v46, %v2691_v21 }
 0x465   :  { %2750 = vmax.xlane.f32.xlu0 %v6172_v22 }
 0x466   :  { %v2710_v13 = vpop.f32.mrf.mxu3 }
 0x467   :  { %v2711_v1 = vadd.f32 %v2710_v13, %v2565_v38 }
 0x468   :  { %v2693_v42 = vpop.f32.mrf.mxu1  ;;  %v2568_v2 = vpop.f32.mrf.mxu2 }
 0x469   :  { %v2694_v8 = vadd.f32 %v2693_v42, %v2548_v0  ;;  %v6179_v4 = vadd.f32 %v6161_v46, %v2711_v1 }
 0x46a   :  { %v2550_v9 = vpop.f32.mrf.mxu0 }
 0x46b   :  { %v6176_v3 = vadd.f32 %v6161_v46, %v2694_v8 }
 0x46d   :  { %2752 = vmax.xlane.f32.xlu1 %v6176_v3  ;;  %2766 = vmax.xlane.f32.xlu0 %v6179_v4 }
 0x46e   :  { %v2713_v17 = vpop.f32.mrf.mxu3 }
 0x46f   :  { %v2714_v19 = vadd.f32 %v2713_v17, %v2568_v2 }
 0x470   :  { %v2695_v18 = vpop.f32.mrf.mxu1  ;;  %v2570_v10 = vpop.f32.mrf.mxu2 }
 0x471   :  { %v6184_v5 = vadd.f32 %v6161_v46, %v2714_v19  ;;  %v2696_v20 = vadd.f32 %v2695_v18, %v2550_v9 }
 0x472   :  { %v2553_v11 = vpop.f32.mrf.mxu0 }
 0x473   :  { %v6192_v24 = vadd.f32 %v6161_v46, %v2696_v20 }
 0x475   :  { %2768 = vmax.xlane.f32.xlu1 %v6184_v5 }
 0x476   :  { %v2715_v23 = vpop.f32.mrf.mxu3 }
 0x477   :  { %v2716_v15 = vadd.f32 %v2715_v23, %v2570_v10 }
 0x478   :  { %v2698_v6 = vpop.f32.mrf.mxu1  ;;  %v2573_v28 = vpop.f32.mrf.mxu2 }
 0x479   :  { %v6188_v14 = vadd.f32 %v6161_v46, %v2716_v15  ;;  %v2699_v43 = vadd.f32 %v2698_v6, %v2553_v11 }
 0x47a   :  { %v2555_v35 = vpop.f32.mrf.mxu0 }
 0x47b   :  { %2770 = vmax.xlane.f32.xlu2 %v6188_v14  ;;  %v6196_v44 = vadd.f32 %v6161_v46, %v2699_v43 }
 0x47d   :  { %2754 = vmax.xlane.f32.xlu1 %v6192_v24 }
 0x47e   :  { %v2718_v30 = vpop.f32.mrf.mxu3 }
 0x47f   :  { %v2719_v40 = vadd.f32 %v2718_v30, %v2573_v28 }
 0x480   :  { %v2700_v36 = vpop.f32.mrf.mxu1  ;;  %v2575_v47 = vpop.f32.mrf.mxu2 }
 0x481   :  { %v6199_v41 = vadd.f32 %v6161_v46, %v2719_v40  ;;  %v2701_v45 = vadd.f32 %v2700_v36, %v2555_v35 }
 0x482   :  { %v2558_v26 = vpop.f32.mrf.mxu0 }
 0x483   :  { %2756 = vmax.xlane.f32.xlu2 %v6196_v44  ;;  %2772 = vmax.xlane.f32.xlu0 %v6199_v41  ;;  %v6204_v50 = vadd.f32 %v6161_v46, %v2701_v45 }
 0x486   :  { %v2720_v48 = vpop.f32.mrf.mxu3 }
 0x487   :  { %v2721_v31 = vadd.f32 %v2720_v48, %v2575_v47 }
 0x488   :  { %v2703_v29 = vpop.f32.mrf.mxu1  ;;  %v2578_v52 = vpop.f32.mrf.mxu2 }
 0x489   :  { %v2704_v49 = vadd.f32 %v2703_v29, %v2558_v26  ;;  %v6224_v55 = vadd.f32 %v6161_v46, %v2721_v31 }
 0x48a   :  { %v2560_v56 = vpop.f32.mrf.mxu0 }
 0x48b   :  { %2758 = vmax.xlane.f32.xlu2 %v6204_v50  ;;  %v6208_v51 = vadd.f32 %v6161_v46, %v2704_v49 }
 0x48d   :  { %2760 = vmax.xlane.f32.xlu0 %v6208_v51 }
 0x48e   :  { %v2723_v53 = vpop.f32.mrf.mxu3 }
 0x48f   :  { %v2724_v54 = vadd.f32 %v2723_v53, %v2578_v52 }
 0x490   :  { %v2705_v57 = vpop.f32.mrf.mxu1  ;;  %v2580_v25 = vpop.f32.mrf.mxu2 }
 0x491   :  { %v2706_v61 = vadd.f32 %v2705_v57, %v2560_v56  ;;  %v6212_v62 = vadd.f32 %v6161_v46, %v2724_v54 }
 0x493   :  { %2776 = vmax.xlane.f32.xlu2 %v6212_v62  ;;  %v6216_v39 = vadd.f32 %v6161_v46, %v2706_v61 }
 0x495   :  { %2762 = vmax.xlane.f32.xlu1 %v6216_v39 }
 0x496   :  { %v2725_v27 = vpop.f32.mrf.mxu3 }
 0x497   :  { %v2726_v32 = vadd.f32 %v2725_v27, %v2580_v25 }
 0x499   :  { %v6220_v33 = vadd.f32 %v6161_v46, %v2726_v32 }
 0x49b   :  { %2778 = vmax.xlane.f32.xlu0 %v6220_v33 }
 0x49d   :  { %2774 = vmax.xlane.f32.xlu1 %v6224_v55 }
 0x4d0   :  { %v2749_v63 = vpop.xlane.xlu0 %2748 }
 0x4d1   :  { %v6228_v60 = vsub.f32 %v6164_v34, %v2749_v63 }
 0x4d3   :  { %v2796_v58 = vmul.f32 1.442695, %v6228_v60 }
 0x4d5   :  { %4307 = vpow2.f32 %v2796_v58 }
 0x4d6   :  { %v2765_v37 = vpop.xlane.xlu2 %2764 }
 0x4d7   :  { %v6232_v59 = vsub.f32 %v6168_v7, %v2765_v37 }
 0x4d8   :  { %v2751_v16 = vpop.xlane.xlu0 %2750 }
 0x4d9   :  { %v2812_v12 = vmul.f32 1.442695, %v6232_v59  ;;  %v6236_v21 = vsub.f32 %v6172_v22, %v2751_v16 }
 0x4db   :  { %v4308_v46 = vpop.eup %4307  ;;  %4309 = vpow2.f32 %v2812_v12  ;;  %v2798_v38 = vmul.f32 1.442695, %v6236_v21 }
 0x4dc   :  { %2828 = vadd.xlane.f32.xlu1 %v4308_v46 }
 0x4dd   :  { %4311 = vpow2.f32 %v2798_v38 }
 0x4e0   :  { %v2753_v34 = vpop.xlane.xlu1 %2752  ;;  %v2767_v13 = vpop.xlane.xlu0 %2766 }
 0x4e1   :  { %v4310_v1 = vpop.eup %4309  ;;  %v6240_v0 = vsub.f32 %v6176_v3, %v2753_v34  ;;  %v6243_v7 = vsub.f32 %v6179_v4, %v2767_v13 }
 0x4e2   :  { %2844 = vadd.xlane.f32.xlu0 %v4310_v1 }
 0x4e3   :  { %v4312_v42 = vpop.eup %4311  ;;  %v2800_v22 = vmul.f32 1.442695, %v6240_v0  ;;  %v2814_v8 = vmul.f32 1.442695, %v6243_v7 }
 0x4e4   :  { %2830 = vadd.xlane.f32.xlu2 %v4312_v42 }
 0x4e5   :  { %4313 = vpow2.f32 %v2800_v22 }
 0x4e6   :  { %4315 = vpow2.f32 %v2814_v8 }
 0x4e8   :  { %v2769_v2 = vpop.xlane.xlu1 %2768 }
 0x4e9   :  { %v6248_v17 = vsub.f32 %v6184_v5, %v2769_v2 }
 0x4eb   :  { %v4314_v19 = vpop.eup %4313  ;;  %v2816_v3 = vmul.f32 1.442695, %v6248_v17 }
 0x4ec   :  { %v4316_v9 = vpop.eup %4315  ;;  %2832 = vadd.xlane.f32.xlu0 %v4314_v19 }
 0x4ed   :  { %4317 = vpow2.f32 %v2816_v3  ;;  %2846 = vadd.xlane.f32.xlu1 %v4316_v9 }
 0x4ee   :  { %v2771_v4 = vpop.xlane.xlu2 %2770 }
 0x4ef   :  { %v6252_v18 = vsub.f32 %v6188_v14, %v2771_v4 }
 0x4f0   :  { %v2755_v10 = vpop.xlane.xlu1 %2754 }
 0x4f1   :  { %v2818_v23 = vmul.f32 1.442695, %v6252_v18  ;;  %v6256_v20 = vsub.f32 %v6192_v24, %v2755_v10 }
 0x4f3   :  { %v4318_v15 = vpop.eup %4317  ;;  %4319 = vpow2.f32 %v2818_v23  ;;  %v2802_v5 = vmul.f32 1.442695, %v6256_v20 }
 0x4f4   :  { %2848 = vadd.xlane.f32.xlu2 %v4318_v15 }
 0x4f5   :  { %4321 = vpow2.f32 %v2802_v5 }
 0x4f6   :  { %v2757_v11 = vpop.xlane.xlu2 %2756  ;;  %v2773_v6 = vpop.xlane.xlu0 %2772 }
 0x4f7   :  { %v6260_v43 = vsub.f32 %v6196_v44, %v2757_v11  ;;  %v6263_v14 = vsub.f32 %v6199_v41, %v2773_v6 }
 0x4f9   :  { %v4320_v28 = vpop.eup %4319  ;;  %v2804_v30 = vmul.f32 1.442695, %v6260_v43  ;;  %v2820_v24 = vmul.f32 1.442695, %v6263_v14 }
 0x4fa   :  { %2850 = vadd.xlane.f32.xlu0 %v4320_v28 }
 0x4fb   :  { %v4322_v40 = vpop.eup %4321  ;;  %4323 = vpow2.f32 %v2804_v30 }
 0x4fc   :  { %2834 = vadd.xlane.f32.xlu1 %v4322_v40  ;;  %4325 = vpow2.f32 %v2820_v24 }
 0x4fe   :  { %v2759_v35 = vpop.xlane.xlu2 %2758 }
 0x4ff   :  { %v6268_v36 = vsub.f32 %v6204_v50, %v2759_v35 }
 0x500   :  { %v2761_v45 = vpop.xlane.xlu0 %2760 }
 0x501   :  { %v4324_v44 = vpop.eup %4323  ;;  %v2806_v47 = vmul.f32 1.442695, %v6268_v36  ;;  %v6272_v41 = vsub.f32 %v6208_v51, %v2761_v45 }
 0x502   :  { %2836 = vadd.xlane.f32.xlu2 %v4324_v44  ;;  %v4326_v48 = vpop.eup %4325 }
 0x503   :  { %4327 = vpow2.f32 %v2806_v47  ;;  %v2808_v26 = vmul.f32 1.442695, %v6272_v41 }
 0x504   :  { %2852 = vadd.xlane.f32.xlu1 %v4326_v48 }
 0x505   :  { %4329 = vpow2.f32 %v2808_v26 }
 0x506   :  { %v2777_v29 = vpop.xlane.xlu2 %2776 }
 0x507   :  { %v6276_v49 = vsub.f32 %v6212_v62, %v2777_v29 }
 0x508   :  { %v2763_v50 = vpop.xlane.xlu1 %2762 }
 0x509   :  { %v4328_v52 = vpop.eup %4327  ;;  %v2824_v53 = vmul.f32 1.442695, %v6276_v49  ;;  %v6280_v54 = vsub.f32 %v6216_v39, %v2763_v50 }
 0x50a   :  { %2838 = vadd.xlane.f32.xlu0 %v4328_v52 }
 0x50b   :  { %v4330_v51 = vpop.eup %4329  ;;  %4331 = vpow2.f32 %v2824_v53  ;;  %v2810_v56 = vmul.f32 1.442695, %v6280_v54 }
 0x50c   :  { %2840 = vadd.xlane.f32.xlu1 %v4330_v51 }
 0x50d   :  { %4333 = vpow2.f32 %v2810_v56 }
 0x50e   :  { %v2779_v57 = vpop.xlane.xlu0 %2778 }
 0x50f   :  { %v6284_v61 = vsub.f32 %v6220_v33, %v2779_v57 }
 0x510   :  { %v2775_v62 = vpop.xlane.xlu1 %2774 }
 0x511   :  { %v4332_v25 = vpop.eup %4331  ;;  %v2826_v27 = vmul.f32 1.442695, %v6284_v61  ;;  %v6288_v31 = vsub.f32 %v6224_v55, %v2775_v62 }
 0x512   :  { %2856 = vadd.xlane.f32.xlu0 %v4332_v25 }
 0x513   :  { %v4334_v39 = vpop.eup %4333  ;;  %4335 = vpow2.f32 %v2826_v27  ;;  %v2822_v32 = vmul.f32 1.442695, %v6288_v31 }
 0x514   :  { %2842 = vadd.xlane.f32.xlu2 %v4334_v39 }
 0x515   :  { %4337 = vpow2.f32 %v2822_v32 }
 0x519   :  { %v4336_v63 = vpop.eup %4335 }
 0x51a   :  { %2858 = vadd.xlane.f32.xlu1 %v4336_v63 }
 0x51b   :  { %v4338_v58 = vpop.eup %4337 }
 0x51c   :  { %2854 = vadd.xlane.f32.xlu2 %v4338_v58 }
 0x54f   :  { %v2829_v33 = vpop.xlane.xlu1 %2828 }
 0x550   :  { %4339 = vlog2.f32 %v2829_v33 }
 0x555   :  { %v2845_v37 = vpop.xlane.xlu0 %2844 }
 0x556   :  { %v4340_v16 = vpop.eup %4339  ;;  %4341 = vlog2.f32 %v2845_v37 }
 0x557   :  { %v2861_v12 = vmul.f32 0.6931472, %v4340_v16  ;;  %v2831_v46 = vpop.xlane.xlu2 %2830 }
 0x558   :  { %4343 = vlog2.f32 %v2831_v46 }
 0x559   :  { %v2892_v55 = vsub.f32 %v6228_v60, %v2861_v12 }
 0x55b   :  { %2908 = vst [vmem:[%s6366_s12] sm:$0xff] %v2892_v55 }
 0x55c   :  { %v4342_v38 = vpop.eup %4341 }
 0x55d   :  { %v2877_v34 = vmul.f32 0.6931472, %v4342_v38 }
 0x55e   :  { %v4344_v13 = vpop.eup %4343 }
 0x55f   :  { %v2900_v1 = vsub.f32 %v6232_v59, %v2877_v34  ;;  %v2863_v42 = vmul.f32 0.6931472, %v4344_v13  ;;  %v2833_v22 = vpop.xlane.xlu0 %2832 }
 0x560   :  { %v2847_v8 = vpop.xlane.xlu1 %2846  ;;  %4345 = vlog2.f32 %v2833_v22 }
 0x561   :  { %2916 = vst [vmem:[%s6366_s12 + $0x40] sm:$0xff] %v2900_v1  ;;  %v2893_v2 = vsub.f32 %v6236_v21, %v2863_v42  ;;  %4347 = vlog2.f32 %v2847_v8 }
 0x563   :  { %2909 = vst [vmem:[%s6366_s12 + $0x8] sm:$0xff] %v2893_v2 }
 0x566   :  { %v4346_v60 = vpop.eup %4345 }
 0x567   :  { %v4348_v19 = vpop.eup %4347  ;;  %v2865_v3 = vmul.f32 0.6931472, %v4346_v60  ;;  %v2849_v9 = vpop.xlane.xlu2 %2848 }
 0x568   :  { %v2879_v59 = vmul.f32 0.6931472, %v4348_v19  ;;  %4349 = vlog2.f32 %v2849_v9 }
 0x569   :  { %v2894_v4 = vsub.f32 %v6240_v0, %v2865_v3 }
 0x56a   :  { %v2901_v10 = vsub.f32 %v6243_v7, %v2879_v59 }
 0x56b   :  { %2910 = vst [vmem:[%s6366_s12 + $0x10] sm:$0xff] %v2894_v4 }
 0x56c   :  { %2917 = vst [vmem:[%s6366_s12 + $0x48] sm:$0xff] %v2901_v10 }
 0x56d   :  { %v2851_v21 = vpop.xlane.xlu0 %2850 }
 0x56e   :  { %v4350_v23 = vpop.eup %4349  ;;  %4351 = vlog2.f32 %v2851_v21 }
 0x56f   :  { %v2881_v15 = vmul.f32 0.6931472, %v4350_v23  ;;  %v2835_v5 = vpop.xlane.xlu1 %2834 }
 0x570   :  { %4353 = vlog2.f32 %v2835_v5 }
 0x571   :  { %v2902_v11 = vsub.f32 %v6248_v17, %v2881_v15 }
 0x573   :  { %2918 = vst [vmem:[%s6366_s12 + $0x50] sm:$0xff] %v2902_v11 }
 0x574   :  { %v4352_v0 = vpop.eup %4351 }
 0x575   :  { %v2883_v7 = vmul.f32 0.6931472, %v4352_v0  ;;  %v2837_v6 = vpop.xlane.xlu2 %2836 }
 0x576   :  { %v4354_v28 = vpop.eup %4353  ;;  %4355 = vlog2.f32 %v2837_v6 }
 0x577   :  { %v2903_v30 = vsub.f32 %v6252_v18, %v2883_v7  ;;  %v2867_v24 = vmul.f32 0.6931472, %v4354_v28  ;;  %v2853_v40 = vpop.xlane.xlu1 %2852 }
 0x578   :  { %4357 = vlog2.f32 %v2853_v40 }
 0x579   :  { %2919 = vst [vmem:[%s6366_s12 + $0x58] sm:$0xff] %v2903_v30  ;;  %v2895_v17 = vsub.f32 %v6256_v20, %v2867_v24 }
 0x57b   :  { %2911 = vst [vmem:[%s6366_s12 + $0x18] sm:$0xff] %v2895_v17 }
 0x57c   :  { %v4356_v35 = vpop.eup %4355 }
 0x57d   :  { %v2869_v45 = vmul.f32 0.6931472, %v4356_v35  ;;  %v2839_v44 = vpop.xlane.xlu0 %2838 }
 0x57e   :  { %v4358_v47 = vpop.eup %4357  ;;  %4359 = vlog2.f32 %v2839_v44 }
 0x57f   :  { %v2896_v18 = vsub.f32 %v6260_v43, %v2869_v45  ;;  %v2885_v48 = vmul.f32 0.6931472, %v4358_v47  ;;  %v2841_v26 = vpop.xlane.xlu1 %2840 }
 0x580   :  { %4361 = vlog2.f32 %v2841_v26 }
 0x581   :  { %2912 = vst [vmem:[%s6366_s12 + $0x20] sm:$0xff] %v2896_v18  ;;  %v2904_v20 = vsub.f32 %v6263_v14, %v2885_v48 }
 0x583   :  { %2920 = vst [vmem:[%s6366_s12 + $0x60] sm:$0xff] %v2904_v20 }
 0x584   :  { %v4360_v29 = vpop.eup %4359 }
 0x585   :  { %v2871_v50 = vmul.f32 0.6931472, %v4360_v29  ;;  %v2857_v52 = vpop.xlane.xlu0 %2856 }
 0x586   :  { %v4362_v53 = vpop.eup %4361  ;;  %4363 = vlog2.f32 %v2857_v52 }
 0x587   :  { %v2897_v43 = vsub.f32 %v6268_v36, %v2871_v50  ;;  %v2873_v51 = vmul.f32 0.6931472, %v4362_v53  ;;  %v2843_v56 = vpop.xlane.xlu2 %2842 }
 0x588   :  { %4365 = vlog2.f32 %v2843_v56 }
 0x589   :  { %2913 = vst [vmem:[%s6366_s12 + $0x28] sm:$0xff] %v2897_v43  ;;  %v2898_v14 = vsub.f32 %v6272_v41, %v2873_v51 }
 0x58b   :  { %2914 = vst [vmem:[%s6366_s12 + $0x30] sm:$0xff] %v2898_v14 }
 0x58c   :  { %v4364_v57 = vpop.eup %4363 }
 0x58d   :  { %v2889_v62 = vmul.f32 0.6931472, %v4364_v57  ;;  %v2859_v25 = vpop.xlane.xlu1 %2858 }
 0x58e   :  { %v4366_v27 = vpop.eup %4365  ;;  %4367 = vlog2.f32 %v2859_v25 }
 0x58f   :  { %v2906_v36 = vsub.f32 %v6276_v49, %v2889_v62  ;;  %v2875_v39 = vmul.f32 0.6931472, %v4366_v27  ;;  %v2855_v32 = vpop.xlane.xlu2 %2854 }
 0x590   :  { %4369 = vlog2.f32 %v2855_v32 }
 0x591   :  { %2922 = vst [vmem:[%s6366_s12 + $0x70] sm:$0xff] %v2906_v36  ;;  %v2899_v41 = vsub.f32 %v6280_v54, %v2875_v39 }
 0x593   :  { %2915 = vst [vmem:[%s6366_s12 + $0x38] sm:$0xff] %v2899_v41 }
 0x594   :  { %v4368_v63 = vpop.eup %4367 }
 0x595   :  { %v2891_v58 = vmul.f32 0.6931472, %v4368_v63 }
 0x596   :  { %v4370_v33 = vpop.eup %4369 }
 0x597   :  { %v2907_v37 = vsub.f32 %v6284_v61, %v2891_v58  ;;  %v2887_v16 = vmul.f32 0.6931472, %v4370_v33 }
 0x599   :  { %2923 = vst [vmem:[%s6366_s12 + $0x78] sm:$0xff] %v2907_v37  ;;  %v2905_v49 = vsub.f32 %v6288_v31, %v2887_v16 }
 0x59b   :  { %2921 = vst [vmem:[%s6366_s12 + $0x68] sm:$0xff] %v2905_v49 }

</bundles_post_ra>
